<compile_context>
chip_gen: v7x
topology: tpu7x:2x2x1
jax: 0.10.0
libtpu: 0.0.40
codegen_flags: <defaults>
</compile_context>

<pallas_src>
import jax
import jax.numpy as jnp
import numpy as np
from jax.experimental import pallas as pl
from jax.experimental import pallas as _pl_unused  # noqa: F401
from jax.experimental.pallas import tpu as pltpu   # noqa: F401  (no TPU-specific params needed at this size)

SEQ = 8      # sequence length (time-major dim 0 of x)
BATCH = 4    # batch size   (dim 1 of x)
INPUT = 16   # input_size == attention hidden_dim
HIDDEN = 32  # LSTM hidden_dim


# ---------------------------------------------------------------------------
# Fused kernel: cross-attention + grid-LSTM recurrence, single invocation.
# ---------------------------------------------------------------------------
def _grid_lstm_kernel(x_ref,        # (B*S, D)      batch-major, flattened input
                      wproj_ref,    # (D, 8H + 2D)  [Wv_t.Wout_top.Wih_t | Wv_d.Wout_bot.Wih_t | M_t | M_d]
                      bpre_ref,     # (1, 4H)       folded t-cell bias
                      whd_ref,      # (H, 8H)       h_d -> [t-cell gates | d-cell gates]
                      whht_ref,     # (H, 4H)       h_t -> t-cell gates (Whh_t)
                      wbd_ref,      # (H, 4H)       new h_t -> d-cell gates (Wt.Wih_d)
                      bgd_ref,      # (1, 4H)       folded d-cell bias
                      out_t_ref,    # (S, B, H)
                      out_d_ref):   # (S, B, H)
    D, H, S = INPUT, HIDDEN, SEQ
    B = x_ref.shape[0] // S
    G = 4 * H

    # ---------------- attention: one fused MXU projection --------------------
    x = x_ref[...]                                                    # (B*S, D)
    proj = jnp.dot(x, wproj_ref[...], preferred_element_type=jnp.float32)  # (B*S, 8H+2D)
    xb = x.reshape(B, S, D)
    proj = proj.reshape(B, S, 2 * G + 2 * D)                          # layout-trivial split
    xv_t = proj[..., 0 * G:1 * G]          # x @ (Wv_t.Wout_top.Wih_t)   (B,S,128) lane-dense
    xv_d = proj[..., 1 * G:2 * G]          # x @ (Wv_d.Wout_bot.Wih_t)
    xm_t = proj[..., 2 * G:2 * G + D]      # x @ (Wqd.Wkt^T)  -> scores_t bilinear form
    xm_d = proj[..., 2 * G + D:]           # x @ (Wqt.Wkd^T)  -> scores_d bilinear form

    def softmax_lastdim(s):
        m = jnp.max(s, axis=-1, keepdims=True)
        e = jnp.exp(s - m)
        return e / jnp.sum(e, axis=-1, keepdims=True)

    # Unscaled dot-product attention (matches the PyTorch module: no 1/sqrt(D)).
    alpha_t = softmax_lastdim(jnp.einsum('bsd,btd->bst', xm_t, xb,
                                         preferred_element_type=jnp.float32))
    alpha_d = softmax_lastdim(jnp.einsum('bsd,btd->bst', xm_d, xb,
                                         preferred_element_type=jnp.float32))

    # Per-timestep t-cell gate preactivation from the attention:
    #   pre[:, t, :] == (x_att[t] + bd-shift) @ Wih_t + bih_t + bhh_t     (B, S, 4H=128)
    pre = (jnp.einsum('bst,btg->bsg', alpha_t, xv_t, preferred_element_type=jnp.float32)
           + jnp.einsum('bst,btg->bsg', alpha_d, xv_d, preferred_element_type=jnp.float32)
           + bpre_ref[...])

    # ---------------- grid-LSTM recurrence -----------------------------------
    w_hd = whd_ref[...]          # (H, 8H)  hoisted out of the time loop
    whh_t = whht_ref[...]        # (H, 4H)
    w_bd = wbd_ref[...]          # (H, 4H)
    bgd = bgd_ref[...]           # (1, 4H)

    def activate(gates):
        # Gate columns pre-ordered [i | f | o | g]: sigmoid only on the first 3H (EUP on
        # the serial chain), tanh on the trailing H.
        sig = jax.nn.sigmoid(gates[:, :3 * H])
        i = sig[:, 0 * H:1 * H]
        f = sig[:, 1 * H:2 * H]
        o = sig[:, 2 * H:3 * H]
        g = jnp.tanh(gates[:, 3 * H:])
        return i, f, o, g

    zeros = jnp.zeros((B, H), jnp.float32)
    h_t, C_t, h_d, C_d = zeros, zeros, zeros, zeros
    outs_t, outs_d = [], []

    for t in range(S):   # fully unrolled static time loop (S = 8)
        # Single 256-lane MXU push takes all h_d work off both cells' serial paths.
        hd_gates = jnp.dot(h_d, w_hd, preferred_element_type=jnp.float32)      # (B, 8H)

        gates_t = (pre[:, t, :] + hd_gates[:, :G]
                   + jnp.dot(h_t, whh_t, preferred_element_type=jnp.float32))  # (B, 4H)
        i, f, o, g = activate(gates_t)
        C_t = f * C_t + i * g
        h_t = o * jnp.tanh(C_t)
        outs_t.append(h_t)

        gates_d = (hd_gates[:, G:] + bgd
                   + jnp.dot(h_t, w_bd, preferred_element_type=jnp.float32))   # (B, 4H)
        i, f, o, g = activate(gates_d)
        C_d = f * C_d + i * g
        h_d = o * jnp.tanh(C_d)
        outs_d.append(h_d)

    # Buffer hidden states and write each output exactly once after the loop.
    out_t_ref[...] = jnp.stack(outs_t, axis=0)
    out_d_ref[...] = jnp.stack(outs_d, axis=0)


# ---------------------------------------------------------------------------
# Wrapper: full GridLSTM.forward(x) (x_d = None branch).  x: (S, B, D) time-major.
# ---------------------------------------------------------------------------
@jax.jit
def grid_lstm_forward(x, fp):
    S, B, D = x.shape
    H = HIDDEN
    # Batch-major flatten for the single fused projection matmul (tiny XLA relayout).
    x_flat = jnp.transpose(x, (1, 0, 2)).reshape(B * S, D)
    # NOTE(v7x): deliberately NOT split across the two TensorCores / no grid: the
    # recurrence is a serial dependency chain and the attention is a handful of tiny
    # MXU pushes; cross-core barriers would cost more than the work they parallelize.
    out_t, out_d = pl.pallas_call(
        _grid_lstm_kernel,
        out_shape=(jax.ShapeDtypeStruct((S, B, H), jnp.float32),
                   jax.ShapeDtypeStruct((S, B, H), jnp.float32)),
    )(x_flat, fp["Wproj"], fp["b_pre"], fp["W_hd"], fp["Whh_t"], fp["W_bd"], fp["bgd"])
    return out_t, out_d


# ---------------------------------------------------------------------------
# Parameters.  Raw params mirror the PyTorch module (pre-transposed: y = x @ W^T -> x @ WT);
# fuse_params builds the kernel's fused weights on the host (pure f32 re-association).
# ---------------------------------------------------------------------------
def init_params(key):
    D, H = INPUT, HIDDEN
    names_shapes = [
        ("WqtT", (D, D)), ("WktT", (D, D)), ("WvtT", (D, D)),
        ("WqdT", (D, D)), ("WkdT", (D, D)), ("WvdT", (D, D)),
        ("WoutT", (2 * D, D)), ("bout", (1, D)),
        ("WtT", (H, D)), ("bt", (1, D)),        # t_Linear: hidden -> input
        ("WdT", (H, D)), ("bd", (1, D)),        # d_Linear: hidden -> input
        ("WihT_t", (D, 4 * H)), ("WhhT_t", (H, 4 * H)),
        ("bih_t", (1, 4 * H)), ("bhh_t", (1, 4 * H)),
        ("WihT_d", (D, 4 * H)), ("WhhT_d", (H, 4 * H)),
        ("bih_d", (1, 4 * H)), ("bhh_d", (1, 4 * H)),
    ]
    keys = jax.random.split(key, len(names_shapes))
    return {name: 0.1 * jax.random.normal(k, shape, dtype=jnp.float32)
            for (name, shape), k in zip(names_shapes, keys)}


def fuse_params(p):
    D, H = INPUT, HIDDEN

    def reorder(w):
        # PyTorch LSTMCell gate order [i|f|g|o] -> kernel order [i|f|o|g] (last axis).
        return jnp.concatenate([w[..., 0:2 * H], w[..., 3 * H:4 * H], w[..., 2 * H:3 * H]],
                               axis=-1)

    wih_t, whh_t = reorder(p["WihT_t"]), reorder(p["WhhT_t"])
    bih_t, bhh_t = reorder(p["bih_t"]), reorder(p["bhh_t"])
    wih_d, whh_d = reorder(p["WihT_d"]), reorder(p["WhhT_d"])
    bih_d, bhh_d = reorder(p["bih_d"]), reorder(p["bhh_d"])

    wout_top = p["WoutT"][:D, :]     # out_linear half applied to attention out_t
    wout_bot = p["WoutT"][D:, :]     # out_linear half applied to attention out_d

    # Attention folds: bilinear Q/K forms + V carried all the way through out_linear and
    # the t-cell input weights, so the attention emits 128-lane gate preactivations.
    m_t = p["WqdT"] @ p["WktT"].T                      # (D, D)   scores_t bilinear form
    m_d = p["WqtT"] @ p["WkdT"].T                      # (D, D)   scores_d bilinear form
    wv_t = p["WvtT"] @ wout_top @ wih_t                # (D, 4H)
    wv_d = p["WvdT"] @ wout_bot @ wih_t                # (D, 4H)
    wproj = jnp.concatenate([wv_t, wv_d, m_t, m_d], axis=1)      # (D, 8H + 2D)

    b_pre = (p["bout"] + p["bd"]) @ wih_t + bih_t + bhh_t        # (1, 4H)

    # Recurrence folds (t_Linear / d_Linear absorbed into the gate weights).
    a_t = p["WdT"] @ wih_t                             # (H, 4H) h_d -> t-cell gates
    c_d = p["WdT"] @ wih_d + whh_d                     # (H, 4H) h_d -> d-cell gates
    w_hd = jnp.concatenate([a_t, c_d], axis=1)         # (H, 8H)
    w_bd = p["WtT"] @ wih_d                            # (H, 4H) new h_t -> d-cell gates
    bgd = (p["bt"] + p["bd"]) @ wih_d + bih_d + bhh_d  # (1, 4H)

    return {"Wproj": wproj, "b_pre": b_pre, "W_hd": w_hd,
            "Whh_t": whh_t, "W_bd": w_bd, "bgd": bgd}


# ---------------------------------------------------------------------------
# Pure-JAX reference (un-fused math, matching the PyTorch module) for correctness.
# ---------------------------------------------------------------------------
def reference_forward(x, p):
    inputs = jnp.transpose(x, (1, 0, 2))                      # (B, S, D)
    q_t = inputs @ p["WqtT"]; k_t = inputs @ p["WktT"]; v_t = inputs @ p["WvtT"]
    q_d = inputs @ p["WqdT"]; k_d = inputs @ p["WkdT"]; v_d = inputs @ p["WvdT"]
    alpha_t = jax.nn.softmax(jnp.einsum("bsd,btd->bst", q_d, k_t), axis=-1)
    alpha_d = jax.nn.softmax(jnp.einsum("bsd,btd->bst", q_t, k_d), axis=-1)
    out_t = alpha_t @ v_t
    out_d = alpha_d @ v_d
    x_att = jnp.concatenate([out_t, out_d], axis=-1) @ p["WoutT"] + p["bout"]
    x_att = jnp.transpose(x_att, (1, 0, 2))                   # (S, B, D)

    def cell(inp, h, c, wihT, whhT, bih, bhh):
        gates = inp @ wihT + bih + h @ whhT + bhh
        i, f, g, o = jnp.split(gates, 4, axis=-1)
        c2 = jax.nn.sigmoid(f) * c + jax.nn.sigmoid(i) * jnp.tanh(g)
        return jax.nn.sigmoid(o) * jnp.tanh(c2), c2

    def step(carry, xt):
        h_t, C_t, h_d, C_d = carry
        d2h_t = h_d @ p["WdT"] + p["bd"]
        h_t, C_t = cell(xt + d2h_t, h_t, C_t, p["WihT_t"], p["WhhT_t"], p["bih_t"], p["bhh_t"])
        t2h_d = h_t @ p["WtT"] + p["bt"]
        d2h_d = h_d @ p["WdT"] + p["bd"]
        h_d, C_d = cell(t2h_d + d2h_d, h_d, C_d, p["WihT_d"], p["WhhT_d"], p["bih_d"], p["bhh_d"])
        return (h_t, C_t, h_d, C_d), (h_t, h_d)

    B = x.shape[1]
    init = tuple(jnp.zeros((B, HIDDEN), jnp.float32) for _ in range(4))
    _, (outs_t, outs_d) = jax.lax.scan(step, init, x_att)
    return outs_t, outs_d


if __name__ == "__main__":
    key = jax.random.PRNGKey(0)
    pkey, xkey = jax.random.split(key)
    params = init_params(pkey)
    fused = fuse_params(params)

    # x: (seq, batch, input_size) — time-major, as the PyTorch forward expects.
    x = jax.random.normal(xkey, (SEQ, BATCH, INPUT), dtype=jnp.float32)

    out_t, out_d = grid_lstm_forward(x, fused)
    out_t, out_d = jax.block_until_ready((out_t, out_d))

    ref_t, ref_d = reference_forward(x, params)
    np.testing.assert_allclose(np.asarray(out_t), np.asarray(ref_t), rtol=1e-4, atol=1e-4)
    np.testing.assert_allclose(np.asarray(out_d), np.asarray(ref_d), rtol=1e-4, atol=1e-4)

    assert out_t.shape == (SEQ, BATCH, HIDDEN) and out_d.shape == (SEQ, BATCH, HIDDEN)
    print("KERNEL_OK")
</pallas_src>

<mosaic_0001>
module attributes {stable_mosaic.version = 11 : i64} {
  func.func @_grid_lstm_kernel(%arg0: memref<32x16xf32, #tpu.memory_space<vmem>>, %arg1: memref<16x288xf32, #tpu.memory_space<vmem>>, %arg2: memref<1x128xf32, #tpu.memory_space<vmem>>, %arg3: memref<32x256xf32, #tpu.memory_space<vmem>>, %arg4: memref<32x128xf32, #tpu.memory_space<vmem>>, %arg5: memref<32x128xf32, #tpu.memory_space<vmem>>, %arg6: memref<1x128xf32, #tpu.memory_space<vmem>>, %arg7: memref<8x4x32xf32, #tpu.memory_space<vmem>>, %arg8: memref<8x4x32xf32, #tpu.memory_space<vmem>>) attributes {dimension_semantics = [], scalar_prefetch = 0 : i64, scratch_operands = 0 : i64, tpu.core_type = #tpu.core_type<tc>} {
    %c0 = arith.constant 0 : index
    %c0_0 = arith.constant 0 : index
    %0 = vector.load %arg0[%c0, %c0_0] : memref<32x16xf32, #tpu.memory_space<vmem>>, vector<32x16xf32>
    %c0_1 = arith.constant 0 : index
    %c0_2 = arith.constant 0 : index
    %1 = vector.load %arg1[%c0_1, %c0_2] : memref<16x288xf32, #tpu.memory_space<vmem>>, vector<16x288xf32>
    %cst = arith.constant dense<0.000000e+00> : vector<32x288xf32>
    %2 = tpu.matmul %0, %1, %cst {dimension_numbers = #tpu.dot_dimension_numbers<[1], [0], [0], [1], [0, 0, 1, 1], [], []>} : vector<32x16xf32>, vector<16x288xf32>, vector<32x288xf32> -> vector<32x288xf32>
    %3 = vector.shape_cast %0 : vector<32x16xf32> to vector<4x8x16xf32>
    %4 = vector.shape_cast %2 : vector<32x288xf32> to vector<4x8x288xf32>
    %5 = vector.extract_strided_slice %4 {offsets = [0, 0, 0], sizes = [4, 8, 128], strides = [1, 1, 1]} : vector<4x8x288xf32> to vector<4x8x128xf32>
    %6 = vector.extract_strided_slice %4 {offsets = [0, 0, 128], sizes = [4, 8, 128], strides = [1, 1, 1]} : vector<4x8x288xf32> to vector<4x8x128xf32>
    %7 = vector.extract_strided_slice %4 {offsets = [0, 0, 256], sizes = [4, 8, 16], strides = [1, 1, 1]} : vector<4x8x288xf32> to vector<4x8x16xf32>
    %8 = vector.extract_strided_slice %4 {offsets = [0, 0, 272], sizes = [4, 8, 16], strides = [1, 1, 1]} : vector<4x8x288xf32> to vector<4x8x16xf32>
    "tpu.trace_start"() <{level = 10 : i32, message = "bsd,btd->bst"}> : () -> ()
    %cst_3 = arith.constant dense<0.000000e+00> : vector<4x8x8xf32>
    %9 = tpu.matmul %7, %3, %cst_3 {dimension_numbers = #tpu.dot_dimension_numbers<[2], [2], [1], [1], [0, 0, 0, 1, 1, 1], [0], [0]>} : vector<4x8x16xf32>, vector<4x8x16xf32>, vector<4x8x8xf32> -> vector<4x8x8xf32>
    "tpu.trace_stop"() : () -> ()
    %cst_4 = arith.constant dense<0xFF800000> : vector<4x8xf32>
    %10 = vector.multi_reduction <maximumf>, %9, %cst_4 [2] : vector<4x8x8xf32> to vector<4x8xf32>
    %11 = vector.shape_cast %10 : vector<4x8xf32> to vector<4x8x1xf32>
    %12 = vector.broadcast %11 : vector<4x8x1xf32> to vector<4x8x8xf32>
    %13 = arith.subf %9, %12 : vector<4x8x8xf32>
    %14 = math.exp %13 : vector<4x8x8xf32>
    %cst_5 = arith.constant dense<0.000000e+00> : vector<4x8xf32>
    %15 = vector.multi_reduction <add>, %14, %cst_5 [2] : vector<4x8x8xf32> to vector<4x8xf32>
    %16 = vector.shape_cast %15 : vector<4x8xf32> to vector<4x8x1xf32>
    %17 = vector.broadcast %16 : vector<4x8x1xf32> to vector<4x8x8xf32>
    %18 = arith.divf %14, %17 : vector<4x8x8xf32>
    "tpu.trace_start"() <{level = 10 : i32, message = "bsd,btd->bst"}> : () -> ()
    %cst_6 = arith.constant dense<0.000000e+00> : vector<4x8x8xf32>
    %19 = tpu.matmul %8, %3, %cst_6 {dimension_numbers = #tpu.dot_dimension_numbers<[2], [2], [1], [1], [0, 0, 0, 1, 1, 1], [0], [0]>} : vector<4x8x16xf32>, vector<4x8x16xf32>, vector<4x8x8xf32> -> vector<4x8x8xf32>
    "tpu.trace_stop"() : () -> ()
    %cst_7 = arith.constant dense<0xFF800000> : vector<4x8xf32>
    %20 = vector.multi_reduction <maximumf>, %19, %cst_7 [2] : vector<4x8x8xf32> to vector<4x8xf32>
    %21 = vector.shape_cast %20 : vector<4x8xf32> to vector<4x8x1xf32>
    %22 = vector.broadcast %21 : vector<4x8x1xf32> to vector<4x8x8xf32>
    %23 = arith.subf %19, %22 : vector<4x8x8xf32>
    %24 = math.exp %23 : vector<4x8x8xf32>
    %cst_8 = arith.constant dense<0.000000e+00> : vector<4x8xf32>
    %25 = vector.multi_reduction <add>, %24, %cst_8 [2] : vector<4x8x8xf32> to vector<4x8xf32>
    %26 = vector.shape_cast %25 : vector<4x8xf32> to vector<4x8x1xf32>
    %27 = vector.broadcast %26 : vector<4x8x1xf32> to vector<4x8x8xf32>
    %28 = arith.divf %24, %27 : vector<4x8x8xf32>
    "tpu.trace_start"() <{level = 10 : i32, message = "bst,btg->bsg"}> : () -> ()
    %cst_9 = arith.constant dense<0.000000e+00> : vector<4x8x128xf32>
    %29 = tpu.matmul %18, %5, %cst_9 {dimension_numbers = #tpu.dot_dimension_numbers<[2], [1], [1], [2], [0, 0, 0, 1, 1, 2], [0], [0]>} : vector<4x8x8xf32>, vector<4x8x128xf32>, vector<4x8x128xf32> -> vector<4x8x128xf32>
    %cst_10 = arith.constant dense<0.000000e+00> : vector<4x8x128xf32>
    %30 = tpu.matmul %28, %6, %cst_10 {dimension_numbers = #tpu.dot_dimension_numbers<[2], [1], [1], [2], [0, 0, 0, 1, 1, 2], [0], [0]>} : vector<4x8x8xf32>, vector<4x8x128xf32>, vector<4x8x128xf32> -> vector<4x8x128xf32>
    "tpu.trace_stop"() : () -> ()
    %31 = arith.addf %29, %30 : vector<4x8x128xf32>
    %c0_11 = arith.constant 0 : index
    %c0_12 = arith.constant 0 : index
    %32 = vector.load %arg2[%c0_11, %c0_12] : memref<1x128xf32, #tpu.memory_space<vmem>>, vector<1x128xf32>
    %33 = vector.shape_cast %32 : vector<1x128xf32> to vector<1x1x128xf32>
    %34 = vector.broadcast %33 : vector<1x1x128xf32> to vector<4x8x128xf32>
    %35 = arith.addf %31, %34 : vector<4x8x128xf32>
    %c0_13 = arith.constant 0 : index
    %c0_14 = arith.constant 0 : index
    %36 = vector.load %arg3[%c0_13, %c0_14] : memref<32x256xf32, #tpu.memory_space<vmem>>, vector<32x256xf32>
    %c0_15 = arith.constant 0 : index
    %c0_16 = arith.constant 0 : index
    %37 = vector.load %arg4[%c0_15, %c0_16] : memref<32x128xf32, #tpu.memory_space<vmem>>, vector<32x128xf32>
    %c0_17 = arith.constant 0 : index
    %c0_18 = arith.constant 0 : index
    %38 = vector.load %arg5[%c0_17, %c0_18] : memref<32x128xf32, #tpu.memory_space<vmem>>, vector<32x128xf32>
    %c0_19 = arith.constant 0 : index
    %c0_20 = arith.constant 0 : index
    %39 = vector.load %arg6[%c0_19, %c0_20] : memref<1x128xf32, #tpu.memory_space<vmem>>, vector<1x128xf32>
    %cst_21 = arith.constant 0.000000e+00 : f32
    %40 = vector.broadcast %cst_21 : f32 to vector<4x32xf32>
    %cst_22 = arith.constant dense<0.000000e+00> : vector<4x256xf32>
    %41 = tpu.matmul %40, %36, %cst_22 {dimension_numbers = #tpu.dot_dimension_numbers<[1], [0], [0], [1], [0, 0, 1, 1], [], []>} : vector<4x32xf32>, vector<32x256xf32>, vector<4x256xf32> -> vector<4x256xf32>
    %42 = vector.extract_strided_slice %35 {offsets = [0, 0, 0], sizes = [4, 1, 128], strides = [1, 1, 1]} : vector<4x8x128xf32> to vector<4x1x128xf32>
    %43 = vector.shape_cast %42 : vector<4x1x128xf32> to vector<4x128xf32>
    %44 = vector.extract_strided_slice %41 {offsets = [0, 0], sizes = [4, 128], strides = [1, 1]} : vector<4x256xf32> to vector<4x128xf32>
    %45 = arith.addf %43, %44 : vector<4x128xf32>
    %cst_23 = arith.constant dense<0.000000e+00> : vector<4x128xf32>
    %46 = tpu.matmul %40, %37, %cst_23 {dimension_numbers = #tpu.dot_dimension_numbers<[1], [0], [0], [1], [0, 0, 1, 1], [], []>} : vector<4x32xf32>, vector<32x128xf32>, vector<4x128xf32> -> vector<4x128xf32>
    %47 = arith.addf %45, %46 : vector<4x128xf32>
    %48 = vector.extract_strided_slice %47 {offsets = [0, 0], sizes = [4, 96], strides = [1, 1]} : vector<4x128xf32> to vector<4x96xf32>
    %49 = arith.negf %48 : vector<4x96xf32>
    %50 = math.exp %49 : vector<4x96xf32>
    %cst_24 = arith.constant 1.000000e+00 : f32
    %51 = vector.broadcast %cst_24 : f32 to vector<4x96xf32>
    %52 = arith.addf %51, %50 : vector<4x96xf32>
    %53 = arith.divf %51, %52 : vector<4x96xf32>
    %54 = vector.extract_strided_slice %53 {offsets = [0, 0], sizes = [4, 32], strides = [1, 1]} : vector<4x96xf32> to vector<4x32xf32>
    %55 = vector.extract_strided_slice %53 {offsets = [0, 32], sizes = [4, 32], strides = [1, 1]} : vector<4x96xf32> to vector<4x32xf32>
    %56 = vector.extract_strided_slice %53 {offsets = [0, 64], sizes = [4, 32], strides = [1, 1]} : vector<4x96xf32> to vector<4x32xf32>
    %57 = vector.extract_strided_slice %47 {offsets = [0, 96], sizes = [4, 32], strides = [1, 1]} : vector<4x128xf32> to vector<4x32xf32>
    %58 = math.tanh %57 : vector<4x32xf32>
    %59 = arith.mulf %55, %40 : vector<4x32xf32>
    %60 = arith.mulf %54, %58 : vector<4x32xf32>
    %61 = arith.addf %59, %60 : vector<4x32xf32>
    %62 = math.tanh %61 : vector<4x32xf32>
    %63 = arith.mulf %56, %62 : vector<4x32xf32>
    %64 = vector.extract_strided_slice %41 {offsets = [0, 128], sizes = [4, 128], strides = [1, 1]} : vector<4x256xf32> to vector<4x128xf32>
    %65 = vector.broadcast %39 : vector<1x128xf32> to vector<4x128xf32>
    %66 = arith.addf %64, %65 : vector<4x128xf32>
    %cst_25 = arith.constant dense<0.000000e+00> : vector<4x128xf32>
    %67 = tpu.matmul %63, %38, %cst_25 {dimension_numbers = #tpu.dot_dimension_numbers<[1], [0], [0], [1], [0, 0, 1, 1], [], []>} : vector<4x32xf32>, vector<32x128xf32>, vector<4x128xf32> -> vector<4x128xf32>
    %68 = arith.addf %66, %67 : vector<4x128xf32>
    %69 = vector.extract_strided_slice %68 {offsets = [0, 0], sizes = [4, 96], strides = [1, 1]} : vector<4x128xf32> to vector<4x96xf32>
    %70 = arith.negf %69 : vector<4x96xf32>
    %71 = math.exp %70 : vector<4x96xf32>
    %cst_26 = arith.constant 1.000000e+00 : f32
    %72 = vector.broadcast %cst_26 : f32 to vector<4x96xf32>
    %73 = arith.addf %72, %71 : vector<4x96xf32>
    %74 = arith.divf %72, %73 : vector<4x96xf32>
    %75 = vector.extract_strided_slice %74 {offsets = [0, 0], sizes = [4, 32], strides = [1, 1]} : vector<4x96xf32> to vector<4x32xf32>
    %76 = vector.extract_strided_slice %74 {offsets = [0, 32], sizes = [4, 32], strides = [1, 1]} : vector<4x96xf32> to vector<4x32xf32>
    %77 = vector.extract_strided_slice %74 {offsets = [0, 64], sizes = [4, 32], strides = [1, 1]} : vector<4x96xf32> to vector<4x32xf32>
    %78 = vector.extract_strided_slice %68 {offsets = [0, 96], sizes = [4, 32], strides = [1, 1]} : vector<4x128xf32> to vector<4x32xf32>
    %79 = math.tanh %78 : vector<4x32xf32>
    %80 = arith.mulf %76, %40 : vector<4x32xf32>
    %81 = arith.mulf %75, %79 : vector<4x32xf32>
    %82 = arith.addf %80, %81 : vector<4x32xf32>
    %83 = math.tanh %82 : vector<4x32xf32>
    %84 = arith.mulf %77, %83 : vector<4x32xf32>
    %cst_27 = arith.constant dense<0.000000e+00> : vector<4x256xf32>
    %85 = tpu.matmul %84, %36, %cst_27 {dimension_numbers = #tpu.dot_dimension_numbers<[1], [0], [0], [1], [0, 0, 1, 1], [], []>} : vector<4x32xf32>, vector<32x256xf32>, vector<4x256xf32> -> vector<4x256xf32>
    %86 = vector.extract_strided_slice %35 {offsets = [0, 1, 0], sizes = [4, 1, 128], strides = [1, 1, 1]} : vector<4x8x128xf32> to vector<4x1x128xf32>
    %87 = vector.shape_cast %86 : vector<4x1x128xf32> to vector<4x128xf32>
    %88 = vector.extract_strided_slice %85 {offsets = [0, 0], sizes = [4, 128], strides = [1, 1]} : vector<4x256xf32> to vector<4x128xf32>
    %89 = arith.addf %87, %88 : vector<4x128xf32>
    %cst_28 = arith.constant dense<0.000000e+00> : vector<4x128xf32>
    %90 = tpu.matmul %63, %37, %cst_28 {dimension_numbers = #tpu.dot_dimension_numbers<[1], [0], [0], [1], [0, 0, 1, 1], [], []>} : vector<4x32xf32>, vector<32x128xf32>, vector<4x128xf32> -> vector<4x128xf32>
    %91 = arith.addf %89, %90 : vector<4x128xf32>
    %92 = vector.extract_strided_slice %91 {offsets = [0, 0], sizes = [4, 96], strides = [1, 1]} : vector<4x128xf32> to vector<4x96xf32>
    %93 = arith.negf %92 : vector<4x96xf32>
    %94 = math.exp %93 : vector<4x96xf32>
    %cst_29 = arith.constant 1.000000e+00 : f32
    %95 = vector.broadcast %cst_29 : f32 to vector<4x96xf32>
    %96 = arith.addf %95, %94 : vector<4x96xf32>
    %97 = arith.divf %95, %96 : vector<4x96xf32>
    %98 = vector.extract_strided_slice %97 {offsets = [0, 0], sizes = [4, 32], strides = [1, 1]} : vector<4x96xf32> to vector<4x32xf32>
    %99 = vector.extract_strided_slice %97 {offsets = [0, 32], sizes = [4, 32], strides = [1, 1]} : vector<4x96xf32> to vector<4x32xf32>
    %100 = vector.extract_strided_slice %97 {offsets = [0, 64], sizes = [4, 32], strides = [1, 1]} : vector<4x96xf32> to vector<4x32xf32>
    %101 = vector.extract_strided_slice %91 {offsets = [0, 96], sizes = [4, 32], strides = [1, 1]} : vector<4x128xf32> to vector<4x32xf32>
    %102 = math.tanh %101 : vector<4x32xf32>
    %103 = arith.mulf %99, %61 : vector<4x32xf32>
    %104 = arith.mulf %98, %102 : vector<4x32xf32>
    %105 = arith.addf %103, %104 : vector<4x32xf32>
    %106 = math.tanh %105 : vector<4x32xf32>
    %107 = arith.mulf %100, %106 : vector<4x32xf32>
    %108 = vector.extract_strided_slice %85 {offsets = [0, 128], sizes = [4, 128], strides = [1, 1]} : vector<4x256xf32> to vector<4x128xf32>
    %109 = vector.broadcast %39 : vector<1x128xf32> to vector<4x128xf32>
    %110 = arith.addf %108, %109 : vector<4x128xf32>
    %cst_30 = arith.constant dense<0.000000e+00> : vector<4x128xf32>
    %111 = tpu.matmul %107, %38, %cst_30 {dimension_numbers = #tpu.dot_dimension_numbers<[1], [0], [0], [1], [0, 0, 1, 1], [], []>} : vector<4x32xf32>, vector<32x128xf32>, vector<4x128xf32> -> vector<4x128xf32>
    %112 = arith.addf %110, %111 : vector<4x128xf32>
    %113 = vector.extract_strided_slice %112 {offsets = [0, 0], sizes = [4, 96], strides = [1, 1]} : vector<4x128xf32> to vector<4x96xf32>
    %114 = arith.negf %113 : vector<4x96xf32>
    %115 = math.exp %114 : vector<4x96xf32>
    %cst_31 = arith.constant 1.000000e+00 : f32
    %116 = vector.broadcast %cst_31 : f32 to vector<4x96xf32>
    %117 = arith.addf %116, %115 : vector<4x96xf32>
    %118 = arith.divf %116, %117 : vector<4x96xf32>
    %119 = vector.extract_strided_slice %118 {offsets = [0, 0], sizes = [4, 32], strides = [1, 1]} : vector<4x96xf32> to vector<4x32xf32>
    %120 = vector.extract_strided_slice %118 {offsets = [0, 32], sizes = [4, 32], strides = [1, 1]} : vector<4x96xf32> to vector<4x32xf32>
    %121 = vector.extract_strided_slice %118 {offsets = [0, 64], sizes = [4, 32], strides = [1, 1]} : vector<4x96xf32> to vector<4x32xf32>
    %122 = vector.extract_strided_slice %112 {offsets = [0, 96], sizes = [4, 32], strides = [1, 1]} : vector<4x128xf32> to vector<4x32xf32>
    %123 = math.tanh %122 : vector<4x32xf32>
    %124 = arith.mulf %120, %82 : vector<4x32xf32>
    %125 = arith.mulf %119, %123 : vector<4x32xf32>
    %126 = arith.addf %124, %125 : vector<4x32xf32>
    %127 = math.tanh %126 : vector<4x32xf32>
    %128 = arith.mulf %121, %127 : vector<4x32xf32>
    %cst_32 = arith.constant dense<0.000000e+00> : vector<4x256xf32>
    %129 = tpu.matmul %128, %36, %cst_32 {dimension_numbers = #tpu.dot_dimension_numbers<[1], [0], [0], [1], [0, 0, 1, 1], [], []>} : vector<4x32xf32>, vector<32x256xf32>, vector<4x256xf32> -> vector<4x256xf32>
    %130 = vector.extract_strided_slice %35 {offsets = [0, 2, 0], sizes = [4, 1, 128], strides = [1, 1, 1]} : vector<4x8x128xf32> to vector<4x1x128xf32>
    %131 = vector.shape_cast %130 : vector<4x1x128xf32> to vector<4x128xf32>
    %132 = vector.extract_strided_slice %129 {offsets = [0, 0], sizes = [4, 128], strides = [1, 1]} : vector<4x256xf32> to vector<4x128xf32>
    %133 = arith.addf %131, %132 : vector<4x128xf32>
    %cst_33 = arith.constant dense<0.000000e+00> : vector<4x128xf32>
    %134 = tpu.matmul %107, %37, %cst_33 {dimension_numbers = #tpu.dot_dimension_numbers<[1], [0], [0], [1], [0, 0, 1, 1], [], []>} : vector<4x32xf32>, vector<32x128xf32>, vector<4x128xf32> -> vector<4x128xf32>
    %135 = arith.addf %133, %134 : vector<4x128xf32>
    %136 = vector.extract_strided_slice %135 {offsets = [0, 0], sizes = [4, 96], strides = [1, 1]} : vector<4x128xf32> to vector<4x96xf32>
    %137 = arith.negf %136 : vector<4x96xf32>
    %138 = math.exp %137 : vector<4x96xf32>
    %cst_34 = arith.constant 1.000000e+00 : f32
    %139 = vector.broadcast %cst_34 : f32 to vector<4x96xf32>
    %140 = arith.addf %139, %138 : vector<4x96xf32>
    %141 = arith.divf %139, %140 : vector<4x96xf32>
    %142 = vector.extract_strided_slice %141 {offsets = [0, 0], sizes = [4, 32], strides = [1, 1]} : vector<4x96xf32> to vector<4x32xf32>
    %143 = vector.extract_strided_slice %141 {offsets = [0, 32], sizes = [4, 32], strides = [1, 1]} : vector<4x96xf32> to vector<4x32xf32>
    %144 = vector.extract_strided_slice %141 {offsets = [0, 64], sizes = [4, 32], strides = [1, 1]} : vector<4x96xf32> to vector<4x32xf32>
    %145 = vector.extract_strided_slice %135 {offsets = [0, 96], sizes = [4, 32], strides = [1, 1]} : vector<4x128xf32> to vector<4x32xf32>
    %146 = math.tanh %145 : vector<4x32xf32>
    %147 = arith.mulf %143, %105 : vector<4x32xf32>
    %148 = arith.mulf %142, %146 : vector<4x32xf32>
    %149 = arith.addf %147, %148 : vector<4x32xf32>
    %150 = math.tanh %149 : vector<4x32xf32>
    %151 = arith.mulf %144, %150 : vector<4x32xf32>
    %152 = vector.extract_strided_slice %129 {offsets = [0, 128], sizes = [4, 128], strides = [1, 1]} : vector<4x256xf32> to vector<4x128xf32>
    %153 = vector.broadcast %39 : vector<1x128xf32> to vector<4x128xf32>
    %154 = arith.addf %152, %153 : vector<4x128xf32>
    %cst_35 = arith.constant dense<0.000000e+00> : vector<4x128xf32>
    %155 = tpu.matmul %151, %38, %cst_35 {dimension_numbers = #tpu.dot_dimension_numbers<[1], [0], [0], [1], [0, 0, 1, 1], [], []>} : vector<4x32xf32>, vector<32x128xf32>, vector<4x128xf32> -> vector<4x128xf32>
    %156 = arith.addf %154, %155 : vector<4x128xf32>
    %157 = vector.extract_strided_slice %156 {offsets = [0, 0], sizes = [4, 96], strides = [1, 1]} : vector<4x128xf32> to vector<4x96xf32>
    %158 = arith.negf %157 : vector<4x96xf32>
    %159 = math.exp %158 : vector<4x96xf32>
    %cst_36 = arith.constant 1.000000e+00 : f32
    %160 = vector.broadcast %cst_36 : f32 to vector<4x96xf32>
    %161 = arith.addf %160, %159 : vector<4x96xf32>
    %162 = arith.divf %160, %161 : vector<4x96xf32>
    %163 = vector.extract_strided_slice %162 {offsets = [0, 0], sizes = [4, 32], strides = [1, 1]} : vector<4x96xf32> to vector<4x32xf32>
    %164 = vector.extract_strided_slice %162 {offsets = [0, 32], sizes = [4, 32], strides = [1, 1]} : vector<4x96xf32> to vector<4x32xf32>
    %165 = vector.extract_strided_slice %162 {offsets = [0, 64], sizes = [4, 32], strides = [1, 1]} : vector<4x96xf32> to vector<4x32xf32>
    %166 = vector.extract_strided_slice %156 {offsets = [0, 96], sizes = [4, 32], strides = [1, 1]} : vector<4x128xf32> to vector<4x32xf32>
    %167 = math.tanh %166 : vector<4x32xf32>
    %168 = arith.mulf %164, %126 : vector<4x32xf32>
    %169 = arith.mulf %163, %167 : vector<4x32xf32>
    %170 = arith.addf %168, %169 : vector<4x32xf32>
    %171 = math.tanh %170 : vector<4x32xf32>
    %172 = arith.mulf %165, %171 : vector<4x32xf32>
    %cst_37 = arith.constant dense<0.000000e+00> : vector<4x256xf32>
    %173 = tpu.matmul %172, %36, %cst_37 {dimension_numbers = #tpu.dot_dimension_numbers<[1], [0], [0], [1], [0, 0, 1, 1], [], []>} : vector<4x32xf32>, vector<32x256xf32>, vector<4x256xf32> -> vector<4x256xf32>
    %174 = vector.extract_strided_slice %35 {offsets = [0, 3, 0], sizes = [4, 1, 128], strides = [1, 1, 1]} : vector<4x8x128xf32> to vector<4x1x128xf32>
    %175 = vector.shape_cast %174 : vector<4x1x128xf32> to vector<4x128xf32>
    %176 = vector.extract_strided_slice %173 {offsets = [0, 0], sizes = [4, 128], strides = [1, 1]} : vector<4x256xf32> to vector<4x128xf32>
    %177 = arith.addf %175, %176 : vector<4x128xf32>
    %cst_38 = arith.constant dense<0.000000e+00> : vector<4x128xf32>
    %178 = tpu.matmul %151, %37, %cst_38 {dimension_numbers = #tpu.dot_dimension_numbers<[1], [0], [0], [1], [0, 0, 1, 1], [], []>} : vector<4x32xf32>, vector<32x128xf32>, vector<4x128xf32> -> vector<4x128xf32>
    %179 = arith.addf %177, %178 : vector<4x128xf32>
    %180 = vector.extract_strided_slice %179 {offsets = [0, 0], sizes = [4, 96], strides = [1, 1]} : vector<4x128xf32> to vector<4x96xf32>
    %181 = arith.negf %180 : vector<4x96xf32>
    %182 = math.exp %181 : vector<4x96xf32>
    %cst_39 = arith.constant 1.000000e+00 : f32
    %183 = vector.broadcast %cst_39 : f32 to vector<4x96xf32>
    %184 = arith.addf %183, %182 : vector<4x96xf32>
    %185 = arith.divf %183, %184 : vector<4x96xf32>
    %186 = vector.extract_strided_slice %185 {offsets = [0, 0], sizes = [4, 32], strides = [1, 1]} : vector<4x96xf32> to vector<4x32xf32>
    %187 = vector.extract_strided_slice %185 {offsets = [0, 32], sizes = [4, 32], strides = [1, 1]} : vector<4x96xf32> to vector<4x32xf32>
    %188 = vector.extract_strided_slice %185 {offsets = [0, 64], sizes = [4, 32], strides = [1, 1]} : vector<4x96xf32> to vector<4x32xf32>
    %189 = vector.extract_strided_slice %179 {offsets = [0, 96], sizes = [4, 32], strides = [1, 1]} : vector<4x128xf32> to vector<4x32xf32>
    %190 = math.tanh %189 : vector<4x32xf32>
    %191 = arith.mulf %187, %149 : vector<4x32xf32>
    %192 = arith.mulf %186, %190 : vector<4x32xf32>
    %193 = arith.addf %191, %192 : vector<4x32xf32>
    %194 = math.tanh %193 : vector<4x32xf32>
    %195 = arith.mulf %188, %194 : vector<4x32xf32>
    %196 = vector.extract_strided_slice %173 {offsets = [0, 128], sizes = [4, 128], strides = [1, 1]} : vector<4x256xf32> to vector<4x128xf32>
    %197 = vector.broadcast %39 : vector<1x128xf32> to vector<4x128xf32>
    %198 = arith.addf %196, %197 : vector<4x128xf32>
    %cst_40 = arith.constant dense<0.000000e+00> : vector<4x128xf32>
    %199 = tpu.matmul %195, %38, %cst_40 {dimension_numbers = #tpu.dot_dimension_numbers<[1], [0], [0], [1], [0, 0, 1, 1], [], []>} : vector<4x32xf32>, vector<32x128xf32>, vector<4x128xf32> -> vector<4x128xf32>
    %200 = arith.addf %198, %199 : vector<4x128xf32>
    %201 = vector.extract_strided_slice %200 {offsets = [0, 0], sizes = [4, 96], strides = [1, 1]} : vector<4x128xf32> to vector<4x96xf32>
    %202 = arith.negf %201 : vector<4x96xf32>
    %203 = math.exp %202 : vector<4x96xf32>
    %cst_41 = arith.constant 1.000000e+00 : f32
    %204 = vector.broadcast %cst_41 : f32 to vector<4x96xf32>
    %205 = arith.addf %204, %203 : vector<4x96xf32>
    %206 = arith.divf %204, %205 : vector<4x96xf32>
    %207 = vector.extract_strided_slice %206 {offsets = [0, 0], sizes = [4, 32], strides = [1, 1]} : vector<4x96xf32> to vector<4x32xf32>
    %208 = vector.extract_strided_slice %206 {offsets = [0, 32], sizes = [4, 32], strides = [1, 1]} : vector<4x96xf32> to vector<4x32xf32>
    %209 = vector.extract_strided_slice %206 {offsets = [0, 64], sizes = [4, 32], strides = [1, 1]} : vector<4x96xf32> to vector<4x32xf32>
    %210 = vector.extract_strided_slice %200 {offsets = [0, 96], sizes = [4, 32], strides = [1, 1]} : vector<4x128xf32> to vector<4x32xf32>
    %211 = math.tanh %210 : vector<4x32xf32>
    %212 = arith.mulf %208, %170 : vector<4x32xf32>
    %213 = arith.mulf %207, %211 : vector<4x32xf32>
    %214 = arith.addf %212, %213 : vector<4x32xf32>
    %215 = math.tanh %214 : vector<4x32xf32>
    %216 = arith.mulf %209, %215 : vector<4x32xf32>
    %cst_42 = arith.constant dense<0.000000e+00> : vector<4x256xf32>
    %217 = tpu.matmul %216, %36, %cst_42 {dimension_numbers = #tpu.dot_dimension_numbers<[1], [0], [0], [1], [0, 0, 1, 1], [], []>} : vector<4x32xf32>, vector<32x256xf32>, vector<4x256xf32> -> vector<4x256xf32>
    %218 = vector.extract_strided_slice %35 {offsets = [0, 4, 0], sizes = [4, 1, 128], strides = [1, 1, 1]} : vector<4x8x128xf32> to vector<4x1x128xf32>
    %219 = vector.shape_cast %218 : vector<4x1x128xf32> to vector<4x128xf32>
    %220 = vector.extract_strided_slice %217 {offsets = [0, 0], sizes = [4, 128], strides = [1, 1]} : vector<4x256xf32> to vector<4x128xf32>
    %221 = arith.addf %219, %220 : vector<4x128xf32>
    %cst_43 = arith.constant dense<0.000000e+00> : vector<4x128xf32>
    %222 = tpu.matmul %195, %37, %cst_43 {dimension_numbers = #tpu.dot_dimension_numbers<[1], [0], [0], [1], [0, 0, 1, 1], [], []>} : vector<4x32xf32>, vector<32x128xf32>, vector<4x128xf32> -> vector<4x128xf32>
    %223 = arith.addf %221, %222 : vector<4x128xf32>
    %224 = vector.extract_strided_slice %223 {offsets = [0, 0], sizes = [4, 96], strides = [1, 1]} : vector<4x128xf32> to vector<4x96xf32>
    %225 = arith.negf %224 : vector<4x96xf32>
    %226 = math.exp %225 : vector<4x96xf32>
    %cst_44 = arith.constant 1.000000e+00 : f32
    %227 = vector.broadcast %cst_44 : f32 to vector<4x96xf32>
    %228 = arith.addf %227, %226 : vector<4x96xf32>
    %229 = arith.divf %227, %228 : vector<4x96xf32>
    %230 = vector.extract_strided_slice %229 {offsets = [0, 0], sizes = [4, 32], strides = [1, 1]} : vector<4x96xf32> to vector<4x32xf32>
    %231 = vector.extract_strided_slice %229 {offsets = [0, 32], sizes = [4, 32], strides = [1, 1]} : vector<4x96xf32> to vector<4x32xf32>
    %232 = vector.extract_strided_slice %229 {offsets = [0, 64], sizes = [4, 32], strides = [1, 1]} : vector<4x96xf32> to vector<4x32xf32>
    %233 = vector.extract_strided_slice %223 {offsets = [0, 96], sizes = [4, 32], strides = [1, 1]} : vector<4x128xf32> to vector<4x32xf32>
    %234 = math.tanh %233 : vector<4x32xf32>
    %235 = arith.mulf %231, %193 : vector<4x32xf32>
    %236 = arith.mulf %230, %234 : vector<4x32xf32>
    %237 = arith.addf %235, %236 : vector<4x32xf32>
    %238 = math.tanh %237 : vector<4x32xf32>
    %239 = arith.mulf %232, %238 : vector<4x32xf32>
    %240 = vector.extract_strided_slice %217 {offsets = [0, 128], sizes = [4, 128], strides = [1, 1]} : vector<4x256xf32> to vector<4x128xf32>
    %241 = vector.broadcast %39 : vector<1x128xf32> to vector<4x128xf32>
    %242 = arith.addf %240, %241 : vector<4x128xf32>
    %cst_45 = arith.constant dense<0.000000e+00> : vector<4x128xf32>
    %243 = tpu.matmul %239, %38, %cst_45 {dimension_numbers = #tpu.dot_dimension_numbers<[1], [0], [0], [1], [0, 0, 1, 1], [], []>} : vector<4x32xf32>, vector<32x128xf32>, vector<4x128xf32> -> vector<4x128xf32>
    %244 = arith.addf %242, %243 : vector<4x128xf32>
    %245 = vector.extract_strided_slice %244 {offsets = [0, 0], sizes = [4, 96], strides = [1, 1]} : vector<4x128xf32> to vector<4x96xf32>
    %246 = arith.negf %245 : vector<4x96xf32>
    %247 = math.exp %246 : vector<4x96xf32>
    %cst_46 = arith.constant 1.000000e+00 : f32
    %248 = vector.broadcast %cst_46 : f32 to vector<4x96xf32>
    %249 = arith.addf %248, %247 : vector<4x96xf32>
    %250 = arith.divf %248, %249 : vector<4x96xf32>
    %251 = vector.extract_strided_slice %250 {offsets = [0, 0], sizes = [4, 32], strides = [1, 1]} : vector<4x96xf32> to vector<4x32xf32>
    %252 = vector.extract_strided_slice %250 {offsets = [0, 32], sizes = [4, 32], strides = [1, 1]} : vector<4x96xf32> to vector<4x32xf32>
    %253 = vector.extract_strided_slice %250 {offsets = [0, 64], sizes = [4, 32], strides = [1, 1]} : vector<4x96xf32> to vector<4x32xf32>
    %254 = vector.extract_strided_slice %244 {offsets = [0, 96], sizes = [4, 32], strides = [1, 1]} : vector<4x128xf32> to vector<4x32xf32>
    %255 = math.tanh %254 : vector<4x32xf32>
    %256 = arith.mulf %252, %214 : vector<4x32xf32>
    %257 = arith.mulf %251, %255 : vector<4x32xf32>
    %258 = arith.addf %256, %257 : vector<4x32xf32>
    %259 = math.tanh %258 : vector<4x32xf32>
    %260 = arith.mulf %253, %259 : vector<4x32xf32>
    %cst_47 = arith.constant dense<0.000000e+00> : vector<4x256xf32>
    %261 = tpu.matmul %260, %36, %cst_47 {dimension_numbers = #tpu.dot_dimension_numbers<[1], [0], [0], [1], [0, 0, 1, 1], [], []>} : vector<4x32xf32>, vector<32x256xf32>, vector<4x256xf32> -> vector<4x256xf32>
    %262 = vector.extract_strided_slice %35 {offsets = [0, 5, 0], sizes = [4, 1, 128], strides = [1, 1, 1]} : vector<4x8x128xf32> to vector<4x1x128xf32>
    %263 = vector.shape_cast %262 : vector<4x1x128xf32> to vector<4x128xf32>
    %264 = vector.extract_strided_slice %261 {offsets = [0, 0], sizes = [4, 128], strides = [1, 1]} : vector<4x256xf32> to vector<4x128xf32>
    %265 = arith.addf %263, %264 : vector<4x128xf32>
    %cst_48 = arith.constant dense<0.000000e+00> : vector<4x128xf32>
    %266 = tpu.matmul %239, %37, %cst_48 {dimension_numbers = #tpu.dot_dimension_numbers<[1], [0], [0], [1], [0, 0, 1, 1], [], []>} : vector<4x32xf32>, vector<32x128xf32>, vector<4x128xf32> -> vector<4x128xf32>
    %267 = arith.addf %265, %266 : vector<4x128xf32>
    %268 = vector.extract_strided_slice %267 {offsets = [0, 0], sizes = [4, 96], strides = [1, 1]} : vector<4x128xf32> to vector<4x96xf32>
    %269 = arith.negf %268 : vector<4x96xf32>
    %270 = math.exp %269 : vector<4x96xf32>
    %cst_49 = arith.constant 1.000000e+00 : f32
    %271 = vector.broadcast %cst_49 : f32 to vector<4x96xf32>
    %272 = arith.addf %271, %270 : vector<4x96xf32>
    %273 = arith.divf %271, %272 : vector<4x96xf32>
    %274 = vector.extract_strided_slice %273 {offsets = [0, 0], sizes = [4, 32], strides = [1, 1]} : vector<4x96xf32> to vector<4x32xf32>
    %275 = vector.extract_strided_slice %273 {offsets = [0, 32], sizes = [4, 32], strides = [1, 1]} : vector<4x96xf32> to vector<4x32xf32>
    %276 = vector.extract_strided_slice %273 {offsets = [0, 64], sizes = [4, 32], strides = [1, 1]} : vector<4x96xf32> to vector<4x32xf32>
    %277 = vector.extract_strided_slice %267 {offsets = [0, 96], sizes = [4, 32], strides = [1, 1]} : vector<4x128xf32> to vector<4x32xf32>
    %278 = math.tanh %277 : vector<4x32xf32>
    %279 = arith.mulf %275, %237 : vector<4x32xf32>
    %280 = arith.mulf %274, %278 : vector<4x32xf32>
    %281 = arith.addf %279, %280 : vector<4x32xf32>
    %282 = math.tanh %281 : vector<4x32xf32>
    %283 = arith.mulf %276, %282 : vector<4x32xf32>
    %284 = vector.extract_strided_slice %261 {offsets = [0, 128], sizes = [4, 128], strides = [1, 1]} : vector<4x256xf32> to vector<4x128xf32>
    %285 = vector.broadcast %39 : vector<1x128xf32> to vector<4x128xf32>
    %286 = arith.addf %284, %285 : vector<4x128xf32>
    %cst_50 = arith.constant dense<0.000000e+00> : vector<4x128xf32>
    %287 = tpu.matmul %283, %38, %cst_50 {dimension_numbers = #tpu.dot_dimension_numbers<[1], [0], [0], [1], [0, 0, 1, 1], [], []>} : vector<4x32xf32>, vector<32x128xf32>, vector<4x128xf32> -> vector<4x128xf32>
    %288 = arith.addf %286, %287 : vector<4x128xf32>
    %289 = vector.extract_strided_slice %288 {offsets = [0, 0], sizes = [4, 96], strides = [1, 1]} : vector<4x128xf32> to vector<4x96xf32>
    %290 = arith.negf %289 : vector<4x96xf32>
    %291 = math.exp %290 : vector<4x96xf32>
    %cst_51 = arith.constant 1.000000e+00 : f32
    %292 = vector.broadcast %cst_51 : f32 to vector<4x96xf32>
    %293 = arith.addf %292, %291 : vector<4x96xf32>
    %294 = arith.divf %292, %293 : vector<4x96xf32>
    %295 = vector.extract_strided_slice %294 {offsets = [0, 0], sizes = [4, 32], strides = [1, 1]} : vector<4x96xf32> to vector<4x32xf32>
    %296 = vector.extract_strided_slice %294 {offsets = [0, 32], sizes = [4, 32], strides = [1, 1]} : vector<4x96xf32> to vector<4x32xf32>
    %297 = vector.extract_strided_slice %294 {offsets = [0, 64], sizes = [4, 32], strides = [1, 1]} : vector<4x96xf32> to vector<4x32xf32>
    %298 = vector.extract_strided_slice %288 {offsets = [0, 96], sizes = [4, 32], strides = [1, 1]} : vector<4x128xf32> to vector<4x32xf32>
    %299 = math.tanh %298 : vector<4x32xf32>
    %300 = arith.mulf %296, %258 : vector<4x32xf32>
    %301 = arith.mulf %295, %299 : vector<4x32xf32>
    %302 = arith.addf %300, %301 : vector<4x32xf32>
    %303 = math.tanh %302 : vector<4x32xf32>
    %304 = arith.mulf %297, %303 : vector<4x32xf32>
    %cst_52 = arith.constant dense<0.000000e+00> : vector<4x256xf32>
    %305 = tpu.matmul %304, %36, %cst_52 {dimension_numbers = #tpu.dot_dimension_numbers<[1], [0], [0], [1], [0, 0, 1, 1], [], []>} : vector<4x32xf32>, vector<32x256xf32>, vector<4x256xf32> -> vector<4x256xf32>
    %306 = vector.extract_strided_slice %35 {offsets = [0, 6, 0], sizes = [4, 1, 128], strides = [1, 1, 1]} : vector<4x8x128xf32> to vector<4x1x128xf32>
    %307 = vector.shape_cast %306 : vector<4x1x128xf32> to vector<4x128xf32>
    %308 = vector.extract_strided_slice %305 {offsets = [0, 0], sizes = [4, 128], strides = [1, 1]} : vector<4x256xf32> to vector<4x128xf32>
    %309 = arith.addf %307, %308 : vector<4x128xf32>
    %cst_53 = arith.constant dense<0.000000e+00> : vector<4x128xf32>
    %310 = tpu.matmul %283, %37, %cst_53 {dimension_numbers = #tpu.dot_dimension_numbers<[1], [0], [0], [1], [0, 0, 1, 1], [], []>} : vector<4x32xf32>, vector<32x128xf32>, vector<4x128xf32> -> vector<4x128xf32>
    %311 = arith.addf %309, %310 : vector<4x128xf32>
    %312 = vector.extract_strided_slice %311 {offsets = [0, 0], sizes = [4, 96], strides = [1, 1]} : vector<4x128xf32> to vector<4x96xf32>
    %313 = arith.negf %312 : vector<4x96xf32>
    %314 = math.exp %313 : vector<4x96xf32>
    %cst_54 = arith.constant 1.000000e+00 : f32
    %315 = vector.broadcast %cst_54 : f32 to vector<4x96xf32>
    %316 = arith.addf %315, %314 : vector<4x96xf32>
    %317 = arith.divf %315, %316 : vector<4x96xf32>
    %318 = vector.extract_strided_slice %317 {offsets = [0, 0], sizes = [4, 32], strides = [1, 1]} : vector<4x96xf32> to vector<4x32xf32>
    %319 = vector.extract_strided_slice %317 {offsets = [0, 32], sizes = [4, 32], strides = [1, 1]} : vector<4x96xf32> to vector<4x32xf32>
    %320 = vector.extract_strided_slice %317 {offsets = [0, 64], sizes = [4, 32], strides = [1, 1]} : vector<4x96xf32> to vector<4x32xf32>
    %321 = vector.extract_strided_slice %311 {offsets = [0, 96], sizes = [4, 32], strides = [1, 1]} : vector<4x128xf32> to vector<4x32xf32>
    %322 = math.tanh %321 : vector<4x32xf32>
    %323 = arith.mulf %319, %281 : vector<4x32xf32>
    %324 = arith.mulf %318, %322 : vector<4x32xf32>
    %325 = arith.addf %323, %324 : vector<4x32xf32>
    %326 = math.tanh %325 : vector<4x32xf32>
    %327 = arith.mulf %320, %326 : vector<4x32xf32>
    %328 = vector.extract_strided_slice %305 {offsets = [0, 128], sizes = [4, 128], strides = [1, 1]} : vector<4x256xf32> to vector<4x128xf32>
    %329 = vector.broadcast %39 : vector<1x128xf32> to vector<4x128xf32>
    %330 = arith.addf %328, %329 : vector<4x128xf32>
    %cst_55 = arith.constant dense<0.000000e+00> : vector<4x128xf32>
    %331 = tpu.matmul %327, %38, %cst_55 {dimension_numbers = #tpu.dot_dimension_numbers<[1], [0], [0], [1], [0, 0, 1, 1], [], []>} : vector<4x32xf32>, vector<32x128xf32>, vector<4x128xf32> -> vector<4x128xf32>
    %332 = arith.addf %330, %331 : vector<4x128xf32>
    %333 = vector.extract_strided_slice %332 {offsets = [0, 0], sizes = [4, 96], strides = [1, 1]} : vector<4x128xf32> to vector<4x96xf32>
    %334 = arith.negf %333 : vector<4x96xf32>
    %335 = math.exp %334 : vector<4x96xf32>
    %cst_56 = arith.constant 1.000000e+00 : f32
    %336 = vector.broadcast %cst_56 : f32 to vector<4x96xf32>
    %337 = arith.addf %336, %335 : vector<4x96xf32>
    %338 = arith.divf %336, %337 : vector<4x96xf32>
    %339 = vector.extract_strided_slice %338 {offsets = [0, 0], sizes = [4, 32], strides = [1, 1]} : vector<4x96xf32> to vector<4x32xf32>
    %340 = vector.extract_strided_slice %338 {offsets = [0, 32], sizes = [4, 32], strides = [1, 1]} : vector<4x96xf32> to vector<4x32xf32>
    %341 = vector.extract_strided_slice %338 {offsets = [0, 64], sizes = [4, 32], strides = [1, 1]} : vector<4x96xf32> to vector<4x32xf32>
    %342 = vector.extract_strided_slice %332 {offsets = [0, 96], sizes = [4, 32], strides = [1, 1]} : vector<4x128xf32> to vector<4x32xf32>
    %343 = math.tanh %342 : vector<4x32xf32>
    %344 = arith.mulf %340, %302 : vector<4x32xf32>
    %345 = arith.mulf %339, %343 : vector<4x32xf32>
    %346 = arith.addf %344, %345 : vector<4x32xf32>
    %347 = math.tanh %346 : vector<4x32xf32>
    %348 = arith.mulf %341, %347 : vector<4x32xf32>
    %cst_57 = arith.constant dense<0.000000e+00> : vector<4x256xf32>
    %349 = tpu.matmul %348, %36, %cst_57 {dimension_numbers = #tpu.dot_dimension_numbers<[1], [0], [0], [1], [0, 0, 1, 1], [], []>} : vector<4x32xf32>, vector<32x256xf32>, vector<4x256xf32> -> vector<4x256xf32>
    %350 = vector.extract_strided_slice %35 {offsets = [0, 7, 0], sizes = [4, 1, 128], strides = [1, 1, 1]} : vector<4x8x128xf32> to vector<4x1x128xf32>
    %351 = vector.shape_cast %350 : vector<4x1x128xf32> to vector<4x128xf32>
    %352 = vector.extract_strided_slice %349 {offsets = [0, 0], sizes = [4, 128], strides = [1, 1]} : vector<4x256xf32> to vector<4x128xf32>
    %353 = arith.addf %351, %352 : vector<4x128xf32>
    %cst_58 = arith.constant dense<0.000000e+00> : vector<4x128xf32>
    %354 = tpu.matmul %327, %37, %cst_58 {dimension_numbers = #tpu.dot_dimension_numbers<[1], [0], [0], [1], [0, 0, 1, 1], [], []>} : vector<4x32xf32>, vector<32x128xf32>, vector<4x128xf32> -> vector<4x128xf32>
    %355 = arith.addf %353, %354 : vector<4x128xf32>
    %356 = vector.extract_strided_slice %355 {offsets = [0, 0], sizes = [4, 96], strides = [1, 1]} : vector<4x128xf32> to vector<4x96xf32>
    %357 = arith.negf %356 : vector<4x96xf32>
    %358 = math.exp %357 : vector<4x96xf32>
    %cst_59 = arith.constant 1.000000e+00 : f32
    %359 = vector.broadcast %cst_59 : f32 to vector<4x96xf32>
    %360 = arith.addf %359, %358 : vector<4x96xf32>
    %361 = arith.divf %359, %360 : vector<4x96xf32>
    %362 = vector.extract_strided_slice %361 {offsets = [0, 0], sizes = [4, 32], strides = [1, 1]} : vector<4x96xf32> to vector<4x32xf32>
    %363 = vector.extract_strided_slice %361 {offsets = [0, 32], sizes = [4, 32], strides = [1, 1]} : vector<4x96xf32> to vector<4x32xf32>
    %364 = vector.extract_strided_slice %361 {offsets = [0, 64], sizes = [4, 32], strides = [1, 1]} : vector<4x96xf32> to vector<4x32xf32>
    %365 = vector.extract_strided_slice %355 {offsets = [0, 96], sizes = [4, 32], strides = [1, 1]} : vector<4x128xf32> to vector<4x32xf32>
    %366 = math.tanh %365 : vector<4x32xf32>
    %367 = arith.mulf %363, %325 : vector<4x32xf32>
    %368 = arith.mulf %362, %366 : vector<4x32xf32>
    %369 = arith.addf %367, %368 : vector<4x32xf32>
    %370 = math.tanh %369 : vector<4x32xf32>
    %371 = arith.mulf %364, %370 : vector<4x32xf32>
    %372 = vector.extract_strided_slice %349 {offsets = [0, 128], sizes = [4, 128], strides = [1, 1]} : vector<4x256xf32> to vector<4x128xf32>
    %373 = vector.broadcast %39 : vector<1x128xf32> to vector<4x128xf32>
    %374 = arith.addf %372, %373 : vector<4x128xf32>
    %cst_60 = arith.constant dense<0.000000e+00> : vector<4x128xf32>
    %375 = tpu.matmul %371, %38, %cst_60 {dimension_numbers = #tpu.dot_dimension_numbers<[1], [0], [0], [1], [0, 0, 1, 1], [], []>} : vector<4x32xf32>, vector<32x128xf32>, vector<4x128xf32> -> vector<4x128xf32>
    %376 = arith.addf %374, %375 : vector<4x128xf32>
    %377 = vector.extract_strided_slice %376 {offsets = [0, 0], sizes = [4, 96], strides = [1, 1]} : vector<4x128xf32> to vector<4x96xf32>
    %378 = arith.negf %377 : vector<4x96xf32>
    %379 = math.exp %378 : vector<4x96xf32>
    %cst_61 = arith.constant 1.000000e+00 : f32
    %380 = vector.broadcast %cst_61 : f32 to vector<4x96xf32>
    %381 = arith.addf %380, %379 : vector<4x96xf32>
    %382 = arith.divf %380, %381 : vector<4x96xf32>
    %383 = vector.extract_strided_slice %382 {offsets = [0, 0], sizes = [4, 32], strides = [1, 1]} : vector<4x96xf32> to vector<4x32xf32>
    %384 = vector.extract_strided_slice %382 {offsets = [0, 32], sizes = [4, 32], strides = [1, 1]} : vector<4x96xf32> to vector<4x32xf32>
    %385 = vector.extract_strided_slice %382 {offsets = [0, 64], sizes = [4, 32], strides = [1, 1]} : vector<4x96xf32> to vector<4x32xf32>
    %386 = vector.extract_strided_slice %376 {offsets = [0, 96], sizes = [4, 32], strides = [1, 1]} : vector<4x128xf32> to vector<4x32xf32>
    %387 = math.tanh %386 : vector<4x32xf32>
    %388 = arith.mulf %384, %346 : vector<4x32xf32>
    %389 = arith.mulf %383, %387 : vector<4x32xf32>
    %390 = arith.addf %388, %389 : vector<4x32xf32>
    %391 = math.tanh %390 : vector<4x32xf32>
    %392 = arith.mulf %385, %391 : vector<4x32xf32>
    %393 = vector.shape_cast %63 : vector<4x32xf32> to vector<1x4x32xf32>
    %394 = vector.shape_cast %107 : vector<4x32xf32> to vector<1x4x32xf32>
    %395 = vector.shape_cast %151 : vector<4x32xf32> to vector<1x4x32xf32>
    %396 = vector.shape_cast %195 : vector<4x32xf32> to vector<1x4x32xf32>
    %397 = vector.shape_cast %239 : vector<4x32xf32> to vector<1x4x32xf32>
    %398 = vector.shape_cast %283 : vector<4x32xf32> to vector<1x4x32xf32>
    %399 = vector.shape_cast %327 : vector<4x32xf32> to vector<1x4x32xf32>
    %400 = vector.shape_cast %371 : vector<4x32xf32> to vector<1x4x32xf32>
    %401 = tpu.concatenate %393, %394, %395, %396, %397, %398, %399, %400 in 0 : vector<1x4x32xf32>, vector<1x4x32xf32>, vector<1x4x32xf32>, vector<1x4x32xf32>, vector<1x4x32xf32>, vector<1x4x32xf32>, vector<1x4x32xf32>, vector<1x4x32xf32> -> vector<8x4x32xf32>
    %c0_62 = arith.constant 0 : index
    %c0_63 = arith.constant 0 : index
    %c0_64 = arith.constant 0 : index
    %402 = vector.load %arg7[%c0_62, %c0_63, %c0_64] : memref<8x4x32xf32, #tpu.memory_space<vmem>>, vector<8x4x32xf32>
    tpu.vector_store %arg7[%c0_62, %c0_63, %c0_64], %401 {strides = array<i32>} : memref<8x4x32xf32, #tpu.memory_space<vmem>>, vector<8x4x32xf32>,
    %403 = vector.shape_cast %84 : vector<4x32xf32> to vector<1x4x32xf32>
    %404 = vector.shape_cast %128 : vector<4x32xf32> to vector<1x4x32xf32>
    %405 = vector.shape_cast %172 : vector<4x32xf32> to vector<1x4x32xf32>
    %406 = vector.shape_cast %216 : vector<4x32xf32> to vector<1x4x32xf32>
    %407 = vector.shape_cast %260 : vector<4x32xf32> to vector<1x4x32xf32>
    %408 = vector.shape_cast %304 : vector<4x32xf32> to vector<1x4x32xf32>
    %409 = vector.shape_cast %348 : vector<4x32xf32> to vector<1x4x32xf32>
    %410 = vector.shape_cast %392 : vector<4x32xf32> to vector<1x4x32xf32>
    %411 = tpu.concatenate %403, %404, %405, %406, %407, %408, %409, %410 in 0 : vector<1x4x32xf32>, vector<1x4x32xf32>, vector<1x4x32xf32>, vector<1x4x32xf32>, vector<1x4x32xf32>, vector<1x4x32xf32>, vector<1x4x32xf32>, vector<1x4x32xf32> -> vector<8x4x32xf32>
    %c0_65 = arith.constant 0 : index
    %c0_66 = arith.constant 0 : index
    %c0_67 = arith.constant 0 : index
    %412 = vector.load %arg8[%c0_65, %c0_66, %c0_67] : memref<8x4x32xf32, #tpu.memory_space<vmem>>, vector<8x4x32xf32>
    tpu.vector_store %arg8[%c0_65, %c0_66, %c0_67], %411 {strides = array<i32>} : memref<8x4x32xf32, #tpu.memory_space<vmem>>, vector<8x4x32xf32>,
    return
  }
}

</mosaic_0001>

<bundles_post_ra>
// kernel: grid_lstm_forward.1
= control target key start
LH: loop header
LB: loop body
LE: loop exit
PB: predicated region body
PF: predicated region fallthrough
CT: control target
= control target key end

     0   :  { %14 = vsyncpa [#allocation3], 0  ;;  %s6886_s0 = inlined_call_operand.vmem [shape: f32[32,16], index: 0, kind: input, shape index: {}]   ;;  %s6887_s1 = inlined_call_operand.hbm [shape: f32[16,288], index: 1, kind: input, shape index: {}]   ;;  %s6888_s2 = inlined_call_operand.vmem [shape: f32[1,128], index: 2, kind: input, shape index: {}]   ;;  %s6889_s3 = inlined_call_operand.vmem [shape: f32[32,256], index: 3, kind: input, shape index: {}]   ;;  %s6890_s4 = inlined_call_operand.hbm [shape: f32[32,128], index: 4, kind: input, shape index: {}]   ;;  %s6891_s5 = inlined_call_operand.hbm [shape: f32[32,128], index: 5, kind: input, shape index: {}]   ;;  %s6892_s6 = inlined_call_operand.vmem [shape: f32[1,128], index: 6, kind: input, shape index: {}]   ;;  %s6893_s7 = inlined_call_operand.hbm [shape: f32[8,4,32], index: 7, kind: output, shape index: {0}]   ;;  %s6894_s8 = inlined_call_operand.hbm [shape: f32[8,4,32], index: 8, kind: output, shape index: {1}]  }
   0x1   :  { %15 = vsyncpa [#allocation6], 0 }
   0x2   :  { %16 = vsyncpa [#allocation4], 0 }
   0x3   :  { %17 = vsyncpa [#allocation10], 0  ;;  %s5972_s27 = smov [#allocation5]   ;;  %s5854_s9 = scalar_lea.hbm %s6890_s4, 512 }
   0x4   :  { %s41_s28 = sshll.u32 %s5972_s27, 4  ;;  %p5855_p0 = scmp.ne.s32.totalorder %s6890_s4, %s5854_s9  ;;  %s42_s28 = int_to_ptr.vmem [resolvable:$true] %s41_s28 }
   0x5   :  { %p5858_p1 = scmp.lt.u32.totalorder %s5854_s9, %s6890_s4 }
   0x7   :  { %p5860_p2 = pnand %p5858_p1, %p5855_p0 }
   0x9   :  { %5863 = shalt.err (!%p5860_p2)
}
   0xa   :  { %s5864_s14 = scalar_lea.vmem %s42_s28, 512  ;;  %p5869_p4 = scmp.lt.s32.totalorder %s42_s28, %s42_s28 }
   0xb   :  { %p5865_p3 = scmp.ne.s32.totalorder %s42_s28, %s5864_s14  ;;  %p5870_p5 = scmp.lt.s32.totalorder %s5864_s14, %s5864_s14 }
   0xd   :  { %p5871_p6 = por %p5870_p5, %p5869_p4 }
   0xf   :  { %p5872_p7 = pnand %p5871_p6, %p5865_p3 }
  0x11   :  { %5875 = shalt.err (!%p5872_p7)
}
  0x12   :  { %s5973_s15 = smov 128   ;;  %s5974_s16 = smov 8  }
  0x13   :  { %47 = dma.hbm_to_vmem [thread:$0]  %s6890_s4, 512, %s42_s28, [#allocation6], %s5973_s15, %s5973_s15, %s5974_s16  }
  0x14   :  { %s5975_s19 = smov [#allocation2]   ;;  %s5876_s23 = scalar_lea.hbm %s6887_s1, 768 }
  0x15   :  { %s25_s20 = sshll.u32 %s5975_s19, 4  ;;  %p5877_p8 = scmp.ne.s32.totalorder %s6887_s1, %s5876_s23  ;;  %s26_s20 = int_to_ptr.vmem [resolvable:$true] %s25_s20 }
  0x16   :  { %p5880_p9 = scmp.lt.u32.totalorder %s5876_s23, %s6887_s1 }
  0x18   :  { %p5882_p10 = pnand %p5880_p9, %p5877_p8 }
  0x1a   :  { %5885 = shalt.err (!%p5882_p10)
}
  0x1b   :  { %s5886_s29 = scalar_lea.vmem %s26_s20, 768  ;;  %p5891_p12 = scmp.lt.s32.totalorder %s26_s20, %s26_s20 }
  0x1c   :  { %p5887_p11 = scmp.ne.s32.totalorder %s26_s20, %s5886_s29  ;;  %p5892_p13 = scmp.lt.s32.totalorder %s5886_s29, %s5886_s29 }
  0x1e   :  { %p5893_p0 = por %p5892_p13, %p5891_p12 }
  0x20   :  { %p5894_p1 = pnand %p5893_p0, %p5887_p11 }
  0x22   :  { %5897 = shalt.err (!%p5894_p1)
}
  0x23   :  { %s5976_s4 = smov 384   ;;  %s5977_s28 = smov 24  }
  0x24   :  { %31 = dma.hbm_to_vmem [thread:$0]  %s6887_s1, 768, %s26_s20, [#allocation3], %s5976_s4, %s5976_s4, %s5977_s28  }
  0x25   :  { %s5978_s10 = smov [#allocation7]   ;;  %s5898_s14 = scalar_lea.hbm %s6891_s5, 512 }
  0x26   :  { %s53_s11 = sshll.u32 %s5978_s10, 4  ;;  %p5899_p2 = scmp.ne.s32.totalorder %s6891_s5, %s5898_s14  ;;  %s54_s11 = int_to_ptr.vmem [resolvable:$true] %s53_s11 }
  0x27   :  { %p5902_p3 = scmp.lt.u32.totalorder %s5898_s14, %s6891_s5 }
  0x29   :  { %p5904_p4 = pnand %p5902_p3, %p5899_p2 }
  0x2b   :  { %5907 = shalt.err (!%p5904_p4)
}
  0x2c   :  { %s5908_s22 = scalar_lea.vmem %s54_s11, 512  ;;  %p5913_p6 = scmp.lt.s32.totalorder %s54_s11, %s54_s11 }
  0x2d   :  { %p5909_p5 = scmp.ne.s32.totalorder %s54_s11, %s5908_s22  ;;  %p5914_p7 = scmp.lt.s32.totalorder %s5908_s22, %s5908_s22 }
  0x2f   :  { %p5915_p8 = por %p5914_p7, %p5913_p6 }
  0x31   :  { %p5916_p9 = pnand %p5915_p8, %p5909_p5 }
  0x33   :  { %5919 = shalt.err (!%p5916_p9)
}
  0x34   :  { %59 = dma.hbm_to_vmem [thread:$0]  %s6891_s5, 512, %s54_s11, [#allocation6], %s5973_s15, %s5973_s15, %s5974_s16  }
  0x35   :  { %5964 = dma.done.wait [#allocation3], 768  }
  0x36   :  { %5965 = vsyncadd [#allocation3], 4294966528 }
  0x37   :  { %5966 = dma.done.wait [#allocation6], 1024  }
  0x38   :  { %5967 = vsyncadd [#allocation6], 4294966272  ;;  %v5979_v0 = vmov 0.0   ;;  %vm81_vm0 = vcmask 130048   ;;  %v77_v1 = vld [vmem:[#allocation2 + $0x10] sm:$0xff]  ;;  %v80_v2 = vld [vmem:[#allocation2 + $0x28] sm:$0xff] }
  0x39   :  { %158 = vmatprep.mubr.f32.mxu0 %v5979_v0  ;;  %v71_v3 = vld [vmem:[%s6886_s0] sm:$0xff]  ;;  %v5321_v4 = vpack.c.bf16 %v80_v2, %v77_v1  ;;  %v76_v5 = vld [vmem:[#allocation2 + $0x8] sm:$0xff]  ;;  %v78_v9 = vld [vmem:[#allocation2 + $0x18] sm:$0xff]  ;;  %vm5980_vm1 = vmmov 0   ;;  %vm560_vm2 = vcmask 64512   ;;  %vm1834_vm3 = vcmask 1041409  }
  0x3a   :  { %5055 = vmatprep.mubr.msk.f32.mxu1 %vm81_vm0, %v71_v3  ;;  %v79_v6 = vld [vmem:[#allocation2 + $0x20] sm:$0xff]  ;;  %v72_v10 = vld [vmem:[%s6886_s0 + $0x8] sm:$0xff]  ;;  %v73_v12 = vld [vmem:[%s6886_s0 + $0x10] sm:$0xff]  ;;  %vm1837_vm4 = vcmask 1042434   ;;  %vm1840_vm5 = vcmask 1043459   ;;  %s5984_s23 = smov 64  }
  0x3b   :  { %v75_v7 = vld [vmem:[#allocation2] sm:$0xff]  ;;  %5322 = vmatprep.subr.bf16.mxu1 %v5321_v4  ;;  %v5317_v8 = vpack.c.bf16 %v79_v6, %v76_v5  ;;  %v74_v13 = vld [vmem:[%s6886_s0 + $0x18] sm:$0xff]  ;;  %s5981_s0 = smov 112   ;;  %vm4754_vm6 = vcmask 257024   ;;  %vm1557_vm7 = vcmask 261120  }
  0x3c   :  { %5324 = vmatpush3.bf16.msra.mxu1 %v5321_v4  ;;  %v5319_v11 = vpack.c.bf16 %v78_v9, %v75_v7 }
  0x3d   :  { %5318 = vmatprep.subr.bf16.mxu0 %v5317_v8  ;;  %5061 = vmatprep.subr.mxu1 %v5979_v0 }
  0x3e   :  { %5320 = vmatpush1.bf16.msra.mxu0 %v5319_v11 }
  0x3f   :  { %5056 = vmatmul.mubr.msk.f32.vlgmr.msra.gmra.mrb[0].mxu1 %vm81_vm0, %v72_v10  ;;  %5071 = vmatprep.subr.mxu0 %v5979_v0 }
  0x40   :  { %5058 = vmatprep.mubr.msk.f32.mxu1 %vm81_vm0, %v73_v12 }
  0x41   :  { %4816 = vmatmul.mubr.msk.f32.vlgmr.msra.gmra.mrb[0].mxu0 %vm81_vm0, %v71_v3 }
  0x42   :  { %164 = vmatprep.mubr.f32.mxu0 %v5979_v0 }
  0x43   :  { %5059 = vmatmul.mubr.msk.f32.gmra.mrb[2].mxu1 %vm81_vm0, %v74_v13 }
  0x44   :  { %5063 = vmatprep.mubr.msk.f32.mxu1 %vm5980_vm1, %v5979_v0 }
  0x45   :  { %4817 = vmatmul.mubr.msk.f32.gmra.mrb[2].mxu0 %vm81_vm0, %v72_v10  ;;  %5062 = vmatpush3.xpose.msk.msra.mxu1 %vm81_vm0, %v71_v3 }
  0x46   :  { %170 = vmatprep.mubr.f32.mxu0 %v5979_v0  ;;  %5066 = vmatprep.subr.mxu1 %v5979_v0 }
  0x47   :  { %5072 = vmatpush3.xpose.msk.msra.mxu0 %vm81_vm0, %v73_v12 }
  0x48   :  { %5081 = vmatprep.subr.mxu0 %v5979_v0 }
  0x49   :  { %4818 = vmatmul.mubr.msk.f32.gmra.mrb[4].mxu0 %vm81_vm0, %v73_v12 }
  0x4a   :  { %176 = vmatprep.mubr.f32.mxu0 %v5979_v0 }
  0x4d   :  { %4819 = vmatmul.mubr.msk.f32.gmra.mrb[6].mxu0 %vm81_vm0, %v74_v13 }
  0x4e   :  { %5073 = vmatprep.mubr.msk.f32.mxu0 %vm5980_vm1, %v5979_v0 }
 0x112   :  { %v5057_v14 = vpop.f32.mrb[0].mxu1 }
 0x113   :  { %v249_v15 = vpop.f32.mrb[1].mxu1 }
 0x114   :  { %605 = vrot.lane.b32.xlu0 %v249_v15, %s5981_s0  ;;  %5064 = vmatmul.mubr.msk.f32.vlgmr.msra.gmra.mrb[4].mxu1 %vm81_vm0, %v249_v15  ;;  %v6110_v16 = vpop.f32.mrb[0].mxu0 }
 0x115   :  { %5067 = vmatpush3.xpose.msk.msra.mxu1 %vm81_vm0, %v72_v10  ;;  %5068 = vmatprep.mubr.msk.f32.mxu1 %vm5980_vm1, %v5979_v0  ;;  %v162_v17 = vpop.f32.mrb[1].mxu0 }
 0x116   :  { %v5060_v18 = vpop.f32.mrb[2].mxu1  ;;  %5076 = vmatprep.subr.mxu1 %v5979_v0 }
 0x117   :  { %v259_v19 = vpop.f32.mrb[3].mxu1 }
 0x118   :  { %679 = vrot.lane.b32.xlu0 %v5057_v14, %s5981_s0  ;;  %5069 = vmatmul.mubr.msk.f32.vlgmr.msra.gmra.mrb[6].mxu1 %vm81_vm0, %v5057_v14  ;;  %v6117_v20 = vpop.f32.mrb[2].mxu0 }
 0x119   :  { %753 = vrot.lane.b32.xlu1 %v259_v19, %s5981_s0  ;;  %5074 = vmatmul.mubr.msk.f32.vlgmr.msra.gmra.mrb[8].mxu0 %vm81_vm0, %v259_v19  ;;  %v168_v21 = vpop.f32.mrb[3].mxu0 }
 0x11a   :  { %5077 = vmatpush3.xpose.msk.msra.mxu1 %vm81_vm0, %v74_v13  ;;  %5078 = vmatprep.mubr.msk.f32.mxu1 %vm5980_vm1, %v5979_v0 }
 0x11b   :  { %5082 = vmatpush3.xpose.msk.msra.mxu0 %vm81_vm0, %v71_v3  ;;  %5083 = vmatprep.mubr.msk.f32.mxu0 %vm5980_vm1, %v5979_v0 }
 0x11c   :  { %5086 = vmatprep.subr.mxu1 %v5979_v0  ;;  %5091 = vmatprep.subr.mxu0 %v5979_v0  ;;  %v6128_v22 = vpop.f32.mrb[4].mxu0 }
 0x11d   :  { %5079 = vmatmul.mubr.msk.f32.vlgmr.msra.gmra.mrb[8].mxu1 %vm81_vm0, %v5060_v18  ;;  %827 = vrot.lane.b32.xlu1 %v5060_v18, %s5981_s0  ;;  %v6135_v23 = vpop.f32.mrb[5].mxu0 }
 0x11e   :  { %5087 = vmatpush3.xpose.msk.msra.mxu1 %vm81_vm0, %v72_v10  ;;  %5088 = vmatprep.mubr.msk.f32.mxu1 %vm5980_vm1, %v5979_v0 }
 0x11f   :  { %5096 = vmatprep.subr.mxu1 %v5979_v0 }
 0x120   :  { %v6137_v24 = vpop.f32.mrb[6].mxu0 }
 0x121   :  { %v6139_v25 = vpop.f32.mrb[7].mxu0 }
 0x186   :  { %v606_v26 = vpop.permute.xlu0 %605 }
 0x187   :  { %5084 = vmatmul.mubr.msk.f32.vlgmr.msra.gmra.mrb[10].mxu0 %vm81_vm0, %v606_v26 }
 0x188   :  { %5092 = vmatpush3.xpose.msk.msra.mxu0 %vm81_vm0, %v73_v12  ;;  %5093 = vmatprep.mubr.msk.f32.mxu0 %vm5980_vm1, %v5979_v0 }
 0x189   :  { %5101 = vmatprep.subr.mxu0 %v5979_v0 }
 0x18a   :  { %v680_v27 = vpop.permute.xlu0 %679 }
 0x18b   :  { %v754_v28 = vpop.permute.xlu1 %753  ;;  %5089 = vmatmul.mubr.msk.f32.vlgmr.msra.gmra.mrb[10].mxu1 %vm81_vm0, %v680_v27 }
 0x18c   :  { %5094 = vmatmul.mubr.msk.f32.vlgmr.msra.gmra.mrb[12].mxu0 %vm81_vm0, %v754_v28  ;;  %5097 = vmatpush3.xpose.msk.msra.mxu1 %vm81_vm0, %v74_v13 }
 0x18d   :  { %5098 = vmatprep.mubr.msk.f32.mxu1 %vm5980_vm1, %v5979_v0  ;;  %5102 = vmatpush3.msra.mxu0 %v162_v17 }
 0x18e   :  { %5106 = vmatprep.subr.mxu1 %v5979_v0  ;;  %5103 = vmatprep.mubr.msk.f32.mxu0 %vm5980_vm1, %v5979_v0 }
 0x18f   :  { %v828_v29 = vpop.permute.xlu1 %827  ;;  %5111 = vmatprep.subr.mxu0 %v5979_v0 }
 0x190   :  { %5099 = vmatmul.mubr.msk.f32.vlgmr.msra.gmra.mrb[12].mxu1 %vm81_vm0, %v828_v29 }
 0x191   :  { %5107 = vmatpush3.msra.mxu1 %v168_v21  ;;  %5108 = vmatprep.mubr.msk.f32.mxu1 %vm5980_vm1, %v5979_v0 }
 0x192   :  { %5116 = vmatprep.subr.mxu1 %v5979_v0 }
 0x1e7   :  { %v337_v30 = vpop.f32.mrb[4].mxu1 }
 0x1e8   :  { %v5065_v31 = vpop.f32.mrb[5].mxu1  ;;  %v561_v48 = vsel %vm560_vm2, %v337_v30, -inf }
 0x1eb   :  { %v410_v32 = vpop.f32.mrb[6].mxu1 }
 0x1ec   :  { %v483_v33 = vpop.f32.mrb[8].mxu0  ;;  %v5070_v34 = vpop.f32.mrb[7].mxu1  ;;  %v564_v52 = vsel %vm560_vm2, %v410_v32, -inf }
 0x1ed   :  { %v5075_v35 = vpop.f32.mrb[9].mxu0  ;;  %v567_v51 = vsel %vm560_vm2, %v483_v33, -inf }
 0x1f0   :  { %v556_v36 = vpop.f32.mrb[8].mxu1 }
 0x1f1   :  { %v5080_v37 = vpop.f32.mrb[9].mxu1  ;;  %v570_v53 = vsel %vm560_vm2, %v556_v36, -inf }
 0x25a   :  { %v675_v38 = vpop.f32.mrb[10].mxu0 }
 0x25b   :  { %v5085_v39 = vpop.f32.mrb[11].mxu0  ;;  %v901_v40 = vsel %vm560_vm2, %v675_v38, -inf }
 0x25c   :  { %902 = vmax.xlane.f32.xlu0 %v901_v40 }
 0x25e   :  { %v749_v41 = vpop.f32.mrb[10].mxu1 }
 0x25f   :  { %v823_v42 = vpop.f32.mrb[12].mxu0  ;;  %v5090_v43 = vpop.f32.mrb[11].mxu1  ;;  %v904_v44 = vsel %vm560_vm2, %v749_v41, -inf }
 0x260   :  { %v5095_v45 = vpop.f32.mrb[13].mxu0  ;;  %905 = vmax.xlane.f32.xlu1 %v904_v44  ;;  %v907_v46 = vsel %vm560_vm2, %v823_v42, -inf }
 0x261   :  { %908 = vmax.xlane.f32.xlu0 %v907_v46 }
 0x263   :  { %v897_v47 = vpop.f32.mrb[12].mxu1 }
 0x264   :  { %v5100_v49 = vpop.f32.mrb[13].mxu1  ;;  %562 = vmax.xlane.f32.xlu1 %v561_v48  ;;  %v910_v50 = vsel %vm560_vm2, %v897_v47, -inf }
 0x265   :  { %911 = vmax.xlane.f32.xlu0 %v910_v50 }
 0x268   :  { %568 = vmax.xlane.f32.xlu1 %v567_v51 }
 0x269   :  { %565 = vmax.xlane.f32.xlu0 %v564_v52  ;;  %v1543_v52 = vld [vmem:[%s6889_s3 + $0x18] sm:$0xff] }
 0x26d   :  { %571 = vmax.xlane.f32.xlu0 %v570_v53 }
 0x2e9   :  { %v903_v54 = vpop.xlane.xlu0 %902 }
 0x2ea   :  { %v913_v55 = vsub.f32 %v675_v38, %v903_v54  ;;  %v1542_v54 = vld [vmem:[%s6889_s3 + $0x10] sm:$0xff] }
 0x2ec   :  { %v917_v56 = vmul.f32 1.442695, %v913_v55 }
 0x2ed   :  { %v906_v57 = vpop.xlane.xlu1 %905 }
 0x2ee   :  { %5501 = vpow2.f32 %v917_v56  ;;  %v914_v58 = vsub.f32 %v749_v41, %v906_v57  ;;  %v909_v59 = vpop.xlane.xlu0 %908  ;;  %v1545_v57 = vld [vmem:[%s6889_s3 + $0x28] sm:$0xff] }
 0x2ef   :  { %v915_v60 = vsub.f32 %v823_v42, %v909_v59 }
 0x2f0   :  { %v919_v61 = vmul.f32 1.442695, %v914_v58  ;;  %v1547_v58 = vld [vmem:[%s6889_s3 + $0x38] sm:$0xff] }
 0x2f1   :  { %v921_v62 = vmul.f32 1.442695, %v915_v60  ;;  %v563_v63 = vpop.xlane.xlu1 %562 }
 0x2f2   :  { %5503 = vpow2.f32 %v919_v61  ;;  %v573_v1 = vsub.f32 %v337_v30, %v563_v63  ;;  %v912_v2 = vpop.xlane.xlu0 %911  ;;  %v1544_v63 = vld [vmem:[%s6889_s3 + $0x20] sm:$0xff] }
 0x2f3   :  { %5505 = vpow2.f32 %v921_v62  ;;  %v916_v3 = vsub.f32 %v897_v47, %v912_v2  ;;  %v1548_v2 = vld [vmem:[#allocation5] sm:$0xff] }
 0x2f4   :  { %v577_v4 = vmul.f32 1.442695, %v573_v1  ;;  %v1546_v1 = vld [vmem:[%s6889_s3 + $0x30] sm:$0xff] }
 0x2f5   :  { %v923_v5 = vmul.f32 1.442695, %v916_v3  ;;  %v569_v6 = vpop.xlane.xlu1 %568  ;;  %v1549_v3 = vld [vmem:[#allocation5 + $0x8] sm:$0xff] }
 0x2f6   :  { %5507 = vpow2.f32 %v577_v4  ;;  %v575_v7 = vsub.f32 %v483_v33, %v569_v6  ;;  %v566_v8 = vpop.xlane.xlu0 %565 }
 0x2f7   :  { %5509 = vpow2.f32 %v923_v5  ;;  %v574_v9 = vsub.f32 %v410_v32, %v566_v8  ;;  %v6240_v5 = vpack.c.bf16 %v1546_v1, %v1544_v63  ;;  %v5982_v8 = vmov 0.0|0.0  }
 0x2f8   :  { %v5502_v10 = vpop.eup %5501  ;;  %v581_v11 = vmul.f32 1.442695, %v575_v7  ;;  %v6246_v7 = vpack.c.bf16 %v1549_v3, %v1548_v2 }
 0x2f9   :  { %v579_v12 = vmul.f32 1.442695, %v574_v9  ;;  %v925_v13 = vsel %vm560_vm2, %v5502_v10, 0.0  ;;  %v1550_v9 = vld [vmem:[#allocation5 + $0x10] sm:$0xff] }
 0x2fa   :  { %5511 = vpow2.f32 %v581_v11  ;;  %v572_v14 = vpop.xlane.xlu0 %571  ;;  %926 = vadd.xlane.f32.xlu1 %v925_v13 }
 0x2fb   :  { %5513 = vpow2.f32 %v579_v12  ;;  %v576_v15 = vsub.f32 %v556_v36, %v572_v14 }
 0x2fc   :  { %v5504_v17 = vpop.eup %5503 }
 0x2fd   :  { %v5506_v18 = vpop.eup %5505  ;;  %v583_v19 = vmul.f32 1.442695, %v576_v15  ;;  %v928_v21 = vsel %vm560_vm2, %v5504_v17, 0.0 }
 0x2fe   :  { %929 = vadd.xlane.f32.xlu0 %v928_v21  ;;  %v931_v26 = vsel %vm560_vm2, %v5506_v18, 0.0 }
 0x2ff   :  { %5515 = vpow2.f32 %v583_v19  ;;  %932 = vadd.xlane.f32.xlu1 %v931_v26 }
 0x300   :  { %v5508_v27 = vpop.eup %5507 }
 0x301   :  { %v5510_v28 = vpop.eup %5509  ;;  %v585_v29 = vsel %vm560_vm2, %v5508_v27, 0.0 }
 0x302   :  { %v934_v30 = vsel %vm560_vm2, %v5510_v28, 0.0 }
 0x303   :  { %586 = vadd.xlane.f32.xlu1 %v585_v29  ;;  %935 = vadd.xlane.f32.xlu0 %v934_v30 }
 0x304   :  { %v5512_v31 = vpop.eup %5511 }
 0x305   :  { %v6172_v32 = vpop.eup %5513  ;;  %v591_v33 = vsel %vm560_vm2, %v5512_v31, 0.0 }
 0x306   :  { %v588_v34 = vsel %vm560_vm2, %v6172_v32, 0.0 }
 0x307   :  { %592 = vadd.xlane.f32.xlu1 %v591_v33  ;;  %589 = vadd.xlane.f32.xlu0 %v588_v34 }
 0x309   :  { %v6177_v35 = vpop.eup %5515 }
 0x30a   :  { %v594_v36 = vsel %vm560_vm2, %v6177_v35, 0.0 }
 0x30b   :  { %595 = vadd.xlane.f32.xlu0 %v594_v36 }
 0x387   :  { %v927_v37 = vpop.xlane.xlu1 %926 }
 0x388   :  { %5517 = vrcp.f32 %v927_v37  ;;  %v4848_v37 = vld [vmem:[%s6888_s2] ss:$0 sm:$0xff]  ;;  %s5983_s2 = smov 32  }
 0x38b   :  { %v930_v38 = vpop.xlane.xlu0 %929 }
 0x38c   :  { %v933_v39 = vpop.xlane.xlu1 %932  ;;  %5519 = vrcp.f32 %v930_v38 }
 0x38d   :  { %5521 = vrcp.f32 %v933_v39 }
 0x390   :  { %v587_v40 = vpop.xlane.xlu1 %586  ;;  %v936_v41 = vpop.xlane.xlu0 %935 }
 0x391   :  { %5523 = vrcp.f32 %v587_v40 }
 0x392   :  { %v5518_v42 = vpop.eup %5517  ;;  %5525 = vrcp.f32 %v936_v41 }
 0x393   :  { %v938_v43 = vmul.f32 %v5518_v42, %v5502_v10  ;;  %v1551_v10 = vld [vmem:[#allocation5 + $0x18] sm:$0xff] }
 0x394   :  { %v593_v44 = vpop.xlane.xlu1 %592  ;;  %v590_v45 = vpop.xlane.xlu0 %589 }
 0x395   :  { %5527 = vrcp.f32 %v593_v44  ;;  %5104 = vmatmul.mubr.msk.f32.vlgmr.msra.gmra.mrb[14].mxu0 %vm560_vm2, %v938_v43 }
 0x396   :  { %v5520_v46 = vpop.eup %5519  ;;  %5529 = vrcp.f32 %v590_v45  ;;  %5112 = vmatpush3.msra.mxu0 %v6135_v23  ;;  %5113 = vmatprep.mubr.msk.f32.mxu0 %vm5980_vm1, %v5979_v0  ;;  %v1541_v23 = vld [vmem:[%s6889_s3 + $0x8] sm:$0xff] }
 0x397   :  { %v5522_v47 = vpop.eup %5521  ;;  %5121 = vmatprep.subr.mxu0 %v5979_v0  ;;  %v940_v48 = vmul.f32 %v5520_v46, %v5504_v17  ;;  %v6209_v56 = vpack.c.bf16 %v1543_v52, %v1541_v23 }
 0x398   :  { %v596_v49 = vpop.xlane.xlu0 %595  ;;  %v942_v50 = vmul.f32 %v5522_v47, %v5506_v18 }
 0x399   :  { %5531 = vrcp.f32 %v596_v49  ;;  %5109 = vmatmul.mubr.msk.f32.vlgmr.msra.gmra.mrb[14].mxu1 %vm560_vm2, %v940_v48 }
 0x39a   :  { %5114 = vmatmul.mubr.msk.f32.vlgmr.msra.gmra.mrb[16].mxu0 %vm560_vm2, %v942_v50  ;;  %5117 = vmatpush3.msra.mxu1 %v6139_v25 }
 0x39b   :  { %v5524_v51 = vpop.eup %5523  ;;  %5122 = vmatpush3.msra.mxu0 %v6110_v16  ;;  %5118 = vmatprep.mubr.msk.f32.mxu1 %vm5980_vm1, %v5979_v0  ;;  %v1540_v16 = vld [vmem:[%s6889_s3] sm:$0xff] }
 0x39c   :  { %v5526_v53 = vpop.eup %5525  ;;  %5123 = vmatprep.mubr.msk.f32.mxu0 %vm5980_vm1, %v5979_v0  ;;  %5126 = vmatprep.subr.mxu1 %v5979_v0  ;;  %v598_v25 = vmul.f32 %v5524_v51, %v5508_v27  ;;  %v6219_v60 = vpack.c.bf16 %v1542_v54, %v1540_v16 }
 0x39d   :  { %5131 = vmatprep.subr.mxu0 %v5979_v0  ;;  %v944_v55 = vmul.f32 %v5526_v53, %v5510_v28 }
 0x39e   :  { %5124 = vmatmul.mubr.msk.f32.vlgmr.msra.gmra.mrb[18].mxu0 %vm560_vm2, %v598_v25 }
 0x39f   :  { %v5528_v59 = vpop.eup %5527  ;;  %5119 = vmatmul.mubr.msk.f32.vlgmr.msra.gmra.mrb[16].mxu1 %vm560_vm2, %v944_v55  ;;  %5132 = vmatpush3.msra.mxu0 %v6128_v22 }
 0x3a0   :  { %v5530_v61 = vpop.eup %5529  ;;  %5127 = vmatpush3.msra.mxu1 %v6117_v20  ;;  %5128 = vmatprep.mubr.msk.f32.mxu1 %vm5980_vm1, %v5979_v0  ;;  %v602_v62 = vmul.f32 %v5528_v59, %v5512_v31  ;;  %v6234_v20 = vpack.c.bf16 %v1547_v58, %v1545_v57 }
 0x3a1   :  { %5133 = vmatprep.mubr.msk.f32.mxu0 %vm5980_vm1, %v5979_v0  ;;  %5136 = vmatprep.subr.mxu1 %v5979_v0  ;;  %v600_v22 = vmul.f32 %v5530_v61, %v6172_v32 }
 0x3a2   :  { %5326 = vmatprep.subr.bf16.mxu0 %v6209_v56  ;;  %5134 = vmatmul.mubr.msk.f32.vlgmr.msra.gmra.mrb[20].mxu0 %vm560_vm2, %v602_v62 }
 0x3a3   :  { %v5532_v4 = vpop.eup %5531  ;;  %5129 = vmatmul.mubr.msk.f32.vlgmr.msra.gmra.mrb[18].mxu1 %vm560_vm2, %v600_v22  ;;  %5328 = vmatpush1.bf16.msra.mxu0 %v6219_v60 }
 0x3a4   :  { %5137 = vmatpush3.msra.mxu1 %v6137_v24  ;;  %5138 = vmatprep.mubr.msk.f32.mxu1 %vm5980_vm1, %v5979_v0  ;;  %v604_v6 = vmul.f32 %v5532_v4, %v6177_v35  ;;  %v6254_v24 = vpack.c.bf16 %v1551_v10, %v1550_v9 }
 0x3a5   :  { %5330 = vmatprep.subr.bf16.mxu0 %v6234_v20  ;;  %5333 = vmatprep.subr.bf16.mxu1 %v5982_v8 }
 0x3a6   :  { %1625 = vmatprep.mubr.f32.mxu0 %v5979_v0 }
 0x3a7   :  { %5139 = vmatmul.mubr.msk.f32.vlgmr.msra.gmra.mrb[20].mxu1 %vm560_vm2, %v604_v6  ;;  %5332 = vmatpush1.bf16.msra.mxu0 %v6240_v5 }
 0x3a8   :  { %5335 = vmatpush3.bf16.msra.mxu1 %v6246_v7  ;;  %5149 = vmatprep.mubr.msk.f32.mxu1 %vm5980_vm1, %v5979_v0 }
 0x3a9   :  { %5336 = vmatprep.subr.bf16.mxu1 %v5982_v8  ;;  %5339 = vmatprep.subr.bf16.mxu0 %v5982_v8 }
 0x3aa   :  { %1626 = vmatmul.mubr.f32.vlgmr.msra.gmra.mrb[22].mxu0 %v5979_v0 }
 0x3ab   :  { %5160 = vmatprep.mubr.msk.f32.mxu0 %vm5980_vm1, %v5979_v0 }
 0x3ac   :  { %5338 = vmatpush3.bf16.msra.mxu1 %v6254_v24 }
 0x3ad   :  { %5346 = vmatprep.subr.bf16.mxu1 %v6209_v56 }
 0x3af   :  { %5150 = vmatmul.mubr.f32.vlgmr.msra.gmra.mrb[22].mxu1 %v5979_v0 }
 0x3b0   :  { %5348 = vmatpush1.bf16.msra.mxu1 %v6219_v60  ;;  %2010 = vmatprep.mubr.f32.mxu1 %v5979_v0 }
 0x3b1   :  { %5350 = vmatprep.subr.bf16.mxu1 %v6234_v20 }
 0x3b4   :  { %5352 = vmatpush1.bf16.msra.mxu1 %v6240_v5 }
 0x3b5   :  { %5359 = vmatprep.subr.bf16.mxu1 %v5982_v8 }
 0x468   :  { %v1014_v11 = vpop.f32.mrb[14].mxu0 }
 0x469   :  { %v5105_v12 = vpop.f32.mrb[15].mxu0 }
 0x46c   :  { %v1087_v13 = vpop.f32.mrb[14].mxu1 }
 0x46d   :  { %v1160_v14 = vpop.f32.mrb[16].mxu0  ;;  %v5110_v15 = vpop.f32.mrb[15].mxu1 }
 0x46e   :  { %v5115_v17 = vpop.f32.mrb[17].mxu0 }
 0x471   :  { %v1306_v18 = vpop.f32.mrb[18].mxu0 }
 0x472   :  { %v1233_v19 = vpop.f32.mrb[16].mxu1  ;;  %v1307_v21 = vadd.f32 %v1306_v18, %v1014_v11  ;;  %v5125_v26 = vpop.f32.mrb[19].mxu0 }
 0x473   :  { %v5120_v27 = vpop.f32.mrb[17].mxu1 }
 0x474   :  { %v6278_v44 = vadd.f32 %v4848_v37, %v1307_v21 }
 0x475   :  { %v1452_v28 = vpop.f32.mrb[20].mxu0 }
 0x476   :  { %v1379_v29 = vpop.f32.mrb[18].mxu1  ;;  %v1453_v30 = vadd.f32 %v1452_v28, %v1160_v14  ;;  %v5135_v31 = vpop.f32.mrb[21].mxu0 }
 0x477   :  { %v1380_v32 = vadd.f32 %v1379_v29, %v1087_v13  ;;  %v5130_v33 = vpop.f32.mrb[19].mxu1 }
 0x478   :  { %v6282_v46 = vadd.f32 %v4848_v37, %v1453_v30 }
 0x479   :  { %v6280_v45 = vadd.f32 %v4848_v37, %v1380_v32 }
 0x47a   :  { %v1525_v34 = vpop.f32.mrb[20].mxu1 }
 0x47b   :  { %v1526_v35 = vadd.f32 %v1525_v34, %v1233_v19  ;;  %v5140_v36 = vpop.f32.mrb[21].mxu1 }
 0x47d   :  { %v1627_v38 = vpop.f32.mrb[22].mxu0  ;;  %v6274_v39 = vadd.f32 %v4848_v37, %v1526_v35 }
 0x47e   :  { %v1633_v40 = vrot.slane %v1627_v38, 1  ;;  %v1634_v41 = vrot.slane %v1627_v38, 2  ;;  %v1635_v42 = vrot.slane %v1627_v38, 3  ;;  %v6276_v43 = vpop.f32.mrb[23].mxu0  ;;  %v1640_v47 = vadd.f32 %v1627_v38, %v6278_v44 }
 0x480   :  { %v1641_v48 = vadd.f32 %v1633_v40, %v6280_v45  ;;  %v1642_v49 = vadd.f32 %v1634_v41, %v6282_v46  ;;  %v1643_v50 = vadd.f32 %v1635_v42, %v6274_v39 }
 0x482   :  { %v1710_v51 = vpop.f32.mrb[22].mxu1 }
 0x483   :  { %v1715_v23 = vrot.slane %v1710_v51, 1  ;;  %v1716_v52 = vrot.slane %v1710_v51, 2  ;;  %v1717_v53 = vrot.slane %v1710_v51, 3  ;;  %v1722_v25 = vadd.f32 %v1710_v51, %v1640_v47  ;;  %v5151_v16 = vpop.f32.mrb[23].mxu1  ;;  %v1553_v51 = vld [vmem:[#allocation7 + $0x8] sm:$0xff] }
 0x485   :  { %v1723_v54 = vadd.f32 %v1715_v23, %v1641_v48  ;;  %v1724_v55 = vadd.f32 %v1716_v52, %v1642_v49  ;;  %v1725_v57 = vadd.f32 %v1717_v53, %v1643_v50  ;;  %v4849_v1 = vmul.f32 -1.442695, %v1722_v25  ;;  %v1552_v50 = vld [vmem:[#allocation7] sm:$0xff]  ;;  %v1554_v23 = vld [vmem:[#allocation7 + $0x10] sm:$0xff]  ;;  %v1555_v53 = vld [vmem:[#allocation7 + $0x18] sm:$0xff] }
 0x486   :  { %v6309_v52 = vpack.c.bf16 %v1553_v51, %v1552_v50  ;;  %v6312_v16 = vpack.c.bf16 %v1555_v53, %v1554_v23 }
 0x487   :  { %5533 = vtanh.f32 %v1723_v54  ;;  %v4850_v63 = vmul.f32 -1.442695, %v1723_v54  ;;  %v4851_v22 = vmul.f32 -1.442695, %v1724_v55  ;;  %v4852_v2 = vmul.f32 -1.442695, %v1725_v57 }
 0x488   :  { %5535 = vtanh.f32 %v1722_v25  ;;  %5341 = vmatpush3.bf16.msra.mxu0 %v6309_v52 }
 0x489   :  { %5537 = vtanh.f32 %v1724_v55  ;;  %5342 = vmatprep.subr.bf16.mxu0 %v5982_v8 }
 0x48a   :  { %5539 = vtanh.f32 %v1725_v57 }
 0x48b   :  { %5541 = vpow2.f32 %v4850_v63 }
 0x48c   :  { %5543 = vpow2.f32 %v4849_v1  ;;  %5344 = vmatpush3.bf16.msra.mxu0 %v6312_v16 }
 0x48d   :  { %5545 = vpow2.f32 %v4851_v22  ;;  %5353 = vmatprep.subr.bf16.mxu0 %v5982_v8 }
 0x48e   :  { %5547 = vpow2.f32 %v4852_v2 }
 0x491   :  { %v5534_v58 = vpop.eup %5533 }
 0x492   :  { %1764 = vrot.lane.b32.xlu1 %v5534_v58, %s5983_s2  ;;  %v5536_v59 = vpop.eup %5535 }
 0x493   :  { %v5538_v61 = vpop.eup %5537 }
 0x494   :  { %1766 = vrot.lane.b32.xlu0 %v5538_v61, %s5983_s2  ;;  %v5540_v62 = vpop.eup %5539 }
 0x495   :  { %v5542_v3 = vpop.eup %5541 }
 0x496   :  { %1762 = vrot.lane.b32.xlu1 %v5536_v59, %s5983_s2  ;;  %v5544_v4 = vpop.eup %5543  ;;  %v1739_v6 = vadd.f32 1.0, %v5542_v3 }
 0x497   :  { %v5546_v9 = vpop.eup %5545  ;;  %v1738_v10 = vadd.f32 1.0, %v5544_v4 }
 0x498   :  { %v1740_v11 = vadd.f32 1.0, %v5546_v9  ;;  %5549 = vrcp.f32 %v1739_v6  ;;  %v5548_v12 = vpop.eup %5547 }
 0x499   :  { %5551 = vrcp.f32 %v1738_v10  ;;  %v1741_v13 = vadd.f32 1.0, %v5548_v12  ;;  %v6341_v12 = vld [vmem:[%s6892_s6] ss:$0 sm:$0xff] }
 0x49a   :  { %1768 = vrot.lane.b32.xlu1 %v5540_v62, %s5983_s2  ;;  %5553 = vrcp.f32 %v1740_v11 }
 0x49b   :  { %5555 = vrcp.f32 %v1741_v13  ;;  %v1828_v13 = vadd.f32 %v6341_v12, %v6276_v43 }
 0x4a2   :  { %v5550_v14 = vpop.eup %5549 }
 0x4a3   :  { %v5552_v18 = vpop.eup %5551  ;;  %v1755_v32 = vmul.f32 0.0, %v5550_v14 }
 0x4a4   :  { %v5554_v19 = vpop.eup %5553  ;;  %v1754_v36 = vmul.f32 0.0, %v5552_v18 }
 0x4a5   :  { %v5556_v29 = vpop.eup %5555  ;;  %v1756_v35 = vmul.f32 0.0, %v5554_v19 }
 0x4a6   :  { %v1757_v42 = vmul.f32 0.0, %v5556_v29 }
 0x504   :  { %v1765_v15 = vpop.permute.xlu1 %1764 }
 0x505   :  { %v1775_v17 = vmul.f32 %v5550_v14, %v1765_v15 }
 0x506   :  { %v1767_v21 = vpop.permute.xlu0 %1766 }
 0x507   :  { %1784 = vrot.lane.b32.xlu0 %v1775_v17, %s5983_s2  ;;  %v1776_v27 = vmul.f32 %v5554_v19, %v1767_v21 }
 0x508   :  { %v1763_v26 = vpop.permute.xlu1 %1762 }
 0x509   :  { %v1774_v28 = vmul.f32 %v5552_v18, %v1763_v26  ;;  %1786 = vrot.lane.b32.xlu1 %v1776_v27, %s5983_s2 }
 0x50b   :  { %1782 = vrot.lane.b32.xlu0 %v1774_v28, %s5983_s2 }
 0x50c   :  { %v1769_v30 = vpop.permute.xlu1 %1768 }
 0x50d   :  { %v1777_v31 = vmul.f32 %v5556_v29, %v1769_v30 }
 0x50f   :  { %1788 = vrot.lane.b32.xlu1 %v1777_v31, %s5983_s2 }
 0x579   :  { %v1785_v33 = vpop.permute.xlu0 %1784 }
 0x57a   :  { %v6296_v34 = vadd.f32 %v1785_v33, %v1755_v32 }
 0x57b   :  { %v1787_v37 = vpop.permute.xlu1 %1786 }
 0x57c   :  { %5557 = vtanh.f32 %v6296_v34  ;;  %v6299_v40 = vadd.f32 %v1787_v37, %v1756_v35 }
 0x57d   :  { %v1783_v38 = vpop.permute.xlu0 %1782 }
 0x57e   :  { %v6301_v41 = vadd.f32 %v1783_v38, %v1754_v36  ;;  %5559 = vtanh.f32 %v6299_v40 }
 0x580   :  { %5561 = vtanh.f32 %v6301_v41 }
 0x581   :  { %v1789_v47 = vpop.permute.xlu1 %1788 }
 0x582   :  { %v6305_v48 = vadd.f32 %v1789_v47, %v1757_v42 }
 0x584   :  { %5563 = vtanh.f32 %v6305_v48 }
 0x586   :  { %v5558_v49 = vpop.eup %5557 }
 0x587   :  { %1808 = vrot.lane.b32.xlu0 %v5558_v49, %s5983_s2 }
 0x588   :  { %v5560_v25 = vpop.eup %5559 }
 0x589   :  { %1810 = vrot.lane.b32.xlu1 %v5560_v25, %s5983_s2 }
 0x58a   :  { %v5562_v54 = vpop.eup %5561 }
 0x58b   :  { %1806 = vrot.lane.b32.xlu0 %v5562_v54, %s5983_s2 }
 0x58e   :  { %v5564_v55 = vpop.eup %5563 }
 0x58f   :  { %1812 = vrot.lane.b32.xlu1 %v5564_v55, %s5983_s2 }
 0x5f9   :  { %v1809_v57 = vpop.permute.xlu0 %1808 }
 0x5fa   :  { %v1819_v58 = vmul.f32 %v5550_v14, %v1809_v57 }
 0x5fb   :  { %v1811_v59 = vpop.permute.xlu1 %1810 }
 0x5fc   :  { %v1820_v62 = vmul.f32 %v5554_v19, %v1811_v59  ;;  %v1833_v1 = vrot.slane %v1819_v58, 7 }
 0x5fd   :  { %v1807_v61 = vpop.permute.xlu0 %1806 }
 0x5fe   :  { %v1818_v63 = vmul.f32 %v5552_v18, %v1807_v61  ;;  %v1836_v4 = vrot.slane %v1820_v62, 6 }
 0x600   :  { %v1835_v3 = vsel %vm1834_vm3, %v1833_v1, %v1818_v63 }
 0x601   :  { %v1813_v22 = vpop.permute.xlu1 %1812  ;;  %v1838_v9 = vsel %vm1837_vm4, %v1836_v4, %v1835_v3 }
 0x602   :  { %v1821_v2 = vmul.f32 %v5556_v29, %v1813_v22 }
 0x604   :  { %v1839_v6 = vrot.slane %v1821_v2, 5 }
 0x606   :  { %v1841_v10 = vsel %vm1840_vm5, %v1839_v6, %v1838_v9 }
 0x607   :  { %1842 = vrot.lane.b32.xlu0 %v1841_v10, %s5984_s23 }
 0x679   :  { %v1843_v11 = vpop.permute.xlu0 %1842 }
 0x67a   :  { %4755 = vst.msk [vmem:[#allocation8] sm:$0xf] %vm4754_vm6, %v1843_v11  ;;  %5161 = vmatmul.mubr.msk.f32.vlgmr.msra.gmra.mrb[24].mxu0 %vm1557_vm7, %v1843_v11 }
 0x67b   :  { %5355 = vmatpush3.bf16.msra.mxu0 %v6246_v7  ;;  %5171 = vmatprep.mubr.msk.f32.mxu0 %vm5980_vm1, %v5979_v0 }
 0x67c   :  { %5356 = vmatprep.subr.bf16.mxu0 %v5982_v8 }
 0x67f   :  { %5358 = vmatpush3.bf16.msra.mxu0 %v6254_v24 }
 0x680   :  { %5366 = vmatprep.subr.bf16.mxu0 %v6209_v56 }
 0x682   :  { %5172 = vmatmul.mubr.msk.f32.vlgmr.msra.gmra.mrb[26].mxu0 %vm1557_vm7, %v1843_v11 }
 0x683   :  { %5368 = vmatpush1.bf16.msra.mxu0 %v6219_v60  ;;  %2398 = vmatprep.mubr.f32.mxu0 %v5979_v0 }
 0x684   :  { %5370 = vmatprep.subr.bf16.mxu0 %v6234_v20 }
 0x687   :  { %5372 = vmatpush1.bf16.msra.mxu0 %v6240_v5 }
 0x688   :  { %5379 = vmatprep.subr.bf16.mxu0 %v5982_v8 }
 0x74d   :  { %v1912_v14 = vpop.f32.mrb[24].mxu0 }
 0x74e   :  { %v1916_v15 = vadd.f32 %v1912_v14, %v1828_v13  ;;  %v5162_v17 = vpop.f32.mrb[25].mxu0 }
 0x750   :  { %5565 = vtanh.f32 %v1916_v15  ;;  %v4855_v26 = vmul.f32 -1.442695, %v1916_v15 }
 0x752   :  { %5567 = vpow2.f32 %v4855_v26 }
 0x755   :  { %v2095_v18 = vpop.f32.mrb[26].mxu0 }
 0x756   :  { %v5173_v19 = vpop.f32.mrb[27].mxu0  ;;  %v2100_v53 = vrot.slane %v2095_v18, 7  ;;  %v2101_v25 = vrot.slane %v2095_v18, 1  ;;  %v2102_v54 = vrot.slane %v2095_v18, 2 }
 0x75a   :  { %v5566_v21 = vpop.eup %5565 }
 0x75b   :  { %1926 = vrot.lane.b32.xlu1 %v5566_v21, %s5983_s2 }
 0x75c   :  { %v5568_v27 = vpop.eup %5567 }
 0x75d   :  { %v1920_v28 = vadd.f32 1.0, %v5568_v27 }
 0x75f   :  { %5569 = vrcp.f32 %v1920_v28 }
 0x769   :  { %v5570_v29 = vpop.eup %5569 }
 0x76a   :  { %v1924_v43 = vmul.f32 0.0, %v5570_v29 }
 0x7cd   :  { %v1927_v30 = vpop.permute.xlu1 %1926 }
 0x7ce   :  { %v1929_v31 = vmul.f32 %v5570_v29, %v1927_v30 }
 0x7d0   :  { %1931 = vrot.lane.b32.xlu0 %v1929_v31, %s5983_s2 }
 0x842   :  { %v1932_v32 = vpop.permute.xlu0 %1931 }
 0x843   :  { %v6347_v33 = vadd.f32 %v1932_v32, %v1924_v43 }
 0x845   :  { %5571 = vtanh.f32 %v6347_v33 }
 0x84f   :  { %v5572_v35 = vpop.eup %5571 }
 0x850   :  { %1937 = vrot.lane.b32.xlu1 %v5572_v35, %s5983_s2 }
 0x8c2   :  { %v1938_v36 = vpop.permute.xlu1 %1937 }
 0x8c3   :  { %v1940_v37 = vmul.f32 %v5570_v29, %v1938_v36 }
 0x8c5   :  { %1942 = vrot.lane.b32.xlu0 %v1940_v37, %s5984_s23 }
 0x937   :  { %v1943_v38 = vpop.permute.xlu0 %1942 }
 0x938   :  { %4774 = vst.msk [vmem:[#allocation9] sm:$0xf] %vm4754_vm6, %v1943_v38  ;;  %4856 = vmatmul.mubr.msk.f32.vlgmr.msra.gmra.mrb[24].mxu1 %vm1557_vm7, %v1943_v38 }
 0x939   :  { %5361 = vmatpush3.bf16.msra.mxu1 %v6309_v52  ;;  %5182 = vmatprep.mubr.msk.f32.mxu1 %vm5980_vm1, %v5979_v0 }
 0x93a   :  { %5362 = vmatprep.subr.bf16.mxu1 %v5982_v8 }
 0x93d   :  { %5364 = vmatpush3.bf16.msra.mxu1 %v6312_v16 }
 0x93e   :  { %5373 = vmatprep.subr.bf16.mxu1 %v5982_v8 }
 0xa0b   :  { %v2012_v42 = vpop.f32.mrb[24].mxu1 }
 0xa0c   :  { %v2018_v47 = vrot.slane %v2012_v42, 7  ;;  %v2019_v49 = vrot.slane %v2012_v42, 1  ;;  %v2020_v50 = vrot.slane %v2012_v42, 2  ;;  %v2026_v51 = vadd.f32 %v2012_v42, %v6280_v45  ;;  %v6361_v23 = vpop.f32.mrb[25].mxu1 }
 0xa0d   :  { %v2143_v42 = vrot.slane %v6301_v41, 7 }
 0xa0e   :  { %v2025_v55 = vadd.f32 %v2018_v47, %v6278_v44  ;;  %v2027_v57 = vadd.f32 %v2019_v49, %v6282_v46  ;;  %v2028_v58 = vadd.f32 %v2020_v50, %v6274_v39  ;;  %v2108_v59 = vadd.f32 %v2095_v18, %v2026_v51 }
 0xa0f   :  { %v2145_v50 = vrot.slane %v6299_v40, 7  ;;  %v2144_v51 = vrot.slane %v6296_v34, 7 }
 0xa10   :  { %v2107_v61 = vadd.f32 %v2100_v53, %v2025_v55  ;;  %v2109_v62 = vadd.f32 %v2101_v25, %v2027_v57  ;;  %v2110_v63 = vadd.f32 %v2102_v54, %v2028_v58  ;;  %v4859_v6 = vmul.f32 -1.442695, %v2108_v59 }
 0xa11   :  { %v2146_v58 = vrot.slane %v6305_v48, 7 }
 0xa12   :  { %5573 = vtanh.f32 %v2107_v61  ;;  %v4858_v4 = vmul.f32 -1.442695, %v2107_v61  ;;  %v4860_v9 = vmul.f32 -1.442695, %v2109_v62  ;;  %v4861_v10 = vmul.f32 -1.442695, %v2110_v63 }
 0xa13   :  { %5575 = vtanh.f32 %v2108_v59 }
 0xa14   :  { %5577 = vtanh.f32 %v2109_v62 }
 0xa15   :  { %5579 = vtanh.f32 %v2110_v63 }
 0xa16   :  { %5581 = vpow2.f32 %v4858_v4 }
 0xa17   :  { %5583 = vpow2.f32 %v4859_v6 }
 0xa18   :  { %5585 = vpow2.f32 %v4860_v9 }
 0xa19   :  { %5587 = vpow2.f32 %v4861_v10 }
 0xa1c   :  { %v5574_v1 = vpop.eup %5573 }
 0xa1d   :  { %2159 = vrot.lane.b32.xlu1 %v5574_v1, %s5983_s2  ;;  %v5576_v22 = vpop.eup %5575 }
 0xa1e   :  { %v5578_v2 = vpop.eup %5577 }
 0xa1f   :  { %2163 = vrot.lane.b32.xlu0 %v5578_v2, %s5983_s2  ;;  %v5580_v3 = vpop.eup %5579 }
 0xa20   :  { %v5582_v11 = vpop.eup %5581 }
 0xa21   :  { %2161 = vrot.lane.b32.xlu1 %v5576_v22, %s5983_s2  ;;  %v5584_v13 = vpop.eup %5583  ;;  %v2123_v14 = vadd.f32 1.0, %v5582_v11 }
 0xa22   :  { %v5586_v15 = vpop.eup %5585  ;;  %v2124_v17 = vadd.f32 1.0, %v5584_v13 }
 0xa23   :  { %2165 = vrot.lane.b32.xlu0 %v5580_v3, %s5983_s2  ;;  %v2125_v18 = vadd.f32 1.0, %v5586_v15  ;;  %5589 = vrcp.f32 %v2123_v14  ;;  %v5588_v19 = vpop.eup %5587 }
 0xa24   :  { %5591 = vrcp.f32 %v2124_v17  ;;  %v2126_v21 = vadd.f32 1.0, %v5588_v19 }
 0xa25   :  { %5593 = vrcp.f32 %v2125_v18 }
 0xa26   :  { %5595 = vrcp.f32 %v2126_v21 }
 0xa2d   :  { %v5590_v26 = vpop.eup %5589 }
 0xa2e   :  { %v5592_v29 = vpop.eup %5591  ;;  %v2151_v47 = vmul.f32 %v5590_v26, %v2143_v42 }
 0xa2f   :  { %v5594_v30 = vpop.eup %5593  ;;  %v2152_v54 = vmul.f32 %v5592_v29, %v2144_v51 }
 0xa30   :  { %v5596_v36 = vpop.eup %5595  ;;  %v2153_v25 = vmul.f32 %v5594_v30, %v2145_v50 }
 0xa31   :  { %v2154_v41 = vmul.f32 %v5596_v36, %v2146_v58 }
 0xa8f   :  { %v2160_v27 = vpop.permute.xlu1 %2159 }
 0xa90   :  { %v2171_v28 = vmul.f32 %v5590_v26, %v2160_v27 }
 0xa91   :  { %v2164_v31 = vpop.permute.xlu0 %2163 }
 0xa92   :  { %2179 = vrot.lane.b32.xlu1 %v2171_v28, %s5983_s2  ;;  %v2173_v32 = vmul.f32 %v5594_v30, %v2164_v31 }
 0xa93   :  { %v2162_v43 = vpop.permute.xlu1 %2161 }
 0xa94   :  { %v2172_v35 = vmul.f32 %v5592_v29, %v2162_v43  ;;  %2183 = vrot.lane.b32.xlu0 %v2173_v32, %s5983_s2 }
 0xa95   :  { %v2166_v37 = vpop.permute.xlu0 %2165 }
 0xa96   :  { %2181 = vrot.lane.b32.xlu1 %v2172_v35, %s5983_s2  ;;  %v2174_v38 = vmul.f32 %v5596_v36, %v2166_v37 }
 0xa98   :  { %2185 = vrot.lane.b32.xlu0 %v2174_v38, %s5983_s2 }
 0xb04   :  { %v2180_v49 = vpop.permute.xlu1 %2179 }
 0xb05   :  { %v6377_v53 = vadd.f32 %v2180_v49, %v2151_v47 }
 0xb06   :  { %v2184_v55 = vpop.permute.xlu0 %2183 }
 0xb07   :  { %5597 = vtanh.f32 %v6377_v53  ;;  %v6381_v59 = vadd.f32 %v2184_v55, %v2153_v25 }
 0xb08   :  { %v2182_v57 = vpop.permute.xlu1 %2181 }
 0xb09   :  { %v6383_v61 = vadd.f32 %v2182_v57, %v2152_v54  ;;  %5599 = vtanh.f32 %v6381_v59 }
 0xb0a   :  { %v2186_v40 = vpop.permute.xlu0 %2185 }
 0xb0b   :  { %5601 = vtanh.f32 %v6383_v61  ;;  %v6387_v34 = vadd.f32 %v2186_v40, %v2154_v41 }
 0xb0d   :  { %5603 = vtanh.f32 %v6387_v34 }
 0xb11   :  { %v5598_v62 = vpop.eup %5597 }
 0xb12   :  { %2203 = vrot.lane.b32.xlu1 %v5598_v62, %s5983_s2 }
 0xb13   :  { %v5600_v63 = vpop.eup %5599 }
 0xb14   :  { %2207 = vrot.lane.b32.xlu0 %v5600_v63, %s5983_s2 }
 0xb15   :  { %v5602_v1 = vpop.eup %5601 }
 0xb16   :  { %2205 = vrot.lane.b32.xlu1 %v5602_v1, %s5983_s2 }
 0xb17   :  { %v5604_v48 = vpop.eup %5603 }
 0xb18   :  { %2209 = vrot.lane.b32.xlu0 %v5604_v48, %s5983_s2 }
 0xb84   :  { %v2204_v22 = vpop.permute.xlu1 %2203 }
 0xb85   :  { %v2215_v2 = vmul.f32 %v5590_v26, %v2204_v22  ;;  %v2219_v26 = vadd.f32 %v6341_v12, %v6361_v23 }
 0xb86   :  { %v2208_v3 = vpop.permute.xlu0 %2207 }
 0xb87   :  { %v2217_v4 = vmul.f32 %v5594_v30, %v2208_v3  ;;  %v2224_v9 = vrot.slane %v2215_v2, 1 }
 0xb88   :  { %v2206_v6 = vpop.permute.xlu1 %2205 }
 0xb89   :  { %v2216_v10 = vmul.f32 %v5592_v29, %v2206_v6  ;;  %v2226_v11 = vrot.slane %v2217_v4, 7 }
 0xb8a   :  { %v2210_v13 = vpop.permute.xlu0 %2209 }
 0xb8b   :  { %v2225_v14 = vsel %vm1834_vm3, %v2216_v10, %v2224_v9  ;;  %v2218_v15 = vmul.f32 %v5596_v36, %v2210_v13 }
 0xb8c   :  { %v2227_v17 = vsel %vm1837_vm4, %v2226_v11, %v2225_v14 }
 0xb8d   :  { %v2228_v18 = vrot.slane %v2218_v15, 6 }
 0xb8f   :  { %v6397_v19 = vsel %vm1840_vm5, %v2228_v18, %v2227_v17 }
 0xb90   :  { %2230 = vrot.lane.b32.xlu1 %v6397_v19, %s5984_s23 }
 0xc02   :  { %v2231_v21 = vpop.permute.xlu1 %2230 }
 0xc03   :  { %5183 = vmatmul.mubr.msk.f32.vlgmr.msra.gmra.mrb[26].mxu1 %vm1557_vm7, %v2231_v21 }
 0xc04   :  { %5375 = vmatpush3.bf16.msra.mxu1 %v6246_v7  ;;  %5193 = vmatprep.mubr.msk.f32.mxu1 %vm5980_vm1, %v5979_v0 }
 0xc05   :  { %5376 = vmatprep.subr.bf16.mxu1 %v5982_v8 }
 0xc08   :  { %5378 = vmatpush3.bf16.msra.mxu1 %v6254_v24 }
 0xc09   :  { %5386 = vmatprep.subr.bf16.mxu1 %v6209_v56 }
 0xc0b   :  { %5194 = vmatmul.mubr.msk.f32.vlgmr.msra.gmra.mrb[28].mxu1 %vm1557_vm7, %v2231_v21 }
 0xc0c   :  { %5388 = vmatpush1.bf16.msra.mxu1 %v6219_v60  ;;  %2786 = vmatprep.mubr.f32.mxu1 %v5979_v0 }
 0xc0d   :  { %5390 = vmatprep.subr.bf16.mxu1 %v6234_v20 }
 0xc10   :  { %5392 = vmatpush1.bf16.msra.mxu1 %v6240_v5 }
 0xc11   :  { %5399 = vmatprep.subr.bf16.mxu1 %v5982_v8 }
 0xcd6   :  { %v2300_v27 = vpop.f32.mrb[26].mxu1 }
 0xcd7   :  { %v2304_v28 = vadd.f32 %v2300_v27, %v2219_v26  ;;  %v5184_v29 = vpop.f32.mrb[27].mxu1 }
 0xcd9   :  { %5605 = vtanh.f32 %v2304_v28  ;;  %v4863_v32 = vmul.f32 -1.442695, %v2304_v28 }
 0xcdb   :  { %5607 = vpow2.f32 %v4863_v32 }
 0xcde   :  { %v2483_v30 = vpop.f32.mrb[28].mxu1 }
 0xcdf   :  { %v5195_v31 = vpop.f32.mrb[29].mxu1  ;;  %v2488_v62 = vrot.slane %v2483_v30, 6  ;;  %v2489_v63 = vrot.slane %v2483_v30, 7  ;;  %v2490_v1 = vrot.slane %v2483_v30, 1 }
 0xce3   :  { %v5606_v43 = vpop.eup %5605 }
 0xce4   :  { %2314 = vrot.lane.b32.xlu0 %v5606_v43, %s5983_s2 }
 0xce5   :  { %v5608_v35 = vpop.eup %5607 }
 0xce6   :  { %v2308_v36 = vadd.f32 1.0, %v5608_v35 }
 0xce8   :  { %5609 = vrcp.f32 %v2308_v36 }
 0xcf2   :  { %v5610_v37 = vpop.eup %5609 }
 0xcf3   :  { %v2312_v23 = vmul.f32 %v5610_v37, %v6347_v33 }
 0xd56   :  { %v2315_v38 = vpop.permute.xlu0 %2314 }
 0xd57   :  { %v2317_v42 = vmul.f32 %v5610_v37, %v2315_v38 }
 0xd59   :  { %2319 = vrot.lane.b32.xlu1 %v2317_v42, %s5983_s2 }
 0xdcb   :  { %v2320_v47 = vpop.permute.xlu1 %2319 }
 0xdcc   :  { %v6419_v49 = vadd.f32 %v2320_v47, %v2312_v23 }
 0xdce   :  { %5611 = vtanh.f32 %v6419_v49 }
 0xdd8   :  { %v5612_v50 = vpop.eup %5611 }
 0xdd9   :  { %2325 = vrot.lane.b32.xlu0 %v5612_v50, %s5983_s2 }
 0xe4b   :  { %v2326_v51 = vpop.permute.xlu0 %2325 }
 0xe4c   :  { %v2328_v25 = vmul.f32 %v5610_v37, %v2326_v51 }
 0xe4e   :  { %2330 = vrot.lane.b32.xlu1 %v2328_v25, %s5984_s23 }
 0xec0   :  { %v2331_v54 = vpop.permute.xlu1 %2330 }
 0xec1   :  { %4775 = vst.msk [vmem:[#allocation9 + $0x4] sm:$0xf] %vm4754_vm6, %v2331_v54  ;;  %4864 = vmatmul.mubr.msk.f32.vlgmr.msra.gmra.mrb[28].mxu0 %vm1557_vm7, %v2331_v54 }
 0xec2   :  { %5381 = vmatpush3.bf16.msra.mxu0 %v6309_v52  ;;  %5204 = vmatprep.mubr.msk.f32.mxu0 %vm5980_vm1, %v5979_v0 }
 0xec3   :  { %5382 = vmatprep.subr.bf16.mxu0 %v5982_v8 }
 0xec6   :  { %5384 = vmatpush3.bf16.msra.mxu0 %v6312_v16 }
 0xec7   :  { %5393 = vmatprep.subr.bf16.mxu0 %v5982_v8 }
 0xf94   :  { %v2400_v33 = vpop.f32.mrb[28].mxu0 }
 0xf95   :  { %v2406_v55 = vrot.slane %v2400_v33, 6  ;;  %v2407_v57 = vrot.slane %v2400_v33, 7  ;;  %v2408_v58 = vrot.slane %v2400_v33, 1  ;;  %v2415_v41 = vadd.f32 %v2400_v33, %v6282_v46  ;;  %v6433_v40 = vpop.f32.mrb[29].mxu0 }
 0xf97   :  { %v2413_v48 = vadd.f32 %v2406_v55, %v6278_v44  ;;  %v2414_v22 = vadd.f32 %v2407_v57, %v6280_v45  ;;  %v2416_v2 = vadd.f32 %v2408_v58, %v6274_v39  ;;  %v2497_v3 = vadd.f32 %v2483_v30, %v2415_v41 }
 0xf98   :  { %v2531_v55 = vrot.slane %v6377_v53, 7  ;;  %v2532_v41 = vrot.slane %v6383_v61, 7 }
 0xf99   :  { %v2495_v4 = vadd.f32 %v2488_v62, %v2413_v48  ;;  %v2496_v6 = vadd.f32 %v2489_v63, %v2414_v22  ;;  %v2498_v9 = vadd.f32 %v2490_v1, %v2416_v2  ;;  %v4868_v21 = vmul.f32 -1.442695, %v2497_v3 }
 0xf9a   :  { %v2534_v63 = vrot.slane %v6387_v34, 7  ;;  %v2533_v2 = vrot.slane %v6381_v59, 7 }
 0xf9b   :  { %5613 = vtanh.f32 %v2495_v4  ;;  %v4866_v15 = vmul.f32 -1.442695, %v2495_v4  ;;  %v4867_v17 = vmul.f32 -1.442695, %v2496_v6  ;;  %v4869_v18 = vmul.f32 -1.442695, %v2498_v9 }
 0xf9c   :  { %5615 = vtanh.f32 %v2496_v6 }
 0xf9d   :  { %5617 = vtanh.f32 %v2498_v9 }
 0xf9e   :  { %5619 = vtanh.f32 %v2497_v3 }
 0xf9f   :  { %5621 = vpow2.f32 %v4866_v15 }
 0xfa0   :  { %5623 = vpow2.f32 %v4867_v17 }
 0xfa1   :  { %5625 = vpow2.f32 %v4869_v18 }
 0xfa2   :  { %5627 = vpow2.f32 %v4868_v21 }
 0xfa5   :  { %v5614_v10 = vpop.eup %5613 }
 0xfa6   :  { %2547 = vrot.lane.b32.xlu0 %v5614_v10, %s5983_s2  ;;  %v5616_v11 = vpop.eup %5615 }
 0xfa7   :  { %v5618_v13 = vpop.eup %5617  ;;  %2549 = vrot.lane.b32.xlu1 %v5616_v11, %s5983_s2 }
 0xfa8   :  { %v5620_v14 = vpop.eup %5619 }
 0xfa9   :  { %v5622_v26 = vpop.eup %5621 }
 0xfaa   :  { %2553 = vrot.lane.b32.xlu0 %v5618_v13, %s5983_s2  ;;  %v2511_v27 = vadd.f32 1.0, %v5622_v26  ;;  %v5624_v28 = vpop.eup %5623 }
 0xfab   :  { %2551 = vrot.lane.b32.xlu1 %v5620_v14, %s5983_s2  ;;  %v5626_v29 = vpop.eup %5625  ;;  %v2512_v30 = vadd.f32 1.0, %v5624_v28 }
 0xfac   :  { %5629 = vrcp.f32 %v2511_v27  ;;  %v5628_v31 = vpop.eup %5627  ;;  %v2514_v43 = vadd.f32 1.0, %v5626_v29 }
 0xfad   :  { %v2513_v32 = vadd.f32 1.0, %v5628_v31  ;;  %5631 = vrcp.f32 %v2512_v30 }
 0xfae   :  { %5633 = vrcp.f32 %v2514_v43 }
 0xfaf   :  { %5635 = vrcp.f32 %v2513_v32 }
 0xfb6   :  { %v5630_v35 = vpop.eup %5629 }
 0xfb7   :  { %v5632_v38 = vpop.eup %5631  ;;  %v2539_v57 = vmul.f32 %v5630_v35, %v2531_v55 }
 0xfb8   :  { %v5634_v23 = vpop.eup %5633  ;;  %v2540_v1 = vmul.f32 %v5632_v38, %v2532_v41 }
 0xfb9   :  { %v5636_v25 = vpop.eup %5635  ;;  %v2542_v22 = vmul.f32 %v5634_v23, %v2534_v63 }
 0xfba   :  { %v2541_v53 = vmul.f32 %v5636_v25, %v2533_v2 }
0x1018   :  { %v2548_v36 = vpop.permute.xlu0 %2547 }
0x1019   :  { %v2559_v37 = vmul.f32 %v5630_v35, %v2548_v36  ;;  %v2550_v42 = vpop.permute.xlu1 %2549 }
0x101a   :  { %v2560_v47 = vmul.f32 %v5632_v38, %v2550_v42 }
0x101b   :  { %2567 = vrot.lane.b32.xlu0 %v2559_v37, %s5983_s2 }
0x101c   :  { %v2554_v50 = vpop.permute.xlu0 %2553  ;;  %2569 = vrot.lane.b32.xlu1 %v2560_v47, %s5983_s2 }
0x101d   :  { %v2562_v51 = vmul.f32 %v5634_v23, %v2554_v50  ;;  %v2552_v54 = vpop.permute.xlu1 %2551 }
0x101e   :  { %v2561_v33 = vmul.f32 %v5636_v25, %v2552_v54 }
0x101f   :  { %2573 = vrot.lane.b32.xlu0 %v2562_v51, %s5983_s2 }
0x1020   :  { %2571 = vrot.lane.b32.xlu1 %v2561_v33, %s5983_s2 }
0x108d   :  { %v2568_v58 = vpop.permute.xlu0 %2567 }
0x108e   :  { %v6448_v62 = vadd.f32 %v2568_v58, %v2539_v57  ;;  %v2570_v48 = vpop.permute.xlu1 %2569 }
0x108f   :  { %v6453_v3 = vadd.f32 %v2570_v48, %v2540_v1 }
0x1090   :  { %5637 = vtanh.f32 %v6448_v62 }
0x1091   :  { %v2574_v4 = vpop.permute.xlu0 %2573  ;;  %5639 = vtanh.f32 %v6453_v3 }
0x1092   :  { %v6455_v6 = vadd.f32 %v2574_v4, %v2542_v22  ;;  %v2572_v61 = vpop.permute.xlu1 %2571 }
0x1093   :  { %v6459_v9 = vadd.f32 %v2572_v61, %v2541_v53 }
0x1094   :  { %5641 = vtanh.f32 %v6455_v6 }
0x1095   :  { %5643 = vtanh.f32 %v6459_v9 }
0x109a   :  { %v5638_v34 = vpop.eup %5637 }
0x109b   :  { %2591 = vrot.lane.b32.xlu0 %v5638_v34, %s5983_s2  ;;  %v5640_v10 = vpop.eup %5639 }
0x109c   :  { %2593 = vrot.lane.b32.xlu1 %v5640_v10, %s5983_s2 }
0x109e   :  { %v5642_v59 = vpop.eup %5641 }
0x109f   :  { %2597 = vrot.lane.b32.xlu0 %v5642_v59, %s5983_s2  ;;  %v5644_v11 = vpop.eup %5643 }
0x10a0   :  { %2595 = vrot.lane.b32.xlu1 %v5644_v11, %s5983_s2 }
0x110d   :  { %v2592_v13 = vpop.permute.xlu0 %2591 }
0x110e   :  { %v2603_v14 = vmul.f32 %v5630_v35, %v2592_v13  ;;  %v2594_v15 = vpop.permute.xlu1 %2593 }
0x110f   :  { %v2604_v17 = vmul.f32 %v5632_v38, %v2594_v15 }
0x1110   :  { %v2612_v18 = vrot.slane %v2603_v14, 2 }
0x1111   :  { %v2598_v21 = vpop.permute.xlu0 %2597  ;;  %v2613_v27 = vrot.slane %v2604_v17, 1  ;;  %v4915_v28 = vrot.slane %v2604_v17, 9 }
0x1112   :  { %v2606_v26 = vmul.f32 %v5634_v23, %v2598_v21  ;;  %v2596_v29 = vpop.permute.xlu1 %2595  ;;  %v2607_v23 = vadd.f32 %v6341_v12, %v6433_v40 }
0x1113   :  { %v4697_v31 = vsel %vm1834_vm3, %v4915_v28, %v2612_v18  ;;  %v2605_v43 = vmul.f32 %v5636_v25, %v2596_v29  ;;  %v2614_v32 = vsel %vm1834_vm3, %v2613_v27, %v2612_v18 }
0x1114   :  { %v2616_v30 = vrot.slane %v2606_v26, 7 }
0x1115   :  { %v4699_v36 = vsel %vm1837_vm4, %v2605_v43, %v4697_v31  ;;  %v2615_v37 = vsel %vm1837_vm4, %v2605_v43, %v2614_v32 }
0x1116   :  { %v2617_v35 = vsel %vm1840_vm5, %v2616_v30, %v2615_v37  ;;  %v6472_v38 = vsel %vm1840_vm5, %v2616_v30, %v4699_v36 }
0x1117   :  { %2618 = vrot.lane.b32.xlu0 %v2617_v35, %s5984_s23 }
0x1189   :  { %v2619_v42 = vpop.permute.xlu0 %2618 }
0x118a   :  { %5205 = vmatmul.mubr.msk.f32.vlgmr.msra.gmra.mrb[30].mxu0 %vm1557_vm7, %v2619_v42 }
0x118b   :  { %5395 = vmatpush3.bf16.msra.mxu0 %v6246_v7  ;;  %5215 = vmatprep.mubr.msk.f32.mxu0 %vm5980_vm1, %v5979_v0 }
0x118c   :  { %5396 = vmatprep.subr.bf16.mxu0 %v5982_v8 }
0x118f   :  { %5398 = vmatpush3.bf16.msra.mxu0 %v6254_v24 }
0x1190   :  { %5406 = vmatprep.subr.bf16.mxu0 %v6209_v56 }
0x1192   :  { %5216 = vmatmul.mubr.msk.f32.vlgmr.msra.gmra.mrb[32].mxu0 %vm1557_vm7, %v2619_v42 }
0x1193   :  { %5408 = vmatpush1.bf16.msra.mxu0 %v6219_v60  ;;  %3174 = vmatprep.mubr.f32.mxu0 %v5979_v0 }
0x1194   :  { %5410 = vmatprep.subr.bf16.mxu0 %v6234_v20 }
0x1197   :  { %5412 = vmatpush1.bf16.msra.mxu0 %v6240_v5 }
0x1198   :  { %5419 = vmatprep.subr.bf16.mxu0 %v5982_v8 }
0x125d   :  { %v2688_v47 = vpop.f32.mrb[30].mxu0 }
0x125e   :  { %v2692_v50 = vadd.f32 %v2688_v47, %v2607_v23  ;;  %v5206_v51 = vpop.f32.mrb[31].mxu0 }
0x1260   :  { %5645 = vtanh.f32 %v2692_v50  ;;  %v4871_v55 = vmul.f32 -1.442695, %v2692_v50 }
0x1262   :  { %5647 = vpow2.f32 %v4871_v55 }
0x1265   :  { %v2871_v25 = vpop.f32.mrb[32].mxu0 }
0x1266   :  { %v5217_v54 = vpop.f32.mrb[33].mxu0  ;;  %v2876_v14 = vrot.slane %v2871_v25, 5  ;;  %v2877_v15 = vrot.slane %v2871_v25, 6  ;;  %v2878_v17 = vrot.slane %v2871_v25, 7 }
0x126a   :  { %v5646_v33 = vpop.eup %5645 }
0x126b   :  { %2702 = vrot.lane.b32.xlu1 %v5646_v33, %s5983_s2 }
0x126c   :  { %v5648_v57 = vpop.eup %5647 }
0x126d   :  { %v2696_v58 = vadd.f32 1.0, %v5648_v57 }
0x126f   :  { %5649 = vrcp.f32 %v2696_v58 }
0x1279   :  { %v5650_v41 = vpop.eup %5649 }
0x127a   :  { %v2700_v40 = vmul.f32 %v5650_v41, %v6419_v49 }
0x12dd   :  { %v2703_v63 = vpop.permute.xlu1 %2702 }
0x12de   :  { %v2705_v1 = vmul.f32 %v5650_v41, %v2703_v63 }
0x12e0   :  { %2707 = vrot.lane.b32.xlu0 %v2705_v1, %s5983_s2 }
0x1352   :  { %v2708_v48 = vpop.permute.xlu0 %2707 }
0x1353   :  { %v6493_v22 = vadd.f32 %v2708_v48, %v2700_v40 }
0x1355   :  { %5651 = vtanh.f32 %v6493_v22 }
0x135f   :  { %v5652_v2 = vpop.eup %5651 }
0x1360   :  { %2713 = vrot.lane.b32.xlu1 %v5652_v2, %s5983_s2 }
0x13d2   :  { %v2714_v4 = vpop.permute.xlu1 %2713 }
0x13d3   :  { %v2716_v53 = vmul.f32 %v5650_v41, %v2714_v4 }
0x13d5   :  { %2718 = vrot.lane.b32.xlu0 %v2716_v53, %s5984_s23 }
0x1447   :  { %v2719_v61 = vpop.permute.xlu0 %2718 }
0x1448   :  { %4776 = vst.msk [vmem:[#allocation9 + $0x8] sm:$0xf] %vm4754_vm6, %v2719_v61  ;;  %4872 = vmatmul.mubr.msk.f32.vlgmr.msra.gmra.mrb[30].mxu1 %vm1557_vm7, %v2719_v61 }
0x1449   :  { %5401 = vmatpush3.bf16.msra.mxu1 %v6309_v52  ;;  %5226 = vmatprep.mubr.msk.f32.mxu1 %vm5980_vm1, %v5979_v0 }
0x144a   :  { %5402 = vmatprep.subr.bf16.mxu1 %v5982_v8 }
0x144d   :  { %5404 = vmatpush3.bf16.msra.mxu1 %v6312_v16 }
0x144e   :  { %5413 = vmatprep.subr.bf16.mxu1 %v5982_v8 }
0x151b   :  { %v2788_v49 = vpop.f32.mrb[30].mxu1 }
0x151c   :  { %v2794_v34 = vrot.slane %v2788_v49, 5  ;;  %v2795_v10 = vrot.slane %v2788_v49, 6  ;;  %v2796_v59 = vrot.slane %v2788_v49, 7  ;;  %v2804_v11 = vadd.f32 %v2788_v49, %v6274_v39  ;;  %v6507_v13 = vpop.f32.mrb[31].mxu1 }
0x151e   :  { %v2801_v18 = vadd.f32 %v2794_v34, %v6278_v44  ;;  %v2802_v21 = vadd.f32 %v2795_v10, %v6280_v45  ;;  %v2803_v26 = vadd.f32 %v2796_v59, %v6282_v46  ;;  %v2886_v27 = vadd.f32 %v2871_v25, %v2804_v11 }
0x151f   :  { %v2919_v10 = vrot.slane %v6448_v62, 7 }
0x1520   :  { %v2883_v28 = vadd.f32 %v2876_v14, %v2801_v18  ;;  %v2884_v29 = vadd.f32 %v2877_v15, %v2802_v21  ;;  %v2885_v30 = vadd.f32 %v2878_v17, %v2803_v26  ;;  %v4877_v23 = vmul.f32 -1.442695, %v2886_v27 }
0x1521   :  { %v2920_v14 = vrot.slane %v6453_v3, 7  ;;  %v2921_v17 = vrot.slane %v6459_v9, 7 }
0x1522   :  { %5653 = vtanh.f32 %v2883_v28  ;;  %v4874_v37 = vmul.f32 -1.442695, %v2883_v28  ;;  %v4875_v35 = vmul.f32 -1.442695, %v2884_v29  ;;  %v4876_v42 = vmul.f32 -1.442695, %v2885_v30 }
0x1523   :  { %5655 = vtanh.f32 %v2884_v29 }
0x1524   :  { %5657 = vtanh.f32 %v2885_v30 }
0x1525   :  { %5659 = vtanh.f32 %v2886_v27  ;;  %v2922_v27 = vrot.slane %v6455_v6, 7 }
0x1526   :  { %5661 = vpow2.f32 %v4874_v37 }
0x1527   :  { %5663 = vpow2.f32 %v4875_v35 }
0x1528   :  { %5665 = vpow2.f32 %v4876_v42 }
0x1529   :  { %5667 = vpow2.f32 %v4877_v23 }
0x152c   :  { %v5654_v31 = vpop.eup %5653 }
0x152d   :  { %2935 = vrot.lane.b32.xlu1 %v5654_v31, %s5983_s2  ;;  %v5656_v43 = vpop.eup %5655 }
0x152e   :  { %v5658_v32 = vpop.eup %5657  ;;  %2937 = vrot.lane.b32.xlu0 %v5656_v43, %s5983_s2 }
0x152f   :  { %v5660_v36 = vpop.eup %5659 }
0x1530   :  { %v5662_v47 = vpop.eup %5661 }
0x1531   :  { %2939 = vrot.lane.b32.xlu1 %v5658_v32, %s5983_s2  ;;  %v2899_v50 = vadd.f32 1.0, %v5662_v47  ;;  %v5664_v51 = vpop.eup %5663 }
0x1532   :  { %2941 = vrot.lane.b32.xlu0 %v5660_v36, %s5983_s2  ;;  %v5666_v25 = vpop.eup %5665  ;;  %v2900_v54 = vadd.f32 1.0, %v5664_v51 }
0x1533   :  { %5669 = vrcp.f32 %v2899_v50  ;;  %v5668_v33 = vpop.eup %5667  ;;  %v2901_v55 = vadd.f32 1.0, %v5666_v25 }
0x1534   :  { %v2902_v57 = vadd.f32 1.0, %v5668_v33  ;;  %5671 = vrcp.f32 %v2900_v54 }
0x1535   :  { %5673 = vrcp.f32 %v2901_v55 }
0x1536   :  { %5675 = vrcp.f32 %v2902_v57 }
0x153d   :  { %v5670_v58 = vpop.eup %5669 }
0x153e   :  { %v5672_v1 = vpop.eup %5671  ;;  %v2927_v59 = vmul.f32 %v5670_v58, %v2919_v10 }
0x153f   :  { %v5674_v48 = vpop.eup %5673  ;;  %v2928_v18 = vmul.f32 %v5672_v1, %v2920_v14 }
0x1540   :  { %v5676_v61 = vpop.eup %5675  ;;  %v2929_v26 = vmul.f32 %v5674_v48, %v2921_v17 }
0x1541   :  { %v2930_v62 = vmul.f32 %v5676_v61, %v2922_v27 }
0x159f   :  { %v2936_v41 = vpop.permute.xlu1 %2935 }
0x15a0   :  { %v2947_v63 = vmul.f32 %v5670_v58, %v2936_v41  ;;  %v2938_v40 = vpop.permute.xlu0 %2937 }
0x15a1   :  { %v2948_v2 = vmul.f32 %v5672_v1, %v2938_v40 }
0x15a2   :  { %2955 = vrot.lane.b32.xlu1 %v2947_v63, %s5983_s2 }
0x15a3   :  { %v2940_v4 = vpop.permute.xlu1 %2939  ;;  %2957 = vrot.lane.b32.xlu0 %v2948_v2, %s5983_s2 }
0x15a4   :  { %v2949_v53 = vmul.f32 %v5674_v48, %v2940_v4  ;;  %v2942_v49 = vpop.permute.xlu0 %2941  ;;  %v2995_v4 = vadd.f32 %v6341_v12, %v6507_v13 }
0x15a5   :  { %v2950_v34 = vmul.f32 %v5676_v61, %v2942_v49 }
0x15a6   :  { %2959 = vrot.lane.b32.xlu1 %v2949_v53, %s5983_s2 }
0x15a7   :  { %2961 = vrot.lane.b32.xlu0 %v2950_v34, %s5983_s2 }
0x1614   :  { %v2956_v11 = vpop.permute.xlu1 %2955 }
0x1615   :  { %v6522_v15 = vadd.f32 %v2956_v11, %v2927_v59  ;;  %v2958_v21 = vpop.permute.xlu0 %2957 }
0x1616   :  { %v6527_v28 = vadd.f32 %v2958_v21, %v2928_v18 }
0x1617   :  { %5677 = vtanh.f32 %v6522_v15 }
0x1618   :  { %v2960_v29 = vpop.permute.xlu1 %2959  ;;  %5679 = vtanh.f32 %v6527_v28 }
0x1619   :  { %v6529_v30 = vadd.f32 %v2960_v29, %v2929_v26  ;;  %v2962_v3 = vpop.permute.xlu0 %2961 }
0x161a   :  { %v6533_v31 = vadd.f32 %v2962_v3, %v2930_v62 }
0x161b   :  { %5681 = vtanh.f32 %v6529_v30 }
0x161c   :  { %5683 = vtanh.f32 %v6533_v31 }
0x1621   :  { %v5678_v9 = vpop.eup %5677 }
0x1622   :  { %2979 = vrot.lane.b32.xlu1 %v5678_v9, %s5983_s2  ;;  %v5680_v43 = vpop.eup %5679 }
0x1623   :  { %2981 = vrot.lane.b32.xlu0 %v5680_v43, %s5983_s2 }
0x1625   :  { %v5682_v6 = vpop.eup %5681 }
0x1626   :  { %2983 = vrot.lane.b32.xlu1 %v5682_v6, %s5983_s2  ;;  %v5684_v32 = vpop.eup %5683 }
0x1627   :  { %2985 = vrot.lane.b32.xlu0 %v5684_v32, %s5983_s2 }
0x1694   :  { %v2980_v36 = vpop.permute.xlu1 %2979 }
0x1695   :  { %v2991_v37 = vmul.f32 %v5670_v58, %v2980_v36  ;;  %v2982_v35 = vpop.permute.xlu0 %2981 }
0x1696   :  { %v2992_v42 = vmul.f32 %v5672_v1, %v2982_v35 }
0x1697   :  { %v3000_v23 = vrot.slane %v2991_v37, 3 }
0x1698   :  { %v2984_v47 = vpop.permute.xlu1 %2983  ;;  %v3001_v51 = vrot.slane %v2992_v42, 2  ;;  %v4918_v25 = vrot.slane %v2992_v42, 10 }
0x1699   :  { %v2993_v50 = vmul.f32 %v5674_v48, %v2984_v47  ;;  %v2986_v54 = vpop.permute.xlu0 %2985 }
0x169a   :  { %v3002_v57 = vsel %vm1834_vm3, %v3001_v51, %v3000_v23  ;;  %v4703_v41 = vsel %vm1834_vm3, %v4918_v25, %v3000_v23  ;;  %v2994_v63 = vmul.f32 %v5676_v61, %v2986_v54 }
0x169b   :  { %v3003_v33 = vrot.slane %v2993_v50, 1  ;;  %v4919_v55 = vrot.slane %v2993_v50, 9 }
0x169d   :  { %v3004_v40 = vsel %vm1837_vm4, %v3003_v33, %v3002_v57  ;;  %v4705_v2 = vsel %vm1837_vm4, %v4919_v55, %v4703_v41 }
0x169e   :  { %v3005_v58 = vsel %vm1840_vm5, %v2994_v63, %v3004_v40  ;;  %v6546_v1 = vsel %vm1840_vm5, %v2994_v63, %v4705_v2 }
0x169f   :  { %3006 = vrot.lane.b32.xlu1 %v3005_v58, %s5984_s23 }
0x1711   :  { %v3007_v48 = vpop.permute.xlu1 %3006 }
0x1712   :  { %5227 = vmatmul.mubr.msk.f32.vlgmr.msra.gmra.mrb[32].mxu1 %vm1557_vm7, %v3007_v48 }
0x1713   :  { %5415 = vmatpush3.bf16.msra.mxu1 %v6246_v7  ;;  %5237 = vmatprep.mubr.msk.f32.mxu1 %vm5980_vm1, %v5979_v0 }
0x1714   :  { %5416 = vmatprep.subr.bf16.mxu1 %v5982_v8 }
0x1717   :  { %5418 = vmatpush3.bf16.msra.mxu1 %v6254_v24 }
0x1718   :  { %5426 = vmatprep.subr.bf16.mxu1 %v6209_v56 }
0x171a   :  { %5238 = vmatmul.mubr.msk.f32.vlgmr.msra.gmra.mrb[34].mxu1 %vm1557_vm7, %v3007_v48 }
0x171b   :  { %5428 = vmatpush1.bf16.msra.mxu1 %v6219_v60  ;;  %3565 = vmatprep.mubr.f32.mxu1 %v5979_v0 }
0x171c   :  { %5430 = vmatprep.subr.bf16.mxu1 %v6234_v20 }
0x171f   :  { %5432 = vmatpush1.bf16.msra.mxu1 %v6240_v5 }
0x1720   :  { %5439 = vmatprep.subr.bf16.mxu1 %v5982_v8 }
0x17e5   :  { %v3076_v53 = vpop.f32.mrb[32].mxu1 }
0x17e6   :  { %v3080_v61 = vadd.f32 %v3076_v53, %v2995_v4  ;;  %v5228_v49 = vpop.f32.mrb[33].mxu1 }
0x17e8   :  { %5685 = vtanh.f32 %v3080_v61  ;;  %v4879_v11 = vmul.f32 -1.442695, %v3080_v61 }
0x17ea   :  { %5687 = vpow2.f32 %v4879_v11 }
0x17ed   :  { %v3260_v34 = vpop.f32.mrb[34].mxu1 }
0x17ee   :  { %v5239_v10 = vpop.f32.mrb[35].mxu1  ;;  %v3265_v35 = vrot.slane %v3260_v34, 4  ;;  %v3266_v42 = vrot.slane %v3260_v34, 5  ;;  %v3267_v23 = vrot.slane %v3260_v34, 6  ;;  %v3268_v47 = vrot.slane %v3260_v34, 7 }
0x17f2   :  { %v5686_v59 = vpop.eup %5685 }
0x17f3   :  { %3090 = vrot.lane.b32.xlu0 %v5686_v59, %s5983_s2 }
0x17f4   :  { %v5688_v14 = vpop.eup %5687 }
0x17f5   :  { %v3084_v17 = vadd.f32 1.0, %v5688_v14 }
0x17f7   :  { %5689 = vrcp.f32 %v3084_v17 }
0x1801   :  { %v5690_v18 = vpop.eup %5689 }
0x1802   :  { %v3088_v12 = vmul.f32 %v5690_v18, %v6493_v22 }
0x1865   :  { %v3091_v21 = vpop.permute.xlu0 %3090 }
0x1866   :  { %v3093_v26 = vmul.f32 %v5690_v18, %v3091_v21 }
0x1868   :  { %3095 = vrot.lane.b32.xlu1 %v3093_v26, %s5983_s2 }
0x18da   :  { %v3096_v13 = vpop.permute.xlu1 %3095 }
0x18db   :  { %v6567_v27 = vadd.f32 %v3096_v13, %v3088_v12 }
0x18dd   :  { %5691 = vtanh.f32 %v6567_v27 }
0x18e7   :  { %v5692_v29 = vpop.eup %5691 }
0x18e8   :  { %3101 = vrot.lane.b32.xlu0 %v5692_v29, %s5983_s2 }
0x195a   :  { %v3102_v62 = vpop.permute.xlu0 %3101 }
0x195b   :  { %v3104_v3 = vmul.f32 %v5690_v18, %v3102_v62 }
0x195d   :  { %3106 = vrot.lane.b32.xlu1 %v3104_v3, %s5984_s23 }
0x19cf   :  { %v3107_v9 = vpop.permute.xlu1 %3106 }
0x19d0   :  { %4777 = vst.msk [vmem:[#allocation9 + $0xc] sm:$0xf] %vm4754_vm6, %v3107_v9  ;;  %4880 = vmatmul.mubr.msk.f32.vlgmr.msra.gmra.mrb[34].mxu0 %vm1557_vm7, %v3107_v9 }
0x19d1   :  { %5421 = vmatpush3.bf16.msra.mxu0 %v6309_v52  ;;  %5248 = vmatprep.mubr.msk.f32.mxu0 %vm5980_vm1, %v5979_v0 }
0x19d2   :  { %5422 = vmatprep.subr.bf16.mxu0 %v5982_v8 }
0x19d5   :  { %5424 = vmatpush3.bf16.msra.mxu0 %v6312_v16 }
0x19d6   :  { %5433 = vmatprep.subr.bf16.mxu0 %v5982_v8 }
0x1aa3   :  { %v3176_v22 = vpop.f32.mrb[34].mxu0 }
0x1aa4   :  { %v3182_v43 = vrot.slane %v3176_v22, 4  ;;  %v3183_v6 = vrot.slane %v3176_v22, 5  ;;  %v3184_v32 = vrot.slane %v3176_v22, 6  ;;  %v3185_v36 = vrot.slane %v3176_v22, 7  ;;  %v6580_v37 = vpop.f32.mrb[35].mxu0 }
0x1aa6   :  { %v3190_v50 = vadd.f32 %v3182_v43, %v6278_v44  ;;  %v3191_v51 = vadd.f32 %v3183_v6, %v6280_v45  ;;  %v3192_v25 = vadd.f32 %v3184_v32, %v6282_v46  ;;  %v3193_v54 = vadd.f32 %v3185_v36, %v6274_v39 }
0x1aa7   :  { %v3309_v36 = vrot.slane %v6522_v15, 7 }
0x1aa8   :  { %v3273_v33 = vadd.f32 %v3265_v35, %v3190_v50  ;;  %v3274_v55 = vadd.f32 %v3266_v42, %v3191_v51  ;;  %v3275_v57 = vadd.f32 %v3267_v23, %v3192_v25  ;;  %v3276_v41 = vadd.f32 %v3268_v47, %v3193_v54 }
0x1aa9   :  { %v3310_v35 = vrot.slane %v6527_v28, 7  ;;  %v3311_v54 = vrot.slane %v6529_v30, 7 }
0x1aaa   :  { %5693 = vtanh.f32 %v3273_v33  ;;  %v4882_v48 = vmul.f32 -1.442695, %v3273_v33  ;;  %v4883_v4 = vmul.f32 -1.442695, %v3274_v55  ;;  %v4884_v53 = vmul.f32 -1.442695, %v3275_v57 }
0x1aab   :  { %5695 = vtanh.f32 %v3274_v55  ;;  %v4885_v61 = vmul.f32 -1.442695, %v3276_v41  ;;  %v3312_v33 = vrot.slane %v6533_v31, 7 }
0x1aac   :  { %5697 = vtanh.f32 %v3275_v57 }
0x1aad   :  { %5699 = vtanh.f32 %v3276_v41 }
0x1aae   :  { %5701 = vpow2.f32 %v4882_v48 }
0x1aaf   :  { %5703 = vpow2.f32 %v4883_v4 }
0x1ab0   :  { %5705 = vpow2.f32 %v4884_v53 }
0x1ab1   :  { %5707 = vpow2.f32 %v4885_v61 }
0x1ab4   :  { %v5694_v63 = vpop.eup %5693 }
0x1ab5   :  { %v5696_v40 = vpop.eup %5695  ;;  %3325 = vrot.lane.b32.xlu0 %v5694_v63, %s5983_s2 }
0x1ab6   :  { %3327 = vrot.lane.b32.xlu1 %v5696_v40, %s5983_s2  ;;  %v5698_v2 = vpop.eup %5697 }
0x1ab7   :  { %v5700_v58 = vpop.eup %5699 }
0x1ab8   :  { %v5702_v49 = vpop.eup %5701 }
0x1ab9   :  { %3329 = vrot.lane.b32.xlu0 %v5698_v2, %s5983_s2  ;;  %v5704_v34 = vpop.eup %5703  ;;  %v3289_v10 = vadd.f32 1.0, %v5702_v49 }
0x1aba   :  { %3331 = vrot.lane.b32.xlu1 %v5700_v58, %s5983_s2  ;;  %v3290_v59 = vadd.f32 1.0, %v5704_v34  ;;  %v5706_v11 = vpop.eup %5705 }
0x1abb   :  { %v5708_v14 = vpop.eup %5707  ;;  %5709 = vrcp.f32 %v3289_v10  ;;  %v3291_v17 = vadd.f32 1.0, %v5706_v11 }
0x1abc   :  { %5711 = vrcp.f32 %v3290_v59  ;;  %v3292_v18 = vadd.f32 1.0, %v5708_v14 }
0x1abd   :  { %5713 = vrcp.f32 %v3291_v17 }
0x1abe   :  { %5715 = vrcp.f32 %v3292_v18 }
0x1ac5   :  { %v5710_v21 = vpop.eup %5709 }
0x1ac6   :  { %v5712_v12 = vpop.eup %5711  ;;  %v3317_v42 = vmul.f32 %v5710_v21, %v3309_v36 }
0x1ac7   :  { %v5714_v3 = vpop.eup %5713  ;;  %v3318_v23 = vmul.f32 %v5712_v12, %v3310_v35 }
0x1ac8   :  { %v5716_v22 = vpop.eup %5715  ;;  %v3319_v55 = vmul.f32 %v5714_v3, %v3311_v54 }
0x1ac9   :  { %v3320_v15 = vmul.f32 %v5716_v22, %v3312_v33 }
0x1b27   :  { %v3326_v26 = vpop.permute.xlu0 %3325 }
0x1b28   :  { %v3328_v13 = vpop.permute.xlu1 %3327  ;;  %v3337_v29 = vmul.f32 %v5710_v21, %v3326_v26 }
0x1b29   :  { %v3338_v62 = vmul.f32 %v5712_v12, %v3328_v13 }
0x1b2a   :  { %3345 = vrot.lane.b32.xlu0 %v3337_v29, %s5983_s2 }
0x1b2b   :  { %3347 = vrot.lane.b32.xlu1 %v3338_v62, %s5983_s2  ;;  %v3330_v9 = vpop.permute.xlu0 %3329 }
0x1b2c   :  { %v3332_v43 = vpop.permute.xlu1 %3331  ;;  %v3339_v6 = vmul.f32 %v5714_v3, %v3330_v9 }
0x1b2d   :  { %v3340_v32 = vmul.f32 %v5716_v22, %v3332_v43 }
0x1b2e   :  { %3349 = vrot.lane.b32.xlu0 %v3339_v6, %s5983_s2 }
0x1b2f   :  { %3351 = vrot.lane.b32.xlu1 %v3340_v32, %s5983_s2 }
0x1b9c   :  { %v3346_v47 = vpop.permute.xlu0 %3345 }
0x1b9d   :  { %v3348_v50 = vpop.permute.xlu1 %3347  ;;  %v6596_v51 = vadd.f32 %v3346_v47, %v3317_v42 }
0x1b9e   :  { %v6598_v25 = vadd.f32 %v3348_v50, %v3318_v23 }
0x1b9f   :  { %5717 = vtanh.f32 %v6596_v51 }
0x1ba0   :  { %5719 = vtanh.f32 %v6598_v25  ;;  %v3350_v57 = vpop.permute.xlu0 %3349 }
0x1ba1   :  { %v3352_v28 = vpop.permute.xlu1 %3351  ;;  %v6604_v41 = vadd.f32 %v3350_v57, %v3319_v55 }
0x1ba2   :  { %v6606_v63 = vadd.f32 %v3352_v28, %v3320_v15 }
0x1ba3   :  { %5721 = vtanh.f32 %v6604_v41 }
0x1ba4   :  { %5723 = vtanh.f32 %v6606_v63 }
0x1ba9   :  { %v5718_v40 = vpop.eup %5717 }
0x1baa   :  { %v5720_v30 = vpop.eup %5719  ;;  %3369 = vrot.lane.b32.xlu0 %v5718_v40, %s5983_s2 }
0x1bab   :  { %3371 = vrot.lane.b32.xlu1 %v5720_v30, %s5983_s2 }
0x1bad   :  { %v5722_v31 = vpop.eup %5721 }
0x1bae   :  { %v5724_v2 = vpop.eup %5723  ;;  %3373 = vrot.lane.b32.xlu0 %v5722_v31, %s5983_s2 }
0x1baf   :  { %3375 = vrot.lane.b32.xlu1 %v5724_v2, %s5983_s2 }
0x1c1c   :  { %v3370_v58 = vpop.permute.xlu0 %3369 }
0x1c1d   :  { %v3372_v48 = vpop.permute.xlu1 %3371  ;;  %v3381_v4 = vmul.f32 %v5710_v21, %v3370_v58 }
0x1c1e   :  { %v3382_v53 = vmul.f32 %v5712_v12, %v3372_v48 }
0x1c1f   :  { %v3390_v61 = vrot.slane %v3381_v4, 4 }
0x1c20   :  { %v4921_v49 = vrot.slane %v3382_v53, 11  ;;  %v3391_v34 = vrot.slane %v3382_v53, 3  ;;  %v3374_v59 = vpop.permute.xlu0 %3373 }
0x1c21   :  { %v3376_v11 = vpop.permute.xlu1 %3375  ;;  %v3383_v14 = vmul.f32 %v5714_v3, %v3374_v59  ;;  %v6639_v3 = vld [vmem:[%s6892_s6] ss:$0 sm:$0xff]  ;;  %s5985_s6 = smov [#allocation8]  }
0x1c22   :  { %v4709_v10 = vsel %vm1834_vm3, %v4921_v49, %v3390_v61  ;;  %v3384_v17 = vmul.f32 %v5716_v22, %v3376_v11  ;;  %v3392_v13 = vsel %vm1834_vm3, %v3391_v34, %v3390_v61  ;;  %v3385_v22 = vadd.f32 %v6639_v3, %v6580_v37  ;;  %s4787_s25 = sshll.u32 %s5985_s6, 4  ;;  %s4788_s25 = int_to_ptr.vmem [resolvable:$true] %s4787_s25 }
0x1c23   :  { %v3393_v18 = vrot.slane %v3383_v14, 2  ;;  %v4922_v26 = vrot.slane %v3383_v14, 10  ;;  %s5920_s26 = scalar_lea.vmem %s4788_s25, 512  ;;  %p5925_p11 = scmp.lt.s32.totalorder %s4788_s25, %s4788_s25 }
0x1c24   :  { %v3395_v29 = vrot.slane %v3384_v17, 1  ;;  %v4923_v62 = vrot.slane %v3384_v17, 9  ;;  %p5921_p10 = scmp.ne.s32.totalorder %s4788_s25, %s5920_s26  ;;  %p5926_p12 = scmp.lt.s32.totalorder %s5920_s26, %s5920_s26 }
0x1c25   :  { %v3394_v9 = vsel %vm1837_vm4, %v3393_v18, %v3392_v13  ;;  %v4711_v21 = vsel %vm1837_vm4, %v4922_v26, %v4709_v10 }
0x1c26   :  { %v3396_v12 = vsel %vm1840_vm5, %v3395_v29, %v3394_v9  ;;  %v6620_v43 = vsel %vm1840_vm5, %v4923_v62, %v4711_v21  ;;  %p5927_p13 = por %p5926_p12, %p5925_p11 }
0x1c27   :  { %3397 = vrot.lane.b32.xlu0 %v3396_v12, %s5984_s23 }
0x1c28   :  { %p5928_p0 = pnand %p5927_p13, %p5921_p10 }
0x1c99   :  { %v3398_v6 = vpop.permute.xlu0 %3397 }
0x1c9a   :  { %5249 = vmatmul.mubr.msk.f32.vlgmr.msra.gmra.mrb[36].mxu0 %vm1557_vm7, %v3398_v6 }
0x1c9b   :  { %5435 = vmatpush3.bf16.msra.mxu0 %v6246_v7  ;;  %5259 = vmatprep.mubr.msk.f32.mxu0 %vm5980_vm1, %v5979_v0 }
0x1c9c   :  { %5436 = vmatprep.subr.bf16.mxu0 %v5982_v8 }
0x1c9f   :  { %5438 = vmatpush3.bf16.msra.mxu0 %v6254_v24 }
0x1ca0   :  { %5446 = vmatprep.subr.bf16.mxu0 %v6209_v56 }
0x1ca2   :  { %5260 = vmatmul.mubr.msk.f32.vlgmr.msra.gmra.mrb[38].mxu0 %vm1557_vm7, %v3398_v6 }
0x1ca3   :  { %5448 = vmatpush1.bf16.msra.mxu0 %v6219_v60  ;;  %3956 = vmatprep.mubr.f32.mxu0 %v5979_v0 }
0x1ca4   :  { %5450 = vmatprep.subr.bf16.mxu0 %v6234_v20 }
0x1ca7   :  { %5452 = vmatpush1.bf16.msra.mxu0 %v6240_v5 }
0x1ca8   :  { %5459 = vmatprep.subr.bf16.mxu0 %v5982_v8 }
0x1d6d   :  { %v3467_v32 = vpop.f32.mrb[36].mxu0 }
0x1d6e   :  { %v3471_v36 = vadd.f32 %v3467_v32, %v3385_v22  ;;  %v5250_v35 = vpop.f32.mrb[37].mxu0 }
0x1d70   :  { %5725 = vtanh.f32 %v3471_v36  ;;  %v4887_v50 = vmul.f32 -1.442695, %v3471_v36 }
0x1d72   :  { %5727 = vpow2.f32 %v4887_v50 }
0x1d75   :  { %v3651_v42 = vpop.f32.mrb[38].mxu0 }
0x1d76   :  { %v5261_v23 = vpop.f32.mrb[39].mxu0  ;;  %v3656_v34 = vrot.slane %v3651_v42, 3  ;;  %v3657_v10 = vrot.slane %v3651_v42, 4  ;;  %v3658_v59 = vrot.slane %v3651_v42, 5  ;;  %v3659_v11 = vrot.slane %v3651_v42, 6 }
0x1d7a   :  { %v5726_v47 = vpop.eup %5725 }
0x1d7b   :  { %3481 = vrot.lane.b32.xlu1 %v5726_v47, %s5983_s2 }
0x1d7c   :  { %v5728_v54 = vpop.eup %5727 }
0x1d7d   :  { %v3475_v33 = vadd.f32 1.0, %v5728_v54 }
0x1d7f   :  { %5729 = vrcp.f32 %v3475_v33 }
0x1d89   :  { %v5730_v55 = vpop.eup %5729 }
0x1d8a   :  { %v3479_v37 = vmul.f32 %v5730_v55, %v6567_v27 }
0x1ded   :  { %v3482_v15 = vpop.permute.xlu1 %3481 }
0x1dee   :  { %v3484_v57 = vmul.f32 %v5730_v55, %v3482_v15 }
0x1df0   :  { %3486 = vrot.lane.b32.xlu0 %v3484_v57, %s5983_s2 }
0x1e62   :  { %v3487_v28 = vpop.permute.xlu0 %3486 }
0x1e63   :  { %v6646_v40 = vadd.f32 %v3487_v28, %v3479_v37 }
0x1e65   :  { %5731 = vtanh.f32 %v6646_v40 }
0x1e6f   :  { %v5732_v30 = vpop.eup %5731 }
0x1e70   :  { %3492 = vrot.lane.b32.xlu1 %v5732_v30, %s5983_s2 }
0x1ee2   :  { %v3493_v31 = vpop.permute.xlu1 %3492 }
0x1ee3   :  { %v3495_v2 = vmul.f32 %v5730_v55, %v3493_v31 }
0x1ee5   :  { %3497 = vrot.lane.b32.xlu0 %v3495_v2, %s5984_s23 }
0x1f57   :  { %v3498_v58 = vpop.permute.xlu0 %3497 }
0x1f58   :  { %4778 = vst.msk [vmem:[#allocation9 + $0x10] sm:$0xf] %vm4754_vm6, %v3498_v58  ;;  %4888 = vmatmul.mubr.msk.f32.vlgmr.msra.gmra.mrb[36].mxu1 %vm1557_vm7, %v3498_v58 }
0x1f59   :  { %5441 = vmatpush3.bf16.msra.mxu1 %v6309_v52  ;;  %5270 = vmatprep.mubr.msk.f32.mxu1 %vm5980_vm1, %v5979_v0 }
0x1f5a   :  { %5442 = vmatprep.subr.bf16.mxu1 %v5982_v8 }
0x1f5d   :  { %5444 = vmatpush3.bf16.msra.mxu1 %v6312_v16 }
0x1f5e   :  { %5453 = vmatprep.subr.bf16.mxu1 %v5982_v8 }
0x202b   :  { %v3567_v27 = vpop.f32.mrb[36].mxu1 }
0x202c   :  { %v3573_v48 = vrot.slane %v3567_v27, 3  ;;  %v3574_v4 = vrot.slane %v3567_v27, 4  ;;  %v3575_v53 = vrot.slane %v3567_v27, 5  ;;  %v3576_v61 = vrot.slane %v3567_v27, 6  ;;  %v6659_v49 = vpop.f32.mrb[37].mxu1 }
0x202e   :  { %v3581_v14 = vadd.f32 %v3573_v48, %v6278_v44  ;;  %v3582_v17 = vadd.f32 %v3574_v4, %v6280_v45  ;;  %v3583_v18 = vadd.f32 %v3575_v53, %v6282_v46  ;;  %v3584_v26 = vadd.f32 %v3576_v61, %v6274_v39 }
0x2030   :  { %v3664_v13 = vadd.f32 %v3656_v34, %v3581_v14  ;;  %v3665_v29 = vadd.f32 %v3657_v10, %v3582_v17  ;;  %v3666_v62 = vadd.f32 %v3658_v59, %v3583_v18  ;;  %v3667_v9 = vadd.f32 %v3659_v11, %v3584_v26 }
0x2031   :  { %v3700_v10 = vrot.slane %v6596_v51, 7  ;;  %v3701_v59 = vrot.slane %v6598_v25, 7 }
0x2032   :  { %5733 = vtanh.f32 %v3664_v13  ;;  %v4890_v32 = vmul.f32 -1.442695, %v3664_v13  ;;  %v4891_v36 = vmul.f32 -1.442695, %v3665_v29  ;;  %v4892_v35 = vmul.f32 -1.442695, %v3666_v62 }
0x2033   :  { %5735 = vtanh.f32 %v3665_v29  ;;  %v4893_v42 = vmul.f32 -1.442695, %v3667_v9  ;;  %v3702_v29 = vrot.slane %v6604_v41, 7 }
0x2034   :  { %5737 = vtanh.f32 %v3666_v62  ;;  %v3703_v62 = vrot.slane %v6606_v63, 7 }
0x2035   :  { %5739 = vtanh.f32 %v3667_v9 }
0x2036   :  { %5741 = vpow2.f32 %v4890_v32 }
0x2037   :  { %5743 = vpow2.f32 %v4891_v36 }
0x2038   :  { %5745 = vpow2.f32 %v4892_v35 }
0x2039   :  { %5747 = vpow2.f32 %v4893_v42 }
0x203c   :  { %v5734_v21 = vpop.eup %5733 }
0x203d   :  { %v5736_v12 = vpop.eup %5735  ;;  %3716 = vrot.lane.b32.xlu1 %v5734_v21, %s5983_s2 }
0x203e   :  { %3718 = vrot.lane.b32.xlu0 %v5736_v12, %s5983_s2  ;;  %v5738_v6 = vpop.eup %5737 }
0x203f   :  { %v5740_v22 = vpop.eup %5739 }
0x2040   :  { %v5742_v23 = vpop.eup %5741 }
0x2041   :  { %3720 = vrot.lane.b32.xlu1 %v5738_v6, %s5983_s2  ;;  %v5744_v47 = vpop.eup %5743  ;;  %v3680_v50 = vadd.f32 1.0, %v5742_v23 }
0x2042   :  { %3722 = vrot.lane.b32.xlu0 %v5740_v22, %s5983_s2  ;;  %v3681_v54 = vadd.f32 1.0, %v5744_v47  ;;  %v5746_v33 = vpop.eup %5745 }
0x2043   :  { %v5748_v55 = vpop.eup %5747  ;;  %5749 = vrcp.f32 %v3680_v50  ;;  %v3682_v15 = vadd.f32 1.0, %v5746_v33 }
0x2044   :  { %5751 = vrcp.f32 %v3681_v54  ;;  %v3683_v57 = vadd.f32 1.0, %v5748_v55 }
0x2045   :  { %5753 = vrcp.f32 %v3682_v15 }
0x2046   :  { %5755 = vrcp.f32 %v3683_v57 }
0x204d   :  { %v5750_v37 = vpop.eup %5749 }
0x204e   :  { %v5752_v30 = vpop.eup %5751  ;;  %v3708_v11 = vmul.f32 %v5750_v37, %v3700_v10 }
0x204f   :  { %v5754_v27 = vpop.eup %5753  ;;  %v3709_v14 = vmul.f32 %v5752_v30, %v3701_v59 }
0x2050   :  { %v5756_v4 = vpop.eup %5755  ;;  %v3710_v9 = vmul.f32 %v5754_v27, %v3702_v29 }
0x2051   :  { %v3711_v51 = vmul.f32 %v5756_v4, %v3703_v62 }
0x20af   :  { %v3717_v28 = vpop.permute.xlu1 %3716 }
0x20b0   :  { %v3719_v31 = vpop.permute.xlu0 %3718  ;;  %v3728_v2 = vmul.f32 %v5750_v37, %v3717_v28 }
0x20b1   :  { %v3729_v58 = vmul.f32 %v5752_v30, %v3719_v31 }
0x20b2   :  { %3736 = vrot.lane.b32.xlu1 %v3728_v2, %s5983_s2 }
0x20b3   :  { %3738 = vrot.lane.b32.xlu0 %v3729_v58, %s5983_s2  ;;  %v3721_v48 = vpop.permute.xlu1 %3720 }
0x20b4   :  { %v3723_v53 = vpop.permute.xlu0 %3722  ;;  %v3730_v61 = vmul.f32 %v5754_v27, %v3721_v48 }
0x20b5   :  { %v3731_v34 = vmul.f32 %v5756_v4, %v3723_v53 }
0x20b6   :  { %3740 = vrot.lane.b32.xlu1 %v3730_v61, %s5983_s2 }
0x20b7   :  { %3742 = vrot.lane.b32.xlu0 %v3731_v34, %s5983_s2 }
0x2124   :  { %v3737_v17 = vpop.permute.xlu1 %3736 }
0x2125   :  { %v3739_v18 = vpop.permute.xlu0 %3738  ;;  %v6675_v26 = vadd.f32 %v3737_v17, %v3708_v11 }
0x2126   :  { %v6677_v13 = vadd.f32 %v3739_v18, %v3709_v14 }
0x2127   :  { %5757 = vtanh.f32 %v6675_v26 }
0x2128   :  { %5759 = vtanh.f32 %v6677_v13  ;;  %v3741_v21 = vpop.permute.xlu1 %3740 }
0x2129   :  { %v3743_v25 = vpop.permute.xlu0 %3742  ;;  %v6683_v12 = vadd.f32 %v3741_v21, %v3710_v9 }
0x212a   :  { %v6685_v6 = vadd.f32 %v3743_v25, %v3711_v51 }
0x212b   :  { %5761 = vtanh.f32 %v6683_v12 }
0x212c   :  { %5763 = vtanh.f32 %v6685_v6 }
0x2131   :  { %v5758_v22 = vpop.eup %5757 }
0x2132   :  { %v5760_v41 = vpop.eup %5759  ;;  %3760 = vrot.lane.b32.xlu1 %v5758_v22, %s5983_s2 }
0x2133   :  { %3762 = vrot.lane.b32.xlu0 %v5760_v41, %s5983_s2 }
0x2135   :  { %v5762_v63 = vpop.eup %5761 }
0x2136   :  { %v5764_v32 = vpop.eup %5763  ;;  %3764 = vrot.lane.b32.xlu1 %v5762_v63, %s5983_s2 }
0x2137   :  { %3766 = vrot.lane.b32.xlu0 %v5764_v32, %s5983_s2 }
0x21a4   :  { %v3761_v36 = vpop.permute.xlu1 %3760 }
0x21a5   :  { %v3763_v35 = vpop.permute.xlu0 %3762  ;;  %v3772_v42 = vmul.f32 %v5750_v37, %v3761_v36 }
0x21a6   :  { %v3773_v23 = vmul.f32 %v5752_v30, %v3763_v35 }
0x21a7   :  { %v3781_v47 = vrot.slane %v3772_v42, 5 }
0x21a8   :  { %v4924_v50 = vrot.slane %v3773_v23, 12  ;;  %v3782_v54 = vrot.slane %v3773_v23, 4  ;;  %v3765_v55 = vpop.permute.xlu1 %3764 }
0x21a9   :  { %v3767_v15 = vpop.permute.xlu0 %3766  ;;  %v3774_v57 = vmul.f32 %v5754_v27, %v3765_v55  ;;  %v3776_v27 = vadd.f32 %v6639_v3, %v6659_v49 }
0x21aa   :  { %v4715_v33 = vsel %vm1834_vm3, %v4924_v50, %v3781_v47  ;;  %v3775_v28 = vmul.f32 %v5756_v4, %v3767_v15  ;;  %v3783_v58 = vsel %vm1834_vm3, %v3782_v54, %v3781_v47 }
0x21ab   :  { %v3784_v31 = vrot.slane %v3774_v57, 3  ;;  %v4925_v2 = vrot.slane %v3774_v57, 11 }
0x21ac   :  { %v3786_v48 = vrot.slane %v3775_v28, 2  ;;  %v4926_v53 = vrot.slane %v3775_v28, 10 }
0x21ad   :  { %v3785_v61 = vsel %vm1837_vm4, %v3784_v31, %v3783_v58  ;;  %v4717_v37 = vsel %vm1837_vm4, %v4925_v2, %v4715_v33 }
0x21ae   :  { %v3787_v30 = vsel %vm1840_vm5, %v3786_v48, %v3785_v61  ;;  %v6699_v34 = vsel %vm1840_vm5, %v4926_v53, %v4717_v37 }
0x21af   :  { %3788 = vrot.lane.b32.xlu1 %v3787_v30, %s5984_s23 }
0x2221   :  { %v3789_v10 = vpop.permute.xlu1 %3788 }
0x2222   :  { %5271 = vmatmul.mubr.msk.f32.vlgmr.msra.gmra.mrb[38].mxu1 %vm1557_vm7, %v3789_v10 }
0x2223   :  { %5455 = vmatpush3.bf16.msra.mxu1 %v6246_v7  ;;  %5281 = vmatprep.mubr.msk.f32.mxu1 %vm5980_vm1, %v5979_v0 }
0x2224   :  { %5456 = vmatprep.subr.bf16.mxu1 %v5982_v8 }
0x2227   :  { %5458 = vmatpush3.bf16.msra.mxu1 %v6254_v24 }
0x2228   :  { %5466 = vmatprep.subr.bf16.mxu1 %v6209_v56 }
0x222a   :  { %5282 = vmatmul.mubr.msk.f32.vlgmr.msra.gmra.mrb[40].mxu1 %vm1557_vm7, %v3789_v10 }
0x222b   :  { %5468 = vmatpush1.bf16.msra.mxu1 %v6219_v60  ;;  %4347 = vmatprep.mubr.f32.mxu1 %v5979_v0 }
0x222c   :  { %5470 = vmatprep.subr.bf16.mxu1 %v6234_v20 }
0x222f   :  { %5472 = vmatpush1.bf16.msra.mxu1 %v6240_v5 }
0x2230   :  { %5479 = vmatprep.subr.bf16.mxu1 %v5982_v8 }
0x22f5   :  { %v3858_v4 = vpop.f32.mrb[38].mxu1 }
0x22f6   :  { %v3862_v59 = vadd.f32 %v3858_v4, %v3776_v27  ;;  %v5272_v11 = vpop.f32.mrb[39].mxu1 }
0x22f8   :  { %5765 = vtanh.f32 %v3862_v59  ;;  %v4895_v60 = vmul.f32 -1.442695, %v3862_v59 }
0x22fa   :  { %5767 = vpow2.f32 %v4895_v60 }
0x22fd   :  { %v4042_v56 = vpop.f32.mrb[40].mxu1 }
0x22fe   :  { %v5283_v14 = vpop.f32.mrb[41].mxu1  ;;  %v4047_v23 = vrot.slane %v4042_v56, 2  ;;  %v4048_v47 = vrot.slane %v4042_v56, 3  ;;  %v4049_v50 = vrot.slane %v4042_v56, 4  ;;  %v4050_v54 = vrot.slane %v4042_v56, 5 }
0x2302   :  { %v5766_v17 = vpop.eup %5765 }
0x2303   :  { %3872 = vrot.lane.b32.xlu0 %v5766_v17, %s5983_s2 }
0x2304   :  { %v5768_v18 = vpop.eup %5767 }
0x2305   :  { %v3866_v20 = vadd.f32 1.0, %v5768_v18 }
0x2307   :  { %5769 = vrcp.f32 %v3866_v20 }
0x2311   :  { %v5770_v5 = vpop.eup %5769 }
0x2312   :  { %v3870_v49 = vmul.f32 %v5770_v5, %v6646_v40 }
0x2375   :  { %v3873_v29 = vpop.permute.xlu0 %3872 }
0x2376   :  { %v3875_v62 = vmul.f32 %v5770_v5, %v3873_v29 }
0x2378   :  { %3877 = vrot.lane.b32.xlu1 %v3875_v62, %s5983_s2 }
0x23ea   :  { %v3878_v9 = vpop.permute.xlu1 %3877 }
0x23eb   :  { %v6720_v51 = vadd.f32 %v3878_v9, %v3870_v49 }
0x23ed   :  { %5771 = vtanh.f32 %v6720_v51 }
0x23f7   :  { %v5772_v21 = vpop.eup %5771 }
0x23f8   :  { %3883 = vrot.lane.b32.xlu0 %v5772_v21, %s5983_s2 }
0x246a   :  { %v3884_v25 = vpop.permute.xlu0 %3883 }
0x246b   :  { %v3886_v22 = vmul.f32 %v5770_v5, %v3884_v25 }
0x246d   :  { %3888 = vrot.lane.b32.xlu1 %v3886_v22, %s5984_s23 }
0x24df   :  { %v3889_v41 = vpop.permute.xlu1 %3888 }
0x24e0   :  { %4779 = vst.msk [vmem:[#allocation9 + $0x14] sm:$0xf] %vm4754_vm6, %v3889_v41  ;;  %4896 = vmatmul.mubr.msk.f32.vlgmr.msra.gmra.mrb[40].mxu0 %vm1557_vm7, %v3889_v41 }
0x24e1   :  { %5461 = vmatpush3.bf16.msra.mxu0 %v6309_v52  ;;  %5292 = vmatprep.mubr.msk.f32.mxu0 %vm5980_vm1, %v5979_v0 }
0x24e2   :  { %5462 = vmatprep.subr.bf16.mxu0 %v5982_v8 }
0x24e5   :  { %5464 = vmatpush3.bf16.msra.mxu0 %v6312_v16 }
0x24e6   :  { %5473 = vmatprep.subr.bf16.mxu0 %v5982_v8 }
0x25b3   :  { %v3958_v40 = vpop.f32.mrb[40].mxu0 }
0x25b4   :  { %v3964_v63 = vrot.slane %v3958_v40, 2  ;;  %v3965_v32 = vrot.slane %v3958_v40, 3  ;;  %v3966_v36 = vrot.slane %v3958_v40, 4  ;;  %v3967_v35 = vrot.slane %v3958_v40, 5  ;;  %v6733_v42 = vpop.f32.mrb[41].mxu0 }
0x25b6   :  { %v3972_v33 = vadd.f32 %v3964_v63, %v6278_v44  ;;  %v3973_v55 = vadd.f32 %v3965_v32, %v6280_v45  ;;  %v3974_v15 = vadd.f32 %v3966_v36, %v6282_v46  ;;  %v3975_v57 = vadd.f32 %v3967_v35, %v6274_v39 }
0x25b7   :  { %v4091_v36 = vrot.slane %v6675_v26, 7  ;;  %v4092_v35 = vrot.slane %v6677_v13, 7 }
0x25b8   :  { %v4055_v28 = vadd.f32 %v4047_v23, %v3972_v33  ;;  %v4056_v31 = vadd.f32 %v4048_v47, %v3973_v55  ;;  %v4057_v2 = vadd.f32 %v4049_v50, %v3974_v15  ;;  %v4058_v58 = vadd.f32 %v4050_v54, %v3975_v57 }
0x25b9   :  { %v4093_v15 = vrot.slane %v6683_v12, 7  ;;  %v4094_v57 = vrot.slane %v6685_v6, 7 }
0x25ba   :  { %5773 = vtanh.f32 %v4055_v28  ;;  %v4898_v30 = vmul.f32 -1.442695, %v4055_v28  ;;  %v4899_v10 = vmul.f32 -1.442695, %v4056_v31  ;;  %v4900_v27 = vmul.f32 -1.442695, %v4057_v2 }
0x25bb   :  { %5775 = vtanh.f32 %v4056_v31  ;;  %v4901_v4 = vmul.f32 -1.442695, %v4058_v58 }
0x25bc   :  { %5777 = vtanh.f32 %v4057_v2 }
0x25bd   :  { %5779 = vtanh.f32 %v4058_v58 }
0x25be   :  { %5781 = vpow2.f32 %v4898_v30 }
0x25bf   :  { %5783 = vpow2.f32 %v4899_v10 }
0x25c0   :  { %5785 = vpow2.f32 %v4900_v27 }
0x25c1   :  { %5787 = vpow2.f32 %v4901_v4 }
0x25c4   :  { %v5774_v48 = vpop.eup %5773 }
0x25c5   :  { %v5776_v53 = vpop.eup %5775  ;;  %4107 = vrot.lane.b32.xlu0 %v5774_v48, %s5983_s2 }
0x25c6   :  { %4109 = vrot.lane.b32.xlu1 %v5776_v53, %s5983_s2  ;;  %v5778_v61 = vpop.eup %5777 }
0x25c7   :  { %v5780_v37 = vpop.eup %5779 }
0x25c8   :  { %v5782_v59 = vpop.eup %5781 }
0x25c9   :  { %4111 = vrot.lane.b32.xlu0 %v5778_v61, %s5983_s2  ;;  %v5784_v11 = vpop.eup %5783  ;;  %v4071_v56 = vadd.f32 1.0, %v5782_v59 }
0x25ca   :  { %4113 = vrot.lane.b32.xlu1 %v5780_v37, %s5983_s2  ;;  %v4072_v14 = vadd.f32 1.0, %v5784_v11  ;;  %v5786_v17 = vpop.eup %5785 }
0x25cb   :  { %v5788_v60 = vpop.eup %5787  ;;  %5789 = vrcp.f32 %v4071_v56  ;;  %v4073_v18 = vadd.f32 1.0, %v5786_v17 }
0x25cc   :  { %5791 = vrcp.f32 %v4072_v14  ;;  %v4074_v20 = vadd.f32 1.0, %v5788_v60 }
0x25cd   :  { %5793 = vrcp.f32 %v4073_v18 }
0x25ce   :  { %5795 = vrcp.f32 %v4074_v20 }
0x25d5   :  { %v5790_v5 = vpop.eup %5789 }
0x25d6   :  { %v5792_v62 = vpop.eup %5791  ;;  %v4099_v23 = vmul.f32 %v5790_v5, %v4091_v36 }
0x25d7   :  { %v5794_v25 = vpop.eup %5793  ;;  %v4100_v47 = vmul.f32 %v5792_v62, %v4092_v35 }
0x25d8   :  { %v5796_v41 = vpop.eup %5795  ;;  %v4101_v28 = vmul.f32 %v5794_v25, %v4093_v15 }
0x25d9   :  { %v4102_v26 = vmul.f32 %v5796_v41, %v4094_v57 }
0x2637   :  { %v4108_v29 = vpop.permute.xlu0 %4107 }
0x2638   :  { %v4110_v49 = vpop.permute.xlu1 %4109  ;;  %v4119_v9 = vmul.f32 %v5790_v5, %v4108_v29 }
0x2639   :  { %v4120_v21 = vmul.f32 %v5792_v62, %v4110_v49 }
0x263a   :  { %4127 = vrot.lane.b32.xlu0 %v4119_v9, %s5983_s2 }
0x263b   :  { %4129 = vrot.lane.b32.xlu1 %v4120_v21, %s5983_s2  ;;  %v4112_v22 = vpop.permute.xlu0 %4111 }
0x263c   :  { %v4114_v40 = vpop.permute.xlu1 %4113  ;;  %v4121_v63 = vmul.f32 %v5794_v25, %v4112_v22 }
0x263d   :  { %v4122_v32 = vmul.f32 %v5796_v41, %v4114_v40 }
0x263e   :  { %4131 = vrot.lane.b32.xlu0 %v4121_v63, %s5983_s2 }
0x263f   :  { %4133 = vrot.lane.b32.xlu1 %v4122_v32, %s5983_s2 }
0x26ac   :  { %v4128_v50 = vpop.permute.xlu0 %4127 }
0x26ad   :  { %v4130_v54 = vpop.permute.xlu1 %4129  ;;  %v6749_v33 = vadd.f32 %v4128_v50, %v4099_v23 }
0x26ae   :  { %v6751_v55 = vadd.f32 %v4130_v54, %v4100_v47 }
0x26af   :  { %5797 = vtanh.f32 %v6749_v33 }
0x26b0   :  { %5799 = vtanh.f32 %v6751_v55  ;;  %v4132_v31 = vpop.permute.xlu0 %4131 }
0x26b1   :  { %v4134_v13 = vpop.permute.xlu1 %4133  ;;  %v6757_v2 = vadd.f32 %v4132_v31, %v4101_v28 }
0x26b2   :  { %v6759_v58 = vadd.f32 %v4134_v13, %v4102_v26 }
0x26b3   :  { %5801 = vtanh.f32 %v6757_v2 }
0x26b4   :  { %5803 = vtanh.f32 %v6759_v58 }
0x26b9   :  { %v5798_v48 = vpop.eup %5797 }
0x26ba   :  { %v5800_v12 = vpop.eup %5799  ;;  %4151 = vrot.lane.b32.xlu0 %v5798_v48, %s5983_s2 }
0x26bb   :  { %4153 = vrot.lane.b32.xlu1 %v5800_v12, %s5983_s2 }
0x26bd   :  { %v5802_v6 = vpop.eup %5801 }
0x26be   :  { %v5804_v53 = vpop.eup %5803  ;;  %4155 = vrot.lane.b32.xlu0 %v5802_v6, %s5983_s2 }
0x26bf   :  { %4157 = vrot.lane.b32.xlu1 %v5804_v53, %s5983_s2 }
0x272c   :  { %v4152_v61 = vpop.permute.xlu0 %4151 }
0x272d   :  { %v4154_v37 = vpop.permute.xlu1 %4153  ;;  %v4163_v30 = vmul.f32 %v5790_v5, %v4152_v61 }
0x272e   :  { %v4164_v10 = vmul.f32 %v5792_v62, %v4154_v37 }
0x272f   :  { %v4172_v27 = vrot.slane %v4163_v30, 6 }
0x2730   :  { %v4927_v4 = vrot.slane %v4164_v10, 13  ;;  %v4173_v59 = vrot.slane %v4164_v10, 5  ;;  %v4156_v56 = vpop.permute.xlu0 %4155 }
0x2731   :  { %v4158_v14 = vpop.permute.xlu1 %4157  ;;  %v4165_v17 = vmul.f32 %v5794_v25, %v4156_v56  ;;  %v4167_v25 = vadd.f32 %v6639_v3, %v6733_v42 }
0x2732   :  { %v4721_v11 = vsel %vm1834_vm3, %v4927_v4, %v4172_v27  ;;  %v4166_v60 = vmul.f32 %v5796_v41, %v4158_v14  ;;  %v4174_v29 = vsel %vm1834_vm3, %v4173_v59, %v4172_v27 }
0x2733   :  { %v4175_v18 = vrot.slane %v4165_v17, 4  ;;  %v4928_v20 = vrot.slane %v4165_v17, 12 }
0x2734   :  { %v4177_v49 = vrot.slane %v4166_v60, 3  ;;  %v4929_v9 = vrot.slane %v4166_v60, 11 }
0x2735   :  { %v4176_v21 = vsel %vm1837_vm4, %v4175_v18, %v4174_v29  ;;  %v4723_v5 = vsel %vm1837_vm4, %v4928_v20, %v4721_v11 }
0x2736   :  { %v4178_v62 = vsel %vm1840_vm5, %v4177_v49, %v4176_v21  ;;  %v6773_v22 = vsel %vm1840_vm5, %v4929_v9, %v4723_v5 }
0x2737   :  { %4179 = vrot.lane.b32.xlu0 %v4178_v62, %s5984_s23 }
0x27a9   :  { %v4180_v40 = vpop.permute.xlu0 %4179 }
0x27aa   :  { %5293 = vmatmul.mubr.msk.f32.vlgmr.msra.gmra.mrb[42].mxu0 %vm1557_vm7, %v4180_v40 }
0x27ab   :  { %5475 = vmatpush3.bf16.msra.mxu0 %v6246_v7  ;;  %5303 = vmatprep.mubr.msk.f32.mxu0 %vm5980_vm1, %v5979_v0 }
0x27ac   :  { %5476 = vmatprep.subr.bf16.mxu0 %v5982_v8 }
0x27af   :  { %5478 = vmatpush3.bf16.msra.mxu0 %v6254_v24 }
0x27b2   :  { %5304 = vmatmul.mubr.msk.f32.vlgmr.msra.gmra.mrb[44].mxu0 %vm1557_vm7, %v4180_v40 }
0x287d   :  { %v4249_v41 = vpop.f32.mrb[42].mxu0 }
0x287e   :  { %v4253_v63 = vadd.f32 %v4249_v41, %v4167_v25  ;;  %v5294_v32 = vpop.f32.mrb[43].mxu0 }
0x2880   :  { %5805 = vtanh.f32 %v4253_v63  ;;  %v4903_v7 = vmul.f32 -1.442695, %v4253_v63 }
0x2882   :  { %5807 = vpow2.f32 %v4903_v7 }
0x2885   :  { %v4433_v36 = vpop.f32.mrb[44].mxu0 }
0x2886   :  { %v5305_v35 = vpop.f32.mrb[45].mxu0  ;;  %v4438_v30 = vrot.slane %v4433_v36, 1  ;;  %v4439_v10 = vrot.slane %v4433_v36, 2  ;;  %v4440_v27 = vrot.slane %v4433_v36, 3  ;;  %v4441_v4 = vrot.slane %v4433_v36, 4 }
0x288a   :  { %v5806_v23 = vpop.eup %5805 }
0x288b   :  { %4263 = vrot.lane.b32.xlu1 %v5806_v23, %s5983_s2 }
0x288c   :  { %v5808_v47 = vpop.eup %5807 }
0x288d   :  { %v4257_v50 = vadd.f32 1.0, %v5808_v47 }
0x288f   :  { %5809 = vrcp.f32 %v4257_v50 }
0x2899   :  { %v5810_v24 = vpop.eup %5809 }
0x289a   :  { %v4261_v42 = vmul.f32 %v5810_v24, %v6720_v51 }
0x28fd   :  { %v4264_v54 = vpop.permute.xlu1 %4263 }
0x28fe   :  { %v4266_v15 = vmul.f32 %v5810_v24, %v4264_v54 }
0x2900   :  { %4268 = vrot.lane.b32.xlu0 %v4266_v15, %s5983_s2 }
0x2972   :  { %v4269_v57 = vpop.permute.xlu0 %4268 }
0x2973   :  { %v6788_v28 = vadd.f32 %v4269_v57, %v4261_v42  ;;  %v4482_v42 = vrot.slane %v6749_v33, 7  ;;  %v4483_v57 = vrot.slane %v6751_v55, 7 }
0x2975   :  { %5811 = vtanh.f32 %v6788_v28 }
0x297f   :  { %v5812_v26 = vpop.eup %5811 }
0x2980   :  { %4274 = vrot.lane.b32.xlu1 %v5812_v26, %s5983_s2 }
0x29f2   :  { %v4275_v31 = vpop.permute.xlu1 %4274 }
0x29f3   :  { %v4277_v13 = vmul.f32 %v5810_v24, %v4275_v31 }
0x29f5   :  { %4279 = vrot.lane.b32.xlu0 %v4277_v13, %s5984_s23 }
0x2a67   :  { %v4280_v48 = vpop.permute.xlu0 %4279 }
0x2a68   :  { %4780 = vst.msk [vmem:[#allocation9 + $0x18] sm:$0xf] %vm4754_vm6, %v4280_v48  ;;  %4904 = vmatmul.mubr.msk.f32.vlgmr.msra.gmra.mrb[42].mxu1 %vm1557_vm7, %v4280_v48 }
0x2a69   :  { %5481 = vmatpush3.bf16.msra.mxu1 %v6309_v52  ;;  %5314 = vmatprep.mubr.msk.f32.mxu1 %vm5980_vm1, %v5979_v0 }
0x2a6a   :  { %5482 = vmatprep.subr.bf16.mxu1 %v5982_v8 }
0x2a6d   :  { %5484 = vmatpush3.bf16.msra.mxu1 %v6312_v16 }
0x2b3b   :  { %v4349_v51 = vpop.f32.mrb[42].mxu1 }
0x2b3c   :  { %v4355_v12 = vrot.slane %v4349_v51, 1  ;;  %v4356_v6 = vrot.slane %v4349_v51, 2  ;;  %v4357_v53 = vrot.slane %v4349_v51, 3  ;;  %v4358_v61 = vrot.slane %v4349_v51, 4  ;;  %v6800_v37 = vpop.f32.mrb[43].mxu1 }
0x2b3e   :  { %v4363_v52 = vadd.f32 %v4355_v12, %v6278_v44  ;;  %v4364_v59 = vadd.f32 %v4356_v6, %v6280_v45  ;;  %v4365_v0 = vadd.f32 %v4357_v53, %v6282_v46  ;;  %v4366_v8 = vadd.f32 %v4358_v61, %v6274_v39 }
0x2b3f   :  { %v4484_v6 = vrot.slane %v6757_v2, 7  ;;  %v4485_v53 = vrot.slane %v6759_v58, 7 }
0x2b40   :  { %v4446_v16 = vadd.f32 %v4438_v30, %v4363_v52  ;;  %v4447_v11 = vadd.f32 %v4439_v10, %v4364_v59  ;;  %v4448_v56 = vadd.f32 %v4440_v27, %v4365_v0  ;;  %v4449_v14 = vadd.f32 %v4441_v4, %v4366_v8 }
0x2b42   :  { %5813 = vtanh.f32 %v4446_v16  ;;  %v4906_v39 = vmul.f32 -1.442695, %v4446_v16  ;;  %v4907_v46 = vmul.f32 -1.442695, %v4447_v11  ;;  %v4908_v18 = vmul.f32 -1.442695, %v4448_v56 }
0x2b43   :  { %5815 = vtanh.f32 %v4447_v11  ;;  %v4909_v20 = vmul.f32 -1.442695, %v4449_v14 }
0x2b44   :  { %5817 = vtanh.f32 %v4448_v56 }
0x2b45   :  { %5819 = vtanh.f32 %v4449_v14 }
0x2b46   :  { %5821 = vpow2.f32 %v4906_v39 }
0x2b47   :  { %5823 = vpow2.f32 %v4907_v46 }
0x2b48   :  { %5825 = vpow2.f32 %v4908_v18 }
0x2b49   :  { %5827 = vpow2.f32 %v4909_v20 }
0x2b4c   :  { %v5814_v17 = vpop.eup %5813 }
0x2b4d   :  { %v5816_v60 = vpop.eup %5815  ;;  %4498 = vrot.lane.b32.xlu1 %v5814_v17, %s5983_s2 }
0x2b4e   :  { %4500 = vrot.lane.b32.xlu0 %v5816_v60, %s5983_s2  ;;  %v5818_v44 = vpop.eup %5817 }
0x2b4f   :  { %v5820_v45 = vpop.eup %5819 }
0x2b50   :  { %v5822_v29 = vpop.eup %5821 }
0x2b51   :  { %4502 = vrot.lane.b32.xlu1 %v5818_v44, %s5983_s2  ;;  %v5824_v49 = vpop.eup %5823  ;;  %v4462_v9 = vadd.f32 1.0, %v5822_v29 }
0x2b52   :  { %4504 = vrot.lane.b32.xlu0 %v5820_v45, %s5983_s2  ;;  %v4463_v21 = vadd.f32 1.0, %v5824_v49  ;;  %v5826_v5 = vpop.eup %5825 }
0x2b53   :  { %v5828_v62 = vpop.eup %5827  ;;  %5829 = vrcp.f32 %v4462_v9  ;;  %v4464_v40 = vadd.f32 1.0, %v5826_v5 }
0x2b54   :  { %5831 = vrcp.f32 %v4463_v21  ;;  %v4465_v25 = vadd.f32 1.0, %v5828_v62 }
0x2b55   :  { %5833 = vrcp.f32 %v4464_v40 }
0x2b56   :  { %5835 = vrcp.f32 %v4465_v25  ;;  %v4558_v25 = vadd.f32 %v6639_v3, %v6800_v37 }
0x2b5d   :  { %v5830_v41 = vpop.eup %5829 }
0x2b5e   :  { %v5832_v32 = vpop.eup %5831  ;;  %v4490_v26 = vmul.f32 %v5830_v41, %v4482_v42 }
0x2b5f   :  { %v5834_v7 = vpop.eup %5833  ;;  %v4491_v31 = vmul.f32 %v5832_v32, %v4483_v57 }
0x2b60   :  { %v5836_v50 = vpop.eup %5835  ;;  %v4492_v61 = vmul.f32 %v5834_v7, %v4484_v6 }
0x2b61   :  { %v4493_v30 = vmul.f32 %v5836_v50, %v4485_v53 }
0x2bbf   :  { %v4499_v63 = vpop.permute.xlu1 %4498 }
0x2bc0   :  { %v4501_v36 = vpop.permute.xlu0 %4500  ;;  %v4510_v35 = vmul.f32 %v5830_v41, %v4499_v63 }
0x2bc1   :  { %v4511_v23 = vmul.f32 %v5832_v32, %v4501_v36 }
0x2bc2   :  { %4518 = vrot.lane.b32.xlu1 %v4510_v35, %s5983_s2 }
0x2bc3   :  { %4520 = vrot.lane.b32.xlu0 %v4511_v23, %s5983_s2  ;;  %v4503_v47 = vpop.permute.xlu1 %4502 }
0x2bc4   :  { %v4505_v24 = vpop.permute.xlu0 %4504  ;;  %v4512_v54 = vmul.f32 %v5834_v7, %v4503_v47 }
0x2bc5   :  { %v4513_v15 = vmul.f32 %v5836_v50, %v4505_v24 }
0x2bc6   :  { %4522 = vrot.lane.b32.xlu1 %v4512_v54, %s5983_s2 }
0x2bc7   :  { %4524 = vrot.lane.b32.xlu0 %v4513_v15, %s5983_s2 }
0x2c34   :  { %v4519_v13 = vpop.permute.xlu1 %4518 }
0x2c35   :  { %v4521_v48 = vpop.permute.xlu0 %4520  ;;  %v4530_v51 = vadd.f32 %v4519_v13, %v4490_v26 }
0x2c36   :  { %v4531_v12 = vadd.f32 %v4521_v48, %v4491_v31 }
0x2c37   :  { %5837 = vtanh.f32 %v4530_v51 }
0x2c38   :  { %5839 = vtanh.f32 %v4531_v12  ;;  %v4523_v10 = vpop.permute.xlu1 %4522 }
0x2c39   :  { %v4525_v27 = vpop.permute.xlu0 %4524  ;;  %v4532_v4 = vadd.f32 %v4523_v10, %v4492_v61 }
0x2c3a   :  { %v4533_v33 = vadd.f32 %v4525_v27, %v4493_v30 }
0x2c3b   :  { %5841 = vtanh.f32 %v4532_v4 }
0x2c3c   :  { %5843 = vtanh.f32 %v4533_v33 }
0x2c41   :  { %v5838_v55 = vpop.eup %5837 }
0x2c42   :  { %v5840_v52 = vpop.eup %5839  ;;  %4542 = vrot.lane.b32.xlu1 %v5838_v55, %s5983_s2 }
0x2c43   :  { %4544 = vrot.lane.b32.xlu0 %v5840_v52, %s5983_s2 }
0x2c45   :  { %v5842_v59 = vpop.eup %5841 }
0x2c46   :  { %v5844_v2 = vpop.eup %5843  ;;  %4546 = vrot.lane.b32.xlu1 %v5842_v59, %s5983_s2 }
0x2c47   :  { %4548 = vrot.lane.b32.xlu0 %v5844_v2, %s5983_s2 }
0x2cb4   :  { %v4543_v58 = vpop.permute.xlu1 %4542 }
0x2cb5   :  { %v4545_v0 = vpop.permute.xlu0 %4544  ;;  %v4554_v8 = vmul.f32 %v5830_v41, %v4543_v58 }
0x2cb6   :  { %v4555_v16 = vmul.f32 %v5832_v32, %v4545_v0 }
0x2cb7   :  { %v4563_v11 = vrot.slane %v4554_v8, 7 }
0x2cb8   :  { %v4930_v56 = vrot.slane %v4555_v16, 14  ;;  %v4564_v14 = vrot.slane %v4555_v16, 6  ;;  %v4547_v60 = vpop.permute.xlu1 %4546 }
0x2cb9   :  { %v4549_v44 = vpop.permute.xlu0 %4548  ;;  %v4556_v45 = vmul.f32 %v5834_v7, %v4547_v60 }
0x2cba   :  { %v4727_v17 = vsel %vm1834_vm3, %v4930_v56, %v4563_v11  ;;  %v4557_v39 = vmul.f32 %v5836_v50, %v4549_v44  ;;  %v4565_v20 = vsel %vm1834_vm3, %v4564_v14, %v4563_v11 }
0x2cbb   :  { %v4566_v46 = vrot.slane %v4556_v45, 5  ;;  %v4931_v18 = vrot.slane %v4556_v45, 13 }
0x2cbc   :  { %v4568_v29 = vrot.slane %v4557_v39, 4  ;;  %v4932_v49 = vrot.slane %v4557_v39, 12 }
0x2cbd   :  { %v4567_v9 = vsel %vm1837_vm4, %v4566_v46, %v4565_v20  ;;  %v4729_v21 = vsel %vm1837_vm4, %v4931_v18, %v4727_v17 }
0x2cbe   :  { %v4569_v5 = vsel %vm1840_vm5, %v4568_v29, %v4567_v9  ;;  %v4731_v62 = vsel %vm1840_vm5, %v4932_v49, %v4729_v21 }
0x2cbf   :  { %4570 = vrot.lane.b32.xlu1 %v4569_v5, %s5984_s23 }
0x2d31   :  { %v4571_v40 = vpop.permute.xlu1 %4570 }
0x2d32   :  { %5315 = vmatmul.mubr.msk.f32.vlgmr.msra.gmra.mrb[44].mxu1 %vm1557_vm7, %v4571_v40 }
0x2e05   :  { %v4640_v41 = vpop.f32.mrb[44].mxu1 }
0x2e06   :  { %v4644_v63 = vadd.f32 %v4640_v41, %v4558_v25  ;;  %v5316_v32 = vpop.f32.mrb[45].mxu1 }
0x2e08   :  { %5845 = vtanh.f32 %v4644_v63  ;;  %v4911_v35 = vmul.f32 -1.442695, %v4644_v63 }
0x2e0a   :  { %5847 = vpow2.f32 %v4911_v35 }
0x2e12   :  { %v5846_v36 = vpop.eup %5845 }
0x2e13   :  { %4654 = vrot.lane.b32.xlu0 %v5846_v36, %s5983_s2 }
0x2e14   :  { %v5848_v23 = vpop.eup %5847 }
0x2e15   :  { %v4648_v7 = vadd.f32 1.0, %v5848_v23 }
0x2e17   :  { %5849 = vrcp.f32 %v4648_v7 }
0x2e21   :  { %v5850_v47 = vpop.eup %5849 }
0x2e22   :  { %v4652_v3 = vmul.f32 %v5850_v47, %v6788_v28 }
0x2e85   :  { %v4655_v50 = vpop.permute.xlu0 %4654 }
0x2e86   :  { %v4657_v24 = vmul.f32 %v5850_v47, %v4655_v50 }
0x2e88   :  { %4659 = vrot.lane.b32.xlu1 %v4657_v24, %s5983_s2 }
0x2e8c   :  { %4732 = vrot.lane.b32.xlu1 %v6397_v19, %s5984_s23 }
0x2e90   :  { %4736 = vrot.lane.b32.xlu1 %v6546_v1, %s5984_s23 }
0x2e94   :  { %4740 = vrot.lane.b32.xlu1 %v6699_v34, %s5984_s23 }
0x2e98   :  { %4744 = vrot.lane.b32.xlu1 %v4731_v62, %s5984_s23 }
0x2efa   :  { %v4660_v37 = vpop.permute.xlu1 %4659 }
0x2efb   :  { %v4662_v54 = vadd.f32 %v4660_v37, %v4652_v3 }
0x2efd   :  { %5851 = vtanh.f32 %v4662_v54 }
0x2efe   :  { %v4733_v15 = vpop.permute.xlu1 %4732 }
0x2eff   :  { %4756 = vst.msk [vmem:[#allocation8 + $0x4] sm:$0xf] %vm4754_vm6, %v4733_v15 }
0x2f02   :  { %v4737_v42 = vpop.permute.xlu1 %4736 }
0x2f03   :  { %4758 = vst.msk [vmem:[#allocation8 + $0xc] sm:$0xf] %vm4754_vm6, %v4737_v42 }
0x2f06   :  { %v4741_v19 = vpop.permute.xlu1 %4740 }
0x2f07   :  { %v5852_v57 = vpop.eup %5851  ;;  %4760 = vst.msk [vmem:[#allocation8 + $0x14] sm:$0xf] %vm4754_vm6, %v4741_v19 }
0x2f08   :  { %4665 = vrot.lane.b32.xlu0 %v5852_v57, %s5983_s2 }
0x2f0a   :  { %v4745_v1 = vpop.permute.xlu1 %4744 }
0x2f0b   :  { %4762 = vst.msk [vmem:[#allocation8 + $0x1c] sm:$0xf] %vm4754_vm6, %v4745_v1 }
0x2f0c   :  { %4734 = vrot.lane.b32.xlu0 %v6472_v38, %s5984_s23 }
0x2f10   :  { %4738 = vrot.lane.b32.xlu0 %v6620_v43, %s5984_s23 }
0x2f14   :  { %4742 = vrot.lane.b32.xlu0 %v6773_v22, %s5984_s23 }
0x2f7a   :  { %v4666_v34 = vpop.permute.xlu0 %4665 }
0x2f7b   :  { %v4668_v28 = vmul.f32 %v5850_v47, %v4666_v34 }
0x2f7d   :  { %4764 = vrot.lane.b32.xlu0 %v4668_v28, %s5984_s23 }
0x2f7e   :  { %v4735_v26 = vpop.permute.xlu0 %4734 }
0x2f7f   :  { %4757 = vst.msk [vmem:[#allocation8 + $0x8] sm:$0xf] %vm4754_vm6, %v4735_v26 }
0x2f82   :  { %v4739_v31 = vpop.permute.xlu0 %4738 }
0x2f83   :  { %4759 = vst.msk [vmem:[#allocation8 + $0x10] sm:$0xf] %vm4754_vm6, %v4739_v31 }
0x2f86   :  { %v4743_v38 = vpop.permute.xlu0 %4742 }
0x2f87   :  { %4761 = vst.msk [vmem:[#allocation8 + $0x18] sm:$0xf] %vm4754_vm6, %v4743_v38 }
0x2f88   :  { %5931 = shalt.err (!%p5928_p0)
}
0x2f89   :  { %s5932_s29 = scalar_lea.hbm %s6893_s7, 512 }
0x2f8a   :  { %p5933_p1 = scmp.ne.s32.totalorder %s6893_s7, %s5932_s29  ;;  %p5936_p2 = scmp.lt.u32.totalorder %s5932_s29, %s6893_s7 }
0x2f8c   :  { %p5938_p3 = pnand %p5936_p2, %p5933_p1 }
0x2f8e   :  { %5941 = shalt.err (!%p5938_p3)
}
0x2f8f   :  { %s5986_s10 = smov 4   ;;  %s5987_s13 = smov [#allocation9]  }
0x2f90   :  { %4793 = dma.vmem_to_hbm [thread:$0]  %s4788_s25, 512, %s6893_s7, [#allocation4], %s5984_s23, %s5984_s23, %s5986_s10  }
0x2f91   :  { %s4799_s14 = sshll.u32 %s5987_s13, 4  ;;  %s4800_s14 = int_to_ptr.vmem [resolvable:$true] %s4799_s14 }
0x2f92   :  { %s5942_s17 = scalar_lea.vmem %s4800_s14, 512  ;;  %p5947_p5 = scmp.lt.s32.totalorder %s4800_s14, %s4800_s14 }
0x2f93   :  { %p5943_p4 = scmp.ne.s32.totalorder %s4800_s14, %s5942_s17  ;;  %p5948_p6 = scmp.lt.s32.totalorder %s5942_s17, %s5942_s17 }
0x2f95   :  { %p5949_p7 = por %p5948_p6, %p5947_p5 }
0x2f97   :  { %p5950_p8 = pnand %p5949_p7, %p5943_p4 }
0x2fef   :  { %v4765_v43 = vpop.permute.xlu0 %4764 }
0x2ff0   :  { %4781 = vst.msk [vmem:[#allocation9 + $0x1c] sm:$0xf] %vm4754_vm6, %v4765_v43 }
0x2ff1   :  { %5953 = shalt.err (!%p5950_p8)
}
0x2ff2   :  { %s5954_s21 = scalar_lea.hbm %s6894_s8, 512 }
0x2ff3   :  { %p5955_p9 = scmp.ne.s32.totalorder %s6894_s8, %s5954_s21  ;;  %p5958_p10 = scmp.lt.u32.totalorder %s5954_s21, %s6894_s8 }
0x2ff5   :  { %p5960_p11 = pnand %p5958_p10, %p5955_p9 }
0x2ff7   :  { %5963 = shalt.err (!%p5960_p11)
}
0x2ff8   :  { %4805 = dma.vmem_to_hbm [thread:$0]  %s4800_s14, 512, %s6894_s8, [#allocation10], %s5984_s23, %s5984_s23, %s5986_s10  }
0x2ff9   :  { %5968 = dma.done.wait [#allocation4], 512  }
0x2ffa   :  { %5969 = vsyncadd [#allocation4], 4294966784 }
0x2ffb   :  { %5970 = dma.done.wait [#allocation10], 512  }
0x2ffc   :  { %5971 = vsyncadd [#allocation10], 4294966784 }
0x2ffd   :  { %4812 = vsyncpa [#allocation3], 1 }
0x2ffe   :  { %4813 = vsyncpa [#allocation6], 1 }
0x2fff   :  { %4814 = vsyncpa [#allocation4], 1 }
0x3000   :  { %4815 = vsyncpa [#allocation10], 1 }

</bundles_post_ra>
